<compile_context>
chip_gen: v7x
topology: tpu7x:2x2x1
jax: 0.10.0
libtpu: 0.0.40
codegen_flags: <defaults>
</compile_context>

<pallas_src>
import math
from functools import partial

import jax
import jax.numpy as jnp
from jax.experimental import pallas as pl
from jax.experimental.pallas import tpu as pltpu

_VMEM_LIMIT = 64 * 1024 * 1024


# ----------------------------------------------------------------------------
# Shared helper: matches the PyTorch `Norm` module (unbiased std, eps on std).
# ----------------------------------------------------------------------------
def _torch_norm(x, alpha, bias, eps):
    d = x.shape[-1]
    mu = jnp.mean(x, axis=-1, keepdims=True)
    xc = x - mu
    var = jnp.sum(xc * xc, axis=-1, keepdims=True) / (d - 1)   # ddof=1
    return alpha * xc / (jnp.sqrt(var) + eps) + bias           # exact division


# ----------------------------------------------------------------------------
# Kernel A: norm_1 + fused QKV projection, row-tiled over flattened (B*S) rows.
# Writes q, k, v as separate outputs (already in (B,S,D)-friendly layout).
# ----------------------------------------------------------------------------
def norm_qkv_kernel(x_ref, alpha1_ref, beta1_ref, wqkv_ref, bqkv_ref,
                    q_ref, k_ref, v_ref, *, eps, d):
    x = x_ref[...]                                              # (rt, D) f32
    x2 = _torch_norm(x, alpha1_ref[...], beta1_ref[...], eps)   # (rt, D) f32
    qkv = jnp.dot(x2.astype(wqkv_ref.dtype), wqkv_ref[...],
                  preferred_element_type=jnp.float32) + bqkv_ref[...]
    qkv = qkv.astype(q_ref.dtype)
    q_ref[...] = qkv[:, 0 * d:1 * d]
    k_ref[...] = qkv[:, 1 * d:2 * d]
    v_ref[...] = qkv[:, 2 * d:3 * d]


# ----------------------------------------------------------------------------
# Kernel B: multi-head self-attention, grid = (batch, q-tile).  Heads batched,
# head split done in-register (no HBM head transpose), additive mask bias.
# ----------------------------------------------------------------------------
def attention_kernel(q_ref, k_ref, v_ref, bias_ref, ctx_ref, attn_ref,
                     *, heads, d_k):
    tq = q_ref.shape[1]
    s = k_ref.shape[1]
    q = q_ref[0].reshape(tq, heads, d_k)                        # (tq, H, dk)
    k = k_ref[0].reshape(s, heads, d_k)                         # (S,  H, dk)
    v = v_ref[0].reshape(s, heads, d_k)

    scores = jnp.einsum("qhd,khd->hqk", q, k,
                        preferred_element_type=jnp.float32)     # (H, tq, S)
    scores = scores * (1.0 / math.sqrt(d_k))
    scores = scores + bias_ref[0][None, :, :]                   # additive mask

    scores = scores - jnp.max(scores, axis=-1, keepdims=True)
    e = jnp.exp(scores)
    probs = e / jnp.sum(e, axis=-1, keepdims=True)              # exact denom

    attn_ref[0] = probs                                         # (H, tq, S)

    ctx = jnp.einsum("hqk,khd->qhd", probs.astype(v.dtype), v,
                     preferred_element_type=jnp.float32)        # (tq, H, dk)
    ctx_ref[0] = ctx.reshape(tq, heads * d_k).astype(ctx_ref.dtype)


# ----------------------------------------------------------------------------
# Kernel C: out-projection + residual + norm_2 + feed-forward + residual.
# grid = (row-tile [parallel], d_ff-tile [arbitrary]) with a VMEM accumulator.
# ----------------------------------------------------------------------------
def out_ff_kernel(x_ref, ctx_ref, wo_ref, bo_ref, alpha2_ref, beta2_ref,
                  w1_ref, b1_ref, w2_ref, b2_ref, out_ref,
                  x1_sc, x2_sc, acc_sc, *, eps):
    f = pl.program_id(1)

    @pl.when(f == 0)
    def _():
        attn_out = jnp.dot(ctx_ref[...].astype(wo_ref.dtype), wo_ref[...],
                           preferred_element_type=jnp.float32) + bo_ref[...]
        x1 = x_ref[...] + attn_out                              # residual 1
        x1_sc[...] = x1
        x2_sc[...] = _torch_norm(x1, alpha2_ref[...], beta2_ref[...],
                                 eps).astype(x2_sc.dtype)
        acc_sc[...] = jnp.zeros_like(acc_sc)

    h1 = jnp.maximum(
        jnp.dot(x2_sc[...], w1_ref[...],
                preferred_element_type=jnp.float32) + b1_ref[...], 0.0)
    acc_sc[...] += jnp.dot(h1.astype(w2_ref.dtype), w2_ref[...],
                           preferred_element_type=jnp.float32)

    @pl.when(f == pl.num_programs(1) - 1)
    def _():
        out_ref[...] = (x1_sc[...] + acc_sc[...]
                        + b2_ref[...]).astype(out_ref.dtype)    # residual 2


# ----------------------------------------------------------------------------
# Wrapper
# ----------------------------------------------------------------------------
def _fit_tile(tile, total, mult):
    """Largest tile <= `tile` that is a multiple of `mult`, else the full dim."""
    t = min(tile, total)
    if t >= total:
        return total
    t = (t // mult) * mult
    return t if t > 0 else total


@partial(jax.jit, static_argnames=("heads", "eps", "matmul_dtype",
                                   "row_tile", "q_tile", "ff_tile"))
def encoder_layer(x, mask, params, heads, eps=1e-6,
                  matmul_dtype=jnp.bfloat16,
                  row_tile=512, q_tile=256, ff_tile=512):
    B, S, D = x.shape
    d_k = D // heads
    d_ff = params["w1"].shape[1]
    BS = B * S

    rt = _fit_tile(row_tile, BS, 8)
    tq = _fit_tile(q_tile, S, 8)
    if S % tq != 0:
        tq = S                       # keep KV reduction exact (no padded q rows)
    ft = _fit_tile(ff_tile, d_ff, 128)
    if d_ff % ft != 0:
        ft = d_ff                    # TODO(synk): handle ragged d_ff tiles

    n_row = pl.cdiv(BS, rt)
    n_q = S // tq
    n_ff = d_ff // ft

    cast_w = lambda w: w.astype(matmul_dtype)

    # Fused QKV weights: one wide MXU matmul instead of three narrow ones.
    wqkv = cast_w(jnp.concatenate([params["wq"], params["wk"], params["wv"]],
                                  axis=1))                      # (D, 3D)
    bqkv = jnp.concatenate([params["bq"], params["bk"], params["bv"]], axis=1)

    x_flat = x.reshape(BS, D)
    mask_bias = jnp.where(mask == 0.0, jnp.float32(-1e9),
                          jnp.float32(0.0))                     # (B, 1, S)

    const = lambda shape: pl.BlockSpec(shape, lambda i: tuple(0 for _ in shape))

    # ---- Kernel A: norm_1 + QKV projection ------------------------------
    q, k, v = pl.pallas_call(
        partial(norm_qkv_kernel, eps=eps, d=D),
        grid=(n_row,),
        in_specs=[
            pl.BlockSpec((rt, D), lambda i: (i, 0)),
            const((1, D)), const((1, D)),                       # alpha1, beta1
            const((D, 3 * D)), const((1, 3 * D)),               # Wqkv, bqkv
        ],
        out_specs=(pl.BlockSpec((rt, D), lambda i: (i, 0)),) * 3,
        out_shape=(jax.ShapeDtypeStruct((BS, D), matmul_dtype),) * 3,
        compiler_params=pltpu.CompilerParams(
            dimension_semantics=("parallel",),
            vmem_limit_bytes=_VMEM_LIMIT),
    )(x_flat, params["alpha1"], params["beta1"], wqkv, bqkv)

    # Free reshapes only (no split / transpose HBM copies).
    q3, k3, v3 = (t.reshape(B, S, D) for t in (q, k, v))

    # ---- Kernel B: attention, grid (batch, q-tile) -----------------------
    qspec = pl.BlockSpec((1, tq, D), lambda b, qi: (b, qi, 0))
    kvspec = pl.BlockSpec((1, S, D), lambda b, qi: (b, 0, 0))
    ctx, attn = pl.pallas_call(
        partial(attention_kernel, heads=heads, d_k=d_k),
        grid=(B, n_q),
        in_specs=[qspec, kvspec, kvspec,
                  pl.BlockSpec((1, 1, S), lambda b, qi: (b, 0, 0))],
        out_specs=(
            pl.BlockSpec((1, tq, D), lambda b, qi: (b, qi, 0)),
            pl.BlockSpec((1, heads, tq, S), lambda b, qi: (b, 0, qi, 0)),
        ),
        out_shape=(
            jax.ShapeDtypeStruct((B, S, D), matmul_dtype),
            jax.ShapeDtypeStruct((B, heads, S, S), jnp.float32),
        ),
        compiler_params=pltpu.CompilerParams(
            dimension_semantics=("parallel", "parallel"),
            vmem_limit_bytes=_VMEM_LIMIT),
    )(q3, k3, v3, mask_bias)

    ctx_flat = ctx.reshape(BS, D)                               # free reshape

    # ---- Kernel C: out-proj + residual + norm_2 + FF (d_ff tiled) --------
    out_flat = pl.pallas_call(
        partial(out_ff_kernel, eps=eps),
        grid=(n_row, n_ff),
        in_specs=[
            pl.BlockSpec((rt, D), lambda i, f: (i, 0)),         # x (residual)
            pl.BlockSpec((rt, D), lambda i, f: (i, 0)),         # ctx
            pl.BlockSpec((D, D), lambda i, f: (0, 0)),          # Wo
            pl.BlockSpec((1, D), lambda i, f: (0, 0)),          # bo
            pl.BlockSpec((1, D), lambda i, f: (0, 0)),          # alpha2
            pl.BlockSpec((1, D), lambda i, f: (0, 0)),          # beta2
            pl.BlockSpec((D, ft), lambda i, f: (0, f)),         # W1 tile
            pl.BlockSpec((1, ft), lambda i, f: (0, f)),         # b1 tile
            pl.BlockSpec((ft, D), lambda i, f: (f, 0)),         # W2 tile
            pl.BlockSpec((1, D), lambda i, f: (0, 0)),          # b2
        ],
        out_specs=pl.BlockSpec((rt, D), lambda i, f: (i, 0)),
        out_shape=jax.ShapeDtypeStruct((BS, D), jnp.float32),
        scratch_shapes=[pltpu.VMEM((rt, D), jnp.float32),       # x1
                        pltpu.VMEM((rt, D), matmul_dtype),      # norm_2(x1)
                        pltpu.VMEM((rt, D), jnp.float32)],      # FF accumulator
        compiler_params=pltpu.CompilerParams(
            dimension_semantics=("parallel", "arbitrary"),
            vmem_limit_bytes=_VMEM_LIMIT),
    )(x_flat, ctx_flat, cast_w(params["wo"]), params["bo"],
      params["alpha2"], params["beta2"],
      cast_w(params["w1"]), params["b1"], cast_w(params["w2"]), params["b2"])

    return out_flat.reshape(B, S, D), attn


# ----------------------------------------------------------------------------
# Pure-JAX reference (mirrors the PyTorch forward) for verification
# ----------------------------------------------------------------------------
def reference_encoder_layer(x, mask, p, heads, eps=1e-6):
    B, S, D = x.shape
    d_k = D // heads

    def norm(xx, a, b):
        mu = xx.mean(-1, keepdims=True)
        std = jnp.sqrt(((xx - mu) ** 2).sum(-1, keepdims=True) / (D - 1))
        return a[0] * (xx - mu) / (std + eps) + b[0]

    x2 = norm(x, p["alpha1"], p["beta1"])
    q = x2 @ p["wq"] + p["bq"][0]
    k = x2 @ p["wk"] + p["bk"][0]
    v = x2 @ p["wv"] + p["bv"][0]
    q = q.reshape(B, S, heads, d_k).transpose(0, 2, 1, 3)
    k = k.reshape(B, S, heads, d_k).transpose(0, 2, 1, 3)
    v = v.reshape(B, S, heads, d_k).transpose(0, 2, 1, 3)
    scores = jnp.einsum("bhqd,bhkd->bhqk", q, k) / math.sqrt(d_k)
    scores = jnp.where(mask[:, None, :, :] == 0.0, -1e9, scores)
    probs = jax.nn.softmax(scores, axis=-1)
    ctx = jnp.einsum("bhqk,bhkd->bhqd", probs, v)
    ctx = ctx.transpose(0, 2, 1, 3).reshape(B, S, D)
    attn_out = ctx @ p["wo"] + p["bo"][0]
    x = x + attn_out
    x2 = norm(x, p["alpha2"], p["beta2"])
    ff = jnp.maximum(x2 @ p["w1"] + p["b1"][0], 0.0) @ p["w2"] + p["b2"][0]
    return x + ff, probs


# ----------------------------------------------------------------------------
if __name__ == "__main__":
    # Make the XLA reference and the Pallas kernels use the same (full f32)
    # matmul precision so the f32 check is meaningful.
    jax.config.update("jax_default_matmul_precision", "highest")

    B, S, D, H = 2, 8, 32, 4
    D_FF = 2048   # FeedForward default d_ff

    key = jax.random.PRNGKey(0)
    keys = jax.random.split(key, 16)

    def rand(k, shape, scale=0.05):
        return (scale * jax.random.normal(k, shape)).astype(jnp.float32)

    params = {
        "alpha1": jnp.ones((1, D), jnp.float32),
        "beta1": jnp.zeros((1, D), jnp.float32),
        "alpha2": jnp.ones((1, D), jnp.float32),
        "beta2": jnp.zeros((1, D), jnp.float32),
        # nn.Linear weights, pre-transposed to (in, out) so y = x @ W + b
        "wq": rand(keys[0], (D, D)), "bq": rand(keys[1], (1, D)),
        "wk": rand(keys[2], (D, D)), "bk": rand(keys[3], (1, D)),
        "wv": rand(keys[4], (D, D)), "bv": rand(keys[5], (1, D)),
        "wo": rand(keys[6], (D, D)), "bo": rand(keys[7], (1, D)),
        "w1": rand(keys[8], (D, D_FF)), "b1": rand(keys[9], (1, D_FF)),
        "w2": rand(keys[10], (D_FF, D)), "b2": rand(keys[11], (1, D)),
    }

    x = rand(keys[12], (B, S, D), scale=1.0)
    # padding mask: batch 0 keeps all 8 positions, batch 1 keeps first 5
    lengths = jnp.array([8, 5])
    mask = (jnp.arange(S)[None, :] < lengths[:, None]).astype(jnp.float32)
    mask = mask[:, None, :]                                     # (B, 1, S)

    ref_out, ref_attn = reference_encoder_layer(x, mask, params, heads=H)

    # ---- f32 matmul path (tight check) -----------------------------------
    out, attn = encoder_layer(x, mask, params, heads=H,
                              matmul_dtype=jnp.float32)
    out = jax.block_until_ready(out)
    attn = jax.block_until_ready(attn)
    assert out.shape == (B, S, D) and attn.shape == (B, H, S, S)
    assert jnp.allclose(out, ref_out, atol=2e-3, rtol=2e-3)
    assert jnp.allclose(attn, ref_attn, atol=2e-3, rtol=2e-3)

    # ---- bf16 matmul path (default; f32 accumulation; looser tolerance) --
    out16, attn16 = encoder_layer(x, mask, params, heads=H)
    out16 = jax.block_until_ready(out16)
    attn16 = jax.block_until_ready(attn16)
    assert jnp.allclose(out16, ref_out, atol=5e-2, rtol=5e-2)
    assert jnp.allclose(attn16, ref_attn, atol=2e-2, rtol=2e-2)

    print("KERNEL_OK")
</pallas_src>

<mosaic_0001>
module attributes {stable_mosaic.version = 11 : i64} {
  func.func @norm_qkv_kernel(%arg0: i32, %arg1: memref<16x32xf32, #tpu.memory_space<vmem>>, %arg2: memref<1x32xf32, #tpu.memory_space<vmem>>, %arg3: memref<1x32xf32, #tpu.memory_space<vmem>>, %arg4: memref<32x96xf32, #tpu.memory_space<vmem>>, %arg5: memref<1x96xf32, #tpu.memory_space<vmem>>, %arg6: memref<16x32xf32, #tpu.memory_space<vmem>>, %arg7: memref<16x32xf32, #tpu.memory_space<vmem>>, %arg8: memref<16x32xf32, #tpu.memory_space<vmem>>) attributes {dimension_semantics = [#tpu.dimension_semantics<parallel>], iteration_bounds = array<i64: 1>, scalar_prefetch = 0 : i64, scratch_operands = 0 : i64, tpu.core_type = #tpu.core_type<tc>, window_params = [{transform_indices = @transform_0, window_bounds = array<i64: 16, 32>}, {pipeline_mode = #tpu.pipeline_mode<synchronous>, transform_indices = @transform_1, window_bounds = array<i64: 1, 32>}, {pipeline_mode = #tpu.pipeline_mode<synchronous>, transform_indices = @transform_2, window_bounds = array<i64: 1, 32>}, {pipeline_mode = #tpu.pipeline_mode<synchronous>, transform_indices = @transform_3, window_bounds = array<i64: 32, 96>}, {pipeline_mode = #tpu.pipeline_mode<synchronous>, transform_indices = @transform_4, window_bounds = array<i64: 1, 96>}, {transform_indices = @transform_5, window_bounds = array<i64: 16, 32>}, {transform_indices = @transform_6, window_bounds = array<i64: 16, 32>}, {transform_indices = @transform_7, window_bounds = array<i64: 16, 32>}]} {
    %c0 = arith.constant 0 : index
    %c0_0 = arith.constant 0 : index
    %0 = vector.load %arg1[%c0, %c0_0] : memref<16x32xf32, #tpu.memory_space<vmem>>, vector<16x32xf32>
    %c0_1 = arith.constant 0 : index
    %c0_2 = arith.constant 0 : index
    %1 = vector.load %arg2[%c0_1, %c0_2] : memref<1x32xf32, #tpu.memory_space<vmem>>, vector<1x32xf32>
    %c0_3 = arith.constant 0 : index
    %c0_4 = arith.constant 0 : index
    %2 = vector.load %arg3[%c0_3, %c0_4] : memref<1x32xf32, #tpu.memory_space<vmem>>, vector<1x32xf32>
    %cst = arith.constant dense<0.000000e+00> : vector<16xf32>
    %3 = vector.multi_reduction <add>, %0, %cst [1] : vector<16x32xf32> to vector<16xf32>
    %4 = vector.shape_cast %3 : vector<16xf32> to vector<16x1xf32>
    %cst_5 = arith.constant 3.200000e+01 : f32
    %5 = vector.broadcast %cst_5 : f32 to vector<16x1xf32>
    %6 = arith.divf %4, %5 : vector<16x1xf32>
    %7 = vector.broadcast %6 : vector<16x1xf32> to vector<16x32xf32>
    %8 = arith.subf %0, %7 : vector<16x32xf32>
    %9 = arith.mulf %8, %8 : vector<16x32xf32>
    %cst_6 = arith.constant dense<0.000000e+00> : vector<16xf32>
    %10 = vector.multi_reduction <add>, %9, %cst_6 [1] : vector<16x32xf32> to vector<16xf32>
    %11 = vector.shape_cast %10 : vector<16xf32> to vector<16x1xf32>
    %cst_7 = arith.constant 3.100000e+01 : f32
    %12 = vector.broadcast %cst_7 : f32 to vector<16x1xf32>
    %13 = arith.divf %11, %12 : vector<16x1xf32>
    %14 = vector.broadcast %1 : vector<1x32xf32> to vector<16x32xf32>
    %15 = arith.mulf %14, %8 : vector<16x32xf32>
    %16 = math.sqrt %13 : vector<16x1xf32>
    %cst_8 = arith.constant 9.99999997E-7 : f32
    %17 = vector.broadcast %cst_8 : f32 to vector<16x1xf32>
    %18 = arith.addf %16, %17 : vector<16x1xf32>
    %19 = vector.broadcast %18 : vector<16x1xf32> to vector<16x32xf32>
    %20 = arith.divf %15, %19 : vector<16x32xf32>
    %21 = vector.broadcast %2 : vector<1x32xf32> to vector<16x32xf32>
    %22 = arith.addf %20, %21 : vector<16x32xf32>
    %c0_9 = arith.constant 0 : index
    %c0_10 = arith.constant 0 : index
    %23 = vector.load %arg4[%c0_9, %c0_10] : memref<32x96xf32, #tpu.memory_space<vmem>>, vector<32x96xf32>
    %cst_11 = arith.constant dense<0.000000e+00> : vector<16x96xf32>
    %24 = tpu.matmul %22, %23, %cst_11 {dimension_numbers = #tpu.dot_dimension_numbers<[1], [0], [0], [1], [0, 0, 1, 1], [], []>, precision = #tpu.contract_precision<fp32>} : vector<16x32xf32>, vector<32x96xf32>, vector<16x96xf32> -> vector<16x96xf32>
    %c0_12 = arith.constant 0 : index
    %c0_13 = arith.constant 0 : index
    %25 = vector.load %arg5[%c0_12, %c0_13] : memref<1x96xf32, #tpu.memory_space<vmem>>, vector<1x96xf32>
    %26 = vector.broadcast %25 : vector<1x96xf32> to vector<16x96xf32>
    %27 = arith.addf %24, %26 : vector<16x96xf32>
    %28 = vector.extract_strided_slice %27 {offsets = [0, 0], sizes = [16, 32], strides = [1, 1]} : vector<16x96xf32> to vector<16x32xf32>
    %c0_14 = arith.constant 0 : index
    %c0_15 = arith.constant 0 : index
    %29 = vector.load %arg6[%c0_14, %c0_15] : memref<16x32xf32, #tpu.memory_space<vmem>>, vector<16x32xf32>
    tpu.vector_store %arg6[%c0_14, %c0_15], %28 {strides = array<i32>} : memref<16x32xf32, #tpu.memory_space<vmem>>, vector<16x32xf32>,
    %30 = vector.extract_strided_slice %27 {offsets = [0, 32], sizes = [16, 32], strides = [1, 1]} : vector<16x96xf32> to vector<16x32xf32>
    %c0_16 = arith.constant 0 : index
    %c0_17 = arith.constant 0 : index
    %31 = vector.load %arg7[%c0_16, %c0_17] : memref<16x32xf32, #tpu.memory_space<vmem>>, vector<16x32xf32>
    tpu.vector_store %arg7[%c0_16, %c0_17], %30 {strides = array<i32>} : memref<16x32xf32, #tpu.memory_space<vmem>>, vector<16x32xf32>,
    %32 = vector.extract_strided_slice %27 {offsets = [0, 64], sizes = [16, 32], strides = [1, 1]} : vector<16x96xf32> to vector<16x32xf32>
    %c0_18 = arith.constant 0 : index
    %c0_19 = arith.constant 0 : index
    %33 = vector.load %arg8[%c0_18, %c0_19] : memref<16x32xf32, #tpu.memory_space<vmem>>, vector<16x32xf32>
    tpu.vector_store %arg8[%c0_18, %c0_19], %32 {strides = array<i32>} : memref<16x32xf32, #tpu.memory_space<vmem>>, vector<16x32xf32>,
    return
  }
  func.func @transform_0(%arg0: i32) -> (i32, i32) {
    %c0_i32 = arith.constant 0 : i32
    %c0_i32_0 = arith.constant 0 : i32
    return %arg0, %c0_i32 : i32, i32
  }
  func.func @transform_1(%arg0: i32) -> (i32, i32) {
    %c0_i32 = arith.constant 0 : i32
    %c0_i32_0 = arith.constant 0 : i32
    %c0_i32_1 = arith.constant 0 : i32
    return %c0_i32, %c0_i32_0 : i32, i32
  }
  func.func @transform_2(%arg0: i32) -> (i32, i32) {
    %c0_i32 = arith.constant 0 : i32
    %c0_i32_0 = arith.constant 0 : i32
    %c0_i32_1 = arith.constant 0 : i32
    return %c0_i32, %c0_i32_0 : i32, i32
  }
  func.func @transform_3(%arg0: i32) -> (i32, i32) {
    %c0_i32 = arith.constant 0 : i32
    %c0_i32_0 = arith.constant 0 : i32
    %c0_i32_1 = arith.constant 0 : i32
    return %c0_i32, %c0_i32_0 : i32, i32
  }
  func.func @transform_4(%arg0: i32) -> (i32, i32) {
    %c0_i32 = arith.constant 0 : i32
    %c0_i32_0 = arith.constant 0 : i32
    %c0_i32_1 = arith.constant 0 : i32
    return %c0_i32, %c0_i32_0 : i32, i32
  }
  func.func @transform_5(%arg0: i32) -> (i32, i32) {
    %c0_i32 = arith.constant 0 : i32
    %c0_i32_0 = arith.constant 0 : i32
    return %arg0, %c0_i32 : i32, i32
  }
  func.func @transform_6(%arg0: i32) -> (i32, i32) {
    %c0_i32 = arith.constant 0 : i32
    %c0_i32_0 = arith.constant 0 : i32
    return %arg0, %c0_i32 : i32, i32
  }
  func.func @transform_7(%arg0: i32) -> (i32, i32) {
    %c0_i32 = arith.constant 0 : i32
    %c0_i32_0 = arith.constant 0 : i32
    return %arg0, %c0_i32 : i32, i32
  }
}

module attributes {stable_mosaic.version = 11 : i64} {
  func.func @attention_kernel(%arg0: i32, %arg1: i32, %arg2: memref<1x8x32xf32, #tpu.memory_space<vmem>>, %arg3: memref<1x8x32xf32, #tpu.memory_space<vmem>>, %arg4: memref<1x8x32xf32, #tpu.memory_space<vmem>>, %arg5: memref<1x1x8xf32, #tpu.memory_space<vmem>>, %arg6: memref<1x8x32xf32, #tpu.memory_space<vmem>>, %arg7: memref<1x4x8x8xf32, #tpu.memory_space<vmem>>) attributes {dimension_semantics = [#tpu.dimension_semantics<parallel>, #tpu.dimension_semantics<parallel>], iteration_bounds = array<i64: 2, 1>, scalar_prefetch = 0 : i64, scratch_operands = 0 : i64, tpu.core_type = #tpu.core_type<tc>, window_params = [{transform_indices = @transform_0, window_bounds = array<i64: 1, 8, 32>}, {transform_indices = @transform_1, window_bounds = array<i64: 1, 8, 32>}, {transform_indices = @transform_2, window_bounds = array<i64: 1, 8, 32>}, {transform_indices = @transform_3, window_bounds = array<i64: 1, 1, 8>}, {transform_indices = @transform_4, window_bounds = array<i64: 1, 8, 32>}, {transform_indices = @transform_5, window_bounds = array<i64: 1, 4, 8, 8>}]} {
    %c0 = arith.constant 0 : index
    %c0_0 = arith.constant 0 : index
    %c0_1 = arith.constant 0 : index
    %0 = vector.load %arg2[%c0, %c0_0, %c0_1] : memref<1x8x32xf32, #tpu.memory_space<vmem>>, vector<1x8x32xf32>
    %1 = vector.shape_cast %0 : vector<1x8x32xf32> to vector<8x32xf32>
    %2 = vector.shape_cast %1 : vector<8x32xf32> to vector<8x4x8xf32>
    %c0_2 = arith.constant 0 : index
    %c0_3 = arith.constant 0 : index
    %c0_4 = arith.constant 0 : index
    %3 = vector.load %arg3[%c0_2, %c0_3, %c0_4] : memref<1x8x32xf32, #tpu.memory_space<vmem>>, vector<1x8x32xf32>
    %4 = vector.shape_cast %3 : vector<1x8x32xf32> to vector<8x32xf32>
    %5 = vector.shape_cast %4 : vector<8x32xf32> to vector<8x4x8xf32>
    %c0_5 = arith.constant 0 : index
    %c0_6 = arith.constant 0 : index
    %c0_7 = arith.constant 0 : index
    %6 = vector.load %arg4[%c0_5, %c0_6, %c0_7] : memref<1x8x32xf32, #tpu.memory_space<vmem>>, vector<1x8x32xf32>
    %7 = vector.shape_cast %6 : vector<1x8x32xf32> to vector<8x32xf32>
    %8 = vector.shape_cast %7 : vector<8x32xf32> to vector<8x4x8xf32>
    "tpu.trace_start"() <{level = 10 : i32, message = "qhd,khd->hqk"}> : () -> ()
    %cst = arith.constant dense<0.000000e+00> : vector<4x8x8xf32>
    %9 = tpu.matmul %2, %5, %cst {dimension_numbers = #tpu.dot_dimension_numbers<[2], [2], [0], [0], [0, 1, 0, 0, 1, 0], [1], [1]>, precision = #tpu.contract_precision<fp32>} : vector<8x4x8xf32>, vector<8x4x8xf32>, vector<4x8x8xf32> -> vector<4x8x8xf32>
    "tpu.trace_stop"() : () -> ()
    %cst_8 = arith.constant 0.353553385 : f32
    %10 = vector.broadcast %cst_8 : f32 to vector<4x8x8xf32>
    %11 = arith.mulf %9, %10 : vector<4x8x8xf32>
    %c0_9 = arith.constant 0 : index
    %c0_10 = arith.constant 0 : index
    %c0_11 = arith.constant 0 : index
    %12 = vector.load %arg5[%c0_9, %c0_10, %c0_11] : memref<1x1x8xf32, #tpu.memory_space<vmem>>, vector<1x1x8xf32>
    %13 = vector.shape_cast %12 : vector<1x1x8xf32> to vector<1x8xf32>
    %14 = vector.shape_cast %13 : vector<1x8xf32> to vector<1x1x8xf32>
    %15 = vector.broadcast %14 : vector<1x1x8xf32> to vector<4x8x8xf32>
    %16 = arith.addf %11, %15 : vector<4x8x8xf32>
    %cst_12 = arith.constant dense<0xFF800000> : vector<4x8xf32>
    %17 = vector.multi_reduction <maximumf>, %16, %cst_12 [2] : vector<4x8x8xf32> to vector<4x8xf32>
    %18 = vector.shape_cast %17 : vector<4x8xf32> to vector<4x8x1xf32>
    %19 = vector.broadcast %18 : vector<4x8x1xf32> to vector<4x8x8xf32>
    %20 = arith.subf %16, %19 : vector<4x8x8xf32>
    %21 = math.exp %20 : vector<4x8x8xf32>
    %cst_13 = arith.constant dense<0.000000e+00> : vector<4x8xf32>
    %22 = vector.multi_reduction <add>, %21, %cst_13 [2] : vector<4x8x8xf32> to vector<4x8xf32>
    %23 = vector.shape_cast %22 : vector<4x8xf32> to vector<4x8x1xf32>
    %24 = vector.broadcast %23 : vector<4x8x1xf32> to vector<4x8x8xf32>
    %25 = arith.divf %21, %24 : vector<4x8x8xf32>
    %c0_14 = arith.constant 0 : index
    %c0_15 = arith.constant 0 : index
    %c0_16 = arith.constant 0 : index
    %c0_17 = arith.constant 0 : index
    %26 = vector.load %arg7[%c0_14, %c0_15, %c0_16, %c0_17] : memref<1x4x8x8xf32, #tpu.memory_space<vmem>>, vector<1x4x8x8xf32>
    %27 = vector.shape_cast %26 : vector<1x4x8x8xf32> to vector<4x8x8xf32>
    %28 = vector.shape_cast %25 : vector<4x8x8xf32> to vector<1x4x8x8xf32>
    tpu.vector_store %arg7[%c0_14, %c0_15, %c0_16, %c0_17], %28 {strides = array<i32>} : memref<1x4x8x8xf32, #tpu.memory_space<vmem>>, vector<1x4x8x8xf32>,
    "tpu.trace_start"() <{level = 10 : i32, message = "hqk,khd->qhd"}> : () -> ()
    %cst_18 = arith.constant dense<0.000000e+00> : vector<4x8x8xf32>
    %29 = tpu.matmul %8, %25, %cst_18 {dimension_numbers = #tpu.dot_dimension_numbers<[0], [2], [2], [1], [0, 1, 0, 2, 1, 1], [1], [0]>, precision = #tpu.contract_precision<fp32>} : vector<8x4x8xf32>, vector<4x8x8xf32>, vector<4x8x8xf32> -> vector<4x8x8xf32>
    %30 = tpu.transpose %29, [2, 0, 1] : vector<4x8x8xf32> -> vector<8x4x8xf32>
    "tpu.trace_stop"() : () -> ()
    %31 = vector.shape_cast %30 : vector<8x4x8xf32> to vector<8x32xf32>
    %c0_19 = arith.constant 0 : index
    %c0_20 = arith.constant 0 : index
    %c0_21 = arith.constant 0 : index
    %32 = vector.load %arg6[%c0_19, %c0_20, %c0_21] : memref<1x8x32xf32, #tpu.memory_space<vmem>>, vector<1x8x32xf32>
    %33 = vector.shape_cast %32 : vector<1x8x32xf32> to vector<8x32xf32>
    %34 = vector.shape_cast %31 : vector<8x32xf32> to vector<1x8x32xf32>
    tpu.vector_store %arg6[%c0_19, %c0_20, %c0_21], %34 {strides = array<i32>} : memref<1x8x32xf32, #tpu.memory_space<vmem>>, vector<1x8x32xf32>,
    return
  }
  func.func @transform_0(%arg0: i32, %arg1: i32) -> (i32, i32, i32) {
    %c0_i32 = arith.constant 0 : i32
    %c0_i32_0 = arith.constant 0 : i32
    return %arg0, %arg1, %c0_i32 : i32, i32, i32
  }
  func.func @transform_1(%arg0: i32, %arg1: i32) -> (i32, i32, i32) {
    %c0_i32 = arith.constant 0 : i32
    %c0_i32_0 = arith.constant 0 : i32
    %c0_i32_1 = arith.constant 0 : i32
    return %arg0, %c0_i32, %c0_i32_0 : i32, i32, i32
  }
  func.func @transform_2(%arg0: i32, %arg1: i32) -> (i32, i32, i32) {
    %c0_i32 = arith.constant 0 : i32
    %c0_i32_0 = arith.constant 0 : i32
    %c0_i32_1 = arith.constant 0 : i32
    return %arg0, %c0_i32, %c0_i32_0 : i32, i32, i32
  }
  func.func @transform_3(%arg0: i32, %arg1: i32) -> (i32, i32, i32) {
    %c0_i32 = arith.constant 0 : i32
    %c0_i32_0 = arith.constant 0 : i32
    %c0_i32_1 = arith.constant 0 : i32
    return %arg0, %c0_i32, %c0_i32_0 : i32, i32, i32
  }
  func.func @transform_4(%arg0: i32, %arg1: i32) -> (i32, i32, i32) {
    %c0_i32 = arith.constant 0 : i32
    %c0_i32_0 = arith.constant 0 : i32
    return %arg0, %arg1, %c0_i32 : i32, i32, i32
  }
  func.func @transform_5(%arg0: i32, %arg1: i32) -> (i32, i32, i32, i32) {
    %c0_i32 = arith.constant 0 : i32
    %c0_i32_0 = arith.constant 0 : i32
    %c0_i32_1 = arith.constant 0 : i32
    return %arg0, %c0_i32, %arg1, %c0_i32_0 : i32, i32, i32, i32
  }
}

module attributes {stable_mosaic.version = 11 : i64} {
  func.func @out_ff_kernel(%arg0: i32, %arg1: i32, %arg2: memref<16x32xf32, #tpu.memory_space<vmem>>, %arg3: memref<16x32xf32, #tpu.memory_space<vmem>>, %arg4: memref<32x32xf32, #tpu.memory_space<vmem>>, %arg5: memref<1x32xf32, #tpu.memory_space<vmem>>, %arg6: memref<1x32xf32, #tpu.memory_space<vmem>>, %arg7: memref<1x32xf32, #tpu.memory_space<vmem>>, %arg8: memref<32x512xf32, #tpu.memory_space<vmem>>, %arg9: memref<1x512xf32, #tpu.memory_space<vmem>>, %arg10: memref<512x32xf32, #tpu.memory_space<vmem>>, %arg11: memref<1x32xf32, #tpu.memory_space<vmem>>, %arg12: memref<16x32xf32, #tpu.memory_space<vmem>>, %arg13: memref<16x32xf32, #tpu.memory_space<vmem>>, %arg14: memref<16x32xf32, #tpu.memory_space<vmem>>, %arg15: memref<16x32xf32, #tpu.memory_space<vmem>>) attributes {dimension_semantics = [#tpu.dimension_semantics<parallel>, #tpu.dimension_semantics<arbitrary>], iteration_bounds = array<i64: 1, 4>, scalar_prefetch = 0 : i64, scratch_operands = 3 : i64, tpu.core_type = #tpu.core_type<tc>, window_params = [{transform_indices = @transform_0, window_bounds = array<i64: 16, 32>}, {transform_indices = @transform_1, window_bounds = array<i64: 16, 32>}, {pipeline_mode = #tpu.pipeline_mode<synchronous>, transform_indices = @transform_2, window_bounds = array<i64: 32, 32>}, {pipeline_mode = #tpu.pipeline_mode<synchronous>, transform_indices = @transform_3, window_bounds = array<i64: 1, 32>}, {pipeline_mode = #tpu.pipeline_mode<synchronous>, transform_indices = @transform_4, window_bounds = array<i64: 1, 32>}, {pipeline_mode = #tpu.pipeline_mode<synchronous>, transform_indices = @transform_5, window_bounds = array<i64: 1, 32>}, {transform_indices = @transform_6, window_bounds = array<i64: 32, 512>}, {transform_indices = @transform_7, window_bounds = array<i64: 1, 512>}, {transform_indices = @transform_8, window_bounds = array<i64: 512, 32>}, {pipeline_mode = #tpu.pipeline_mode<synchronous>, transform_indices = @transform_9, window_bounds = array<i64: 1, 32>}, {transform_indices = @transform_10, window_bounds = array<i64: 16, 32>}]} {
    %c0_i32 = arith.constant 0 : i32
    %0 = arith.cmpi eq, %arg1, %c0_i32 : i32
    %1 = arith.extui %0 : i1 to i32
    %c0_i32_0 = arith.constant 0 : i32
    %2 = arith.cmpi ne, %1, %c0_i32_0 : i32
    scf.if %2 {
      %c0_15 = arith.constant 0 : index
      %c0_16 = arith.constant 0 : index
      %19 = vector.load %arg3[%c0_15, %c0_16] : memref<16x32xf32, #tpu.memory_space<vmem>>, vector<16x32xf32>
      %c0_17 = arith.constant 0 : index
      %c0_18 = arith.constant 0 : index
      %20 = vector.load %arg4[%c0_17, %c0_18] : memref<32x32xf32, #tpu.memory_space<vmem>>, vector<32x32xf32>
      %cst_19 = arith.constant dense<0.000000e+00> : vector<16x32xf32>
      %21 = tpu.matmul %19, %20, %cst_19 {dimension_numbers = #tpu.dot_dimension_numbers<[1], [0], [0], [1], [0, 0, 1, 1], [], []>, precision = #tpu.contract_precision<fp32>} : vector<16x32xf32>, vector<32x32xf32>, vector<16x32xf32> -> vector<16x32xf32>
      %c0_20 = arith.constant 0 : index
      %c0_21 = arith.constant 0 : index
      %22 = vector.load %arg5[%c0_20, %c0_21] : memref<1x32xf32, #tpu.memory_space<vmem>>, vector<1x32xf32>
      %23 = vector.broadcast %22 : vector<1x32xf32> to vector<16x32xf32>
      %24 = arith.addf %21, %23 : vector<16x32xf32>
      %c0_22 = arith.constant 0 : index
      %c0_23 = arith.constant 0 : index
      %25 = vector.load %arg2[%c0_22, %c0_23] : memref<16x32xf32, #tpu.memory_space<vmem>>, vector<16x32xf32>
      %26 = arith.addf %25, %24 : vector<16x32xf32>
      %c0_24 = arith.constant 0 : index
      %c0_25 = arith.constant 0 : index
      %27 = vector.load %arg13[%c0_24, %c0_25] : memref<16x32xf32, #tpu.memory_space<vmem>>, vector<16x32xf32>
      tpu.vector_store %arg13[%c0_24, %c0_25], %26 {strides = array<i32>} : memref<16x32xf32, #tpu.memory_space<vmem>>, vector<16x32xf32>,
      %c0_26 = arith.constant 0 : index
      %c0_27 = arith.constant 0 : index
      %28 = vector.load %arg6[%c0_26, %c0_27] : memref<1x32xf32, #tpu.memory_space<vmem>>, vector<1x32xf32>
      %c0_28 = arith.constant 0 : index
      %c0_29 = arith.constant 0 : index
      %29 = vector.load %arg7[%c0_28, %c0_29] : memref<1x32xf32, #tpu.memory_space<vmem>>, vector<1x32xf32>
      %cst_30 = arith.constant dense<0.000000e+00> : vector<16xf32>
      %30 = vector.multi_reduction <add>, %26, %cst_30 [1] : vector<16x32xf32> to vector<16xf32>
      %31 = vector.shape_cast %30 : vector<16xf32> to vector<16x1xf32>
      %cst_31 = arith.constant 3.200000e+01 : f32
      %32 = vector.broadcast %cst_31 : f32 to vector<16x1xf32>
      %33 = arith.divf %31, %32 : vector<16x1xf32>
      %34 = vector.broadcast %33 : vector<16x1xf32> to vector<16x32xf32>
      %35 = arith.subf %26, %34 : vector<16x32xf32>
      %36 = arith.mulf %35, %35 : vector<16x32xf32>
      %cst_32 = arith.constant dense<0.000000e+00> : vector<16xf32>
      %37 = vector.multi_reduction <add>, %36, %cst_32 [1] : vector<16x32xf32> to vector<16xf32>
      %38 = vector.shape_cast %37 : vector<16xf32> to vector<16x1xf32>
      %cst_33 = arith.constant 3.100000e+01 : f32
      %39 = vector.broadcast %cst_33 : f32 to vector<16x1xf32>
      %40 = arith.divf %38, %39 : vector<16x1xf32>
      %41 = vector.broadcast %28 : vector<1x32xf32> to vector<16x32xf32>
      %42 = arith.mulf %41, %35 : vector<16x32xf32>
      %43 = math.sqrt %40 : vector<16x1xf32>
      %cst_34 = arith.constant 9.99999997E-7 : f32
      %44 = vector.broadcast %cst_34 : f32 to vector<16x1xf32>
      %45 = arith.addf %43, %44 : vector<16x1xf32>
      %46 = vector.broadcast %45 : vector<16x1xf32> to vector<16x32xf32>
      %47 = arith.divf %42, %46 : vector<16x32xf32>
      %48 = vector.broadcast %29 : vector<1x32xf32> to vector<16x32xf32>
      %49 = arith.addf %47, %48 : vector<16x32xf32>
      %c0_35 = arith.constant 0 : index
      %c0_36 = arith.constant 0 : index
      %50 = vector.load %arg14[%c0_35, %c0_36] : memref<16x32xf32, #tpu.memory_space<vmem>>, vector<16x32xf32>
      tpu.vector_store %arg14[%c0_35, %c0_36], %49 {strides = array<i32>} : memref<16x32xf32, #tpu.memory_space<vmem>>, vector<16x32xf32>,
      %cst_37 = arith.constant 0.000000e+00 : f32
      %51 = vector.broadcast %cst_37 : f32 to vector<16x32xf32>
      %c0_38 = arith.constant 0 : index
      %c0_39 = arith.constant 0 : index
      %52 = vector.load %arg15[%c0_38, %c0_39] : memref<16x32xf32, #tpu.memory_space<vmem>>, vector<16x32xf32>
      tpu.vector_store %arg15[%c0_38, %c0_39], %51 {strides = array<i32>} : memref<16x32xf32, #tpu.memory_space<vmem>>, vector<16x32xf32>,
    } else {
    }
    %c0 = arith.constant 0 : index
    %c0_1 = arith.constant 0 : index
    %3 = vector.load %arg14[%c0, %c0_1] : memref<16x32xf32, #tpu.memory_space<vmem>>, vector<16x32xf32>
    %c0_2 = arith.constant 0 : index
    %c0_3 = arith.constant 0 : index
    %4 = vector.load %arg8[%c0_2, %c0_3] : memref<32x512xf32, #tpu.memory_space<vmem>>, vector<32x512xf32>
    %cst = arith.constant dense<0.000000e+00> : vector<16x512xf32>
    %5 = tpu.matmul %3, %4, %cst {dimension_numbers = #tpu.dot_dimension_numbers<[1], [0], [0], [1], [0, 0, 1, 1], [], []>, precision = #tpu.contract_precision<fp32>} : vector<16x32xf32>, vector<32x512xf32>, vector<16x512xf32> -> vector<16x512xf32>
    %c0_4 = arith.constant 0 : index
    %c0_5 = arith.constant 0 : index
    %6 = vector.load %arg9[%c0_4, %c0_5] : memref<1x512xf32, #tpu.memory_space<vmem>>, vector<1x512xf32>
    %7 = vector.broadcast %6 : vector<1x512xf32> to vector<16x512xf32>
    %8 = arith.addf %5, %7 : vector<16x512xf32>
    %cst_6 = arith.constant 0.000000e+00 : f32
    %9 = vector.broadcast %cst_6 : f32 to vector<16x512xf32>
    %10 = arith.maximumf %8, %9 : vector<16x512xf32>
    %c0_7 = arith.constant 0 : index
    %c0_8 = arith.constant 0 : index
    %11 = vector.load %arg15[%c0_7, %c0_8] : memref<16x32xf32, #tpu.memory_space<vmem>>, vector<16x32xf32>
    %c0_9 = arith.constant 0 : index
    %c0_10 = arith.constant 0 : index
    %12 = vector.load %arg10[%c0_9, %c0_10] : memref<512x32xf32, #tpu.memory_space<vmem>>, vector<512x32xf32>
    %cst_11 = arith.constant dense<0.000000e+00> : vector<16x32xf32>
    %13 = tpu.matmul %10, %12, %cst_11 {dimension_numbers = #tpu.dot_dimension_numbers<[1], [0], [0], [1], [0, 0, 1, 1], [], []>, precision = #tpu.contract_precision<fp32>} : vector<16x512xf32>, vector<512x32xf32>, vector<16x32xf32> -> vector<16x32xf32>
    %14 = arith.addf %11, %13 : vector<16x32xf32>
    %c0_12 = arith.constant 0 : index
    %c0_13 = arith.constant 0 : index
    %15 = vector.load %arg15[%c0_12, %c0_13] : memref<16x32xf32, #tpu.memory_space<vmem>>, vector<16x32xf32>
    tpu.vector_store %arg15[%c0_12, %c0_13], %14 {strides = array<i32>} : memref<16x32xf32, #tpu.memory_space<vmem>>, vector<16x32xf32>,
    %c3_i32 = arith.constant 3 : i32
    %16 = arith.cmpi eq, %arg1, %c3_i32 : i32
    %17 = arith.extui %16 : i1 to i32
    %c0_i32_14 = arith.constant 0 : i32
    %18 = arith.cmpi ne, %17, %c0_i32_14 : i32
    scf.if %18 {
      %c0_15 = arith.constant 0 : index
      %c0_16 = arith.constant 0 : index
      %19 = vector.load %arg13[%c0_15, %c0_16] : memref<16x32xf32, #tpu.memory_space<vmem>>, vector<16x32xf32>
      %c0_17 = arith.constant 0 : index
      %c0_18 = arith.constant 0 : index
      %20 = vector.load %arg15[%c0_17, %c0_18] : memref<16x32xf32, #tpu.memory_space<vmem>>, vector<16x32xf32>
      %21 = arith.addf %19, %20 : vector<16x32xf32>
      %c0_19 = arith.constant 0 : index
      %c0_20 = arith.constant 0 : index
      %22 = vector.load %arg11[%c0_19, %c0_20] : memref<1x32xf32, #tpu.memory_space<vmem>>, vector<1x32xf32>
      %23 = vector.broadcast %22 : vector<1x32xf32> to vector<16x32xf32>
      %24 = arith.addf %21, %23 : vector<16x32xf32>
      %c0_21 = arith.constant 0 : index
      %c0_22 = arith.constant 0 : index
      %25 = vector.load %arg12[%c0_21, %c0_22] : memref<16x32xf32, #tpu.memory_space<vmem>>, vector<16x32xf32>
      tpu.vector_store %arg12[%c0_21, %c0_22], %24 {strides = array<i32>} : memref<16x32xf32, #tpu.memory_space<vmem>>, vector<16x32xf32>,
    } else {
    }
    return
  }
  func.func @transform_0(%arg0: i32, %arg1: i32) -> (i32, i32) {
    %c0_i32 = arith.constant 0 : i32
    %c0_i32_0 = arith.constant 0 : i32
    return %arg0, %c0_i32 : i32, i32
  }
  func.func @transform_1(%arg0: i32, %arg1: i32) -> (i32, i32) {
    %c0_i32 = arith.constant 0 : i32
    %c0_i32_0 = arith.constant 0 : i32
    return %arg0, %c0_i32 : i32, i32
  }
  func.func @transform_2(%arg0: i32, %arg1: i32) -> (i32, i32) {
    %c0_i32 = arith.constant 0 : i32
    %c0_i32_0 = arith.constant 0 : i32
    %c0_i32_1 = arith.constant 0 : i32
    return %c0_i32, %c0_i32_0 : i32, i32
  }
  func.func @transform_3(%arg0: i32, %arg1: i32) -> (i32, i32) {
    %c0_i32 = arith.constant 0 : i32
    %c0_i32_0 = arith.constant 0 : i32
    %c0_i32_1 = arith.constant 0 : i32
    return %c0_i32, %c0_i32_0 : i32, i32
  }
  func.func @transform_4(%arg0: i32, %arg1: i32) -> (i32, i32) {
    %c0_i32 = arith.constant 0 : i32
    %c0_i32_0 = arith.constant 0 : i32
    %c0_i32_1 = arith.constant 0 : i32
    return %c0_i32, %c0_i32_0 : i32, i32
  }
  func.func @transform_5(%arg0: i32, %arg1: i32) -> (i32, i32) {
    %c0_i32 = arith.constant 0 : i32
    %c0_i32_0 = arith.constant 0 : i32
    %c0_i32_1 = arith.constant 0 : i32
    return %c0_i32, %c0_i32_0 : i32, i32
  }
  func.func @transform_6(%arg0: i32, %arg1: i32) -> (i32, i32) {
    %c0_i32 = arith.constant 0 : i32
    %c0_i32_0 = arith.constant 0 : i32
    return %c0_i32, %arg1 : i32, i32
  }
  func.func @transform_7(%arg0: i32, %arg1: i32) -> (i32, i32) {
    %c0_i32 = arith.constant 0 : i32
    %c0_i32_0 = arith.constant 0 : i32
    return %c0_i32, %arg1 : i32, i32
  }
  func.func @transform_8(%arg0: i32, %arg1: i32) -> (i32, i32) {
    %c0_i32 = arith.constant 0 : i32
    %c0_i32_0 = arith.constant 0 : i32
    return %arg1, %c0_i32 : i32, i32
  }
  func.func @transform_9(%arg0: i32, %arg1: i32) -> (i32, i32) {
    %c0_i32 = arith.constant 0 : i32
    %c0_i32_0 = arith.constant 0 : i32
    %c0_i32_1 = arith.constant 0 : i32
    return %c0_i32, %c0_i32_0 : i32, i32
  }
  func.func @transform_10(%arg0: i32, %arg1: i32) -> (i32, i32) {
    %c0_i32 = arith.constant 0 : i32
    %c0_i32_0 = arith.constant 0 : i32
    return %arg0, %c0_i32 : i32, i32
  }
}

</mosaic_0001>

<bundles_post_ra>
// kernel: encoder_layer.3
= control target key start
LH: loop header
LB: loop body
LE: loop exit
PB: predicated region body
PF: predicated region fallthrough
CT: control target
= control target key end

     0   :  { %13 = vsyncpa [#allocation3], 0  ;;  %s1353_s0 = inlined_call_operand.hbm [shape: f32[16,32], index: 0, kind: input, shape index: {}]   ;;  %s1354_s1 = inlined_call_operand.hbm [shape: f32[1,32], index: 1, kind: input, shape index: {}]   ;;  %s1355_s2 = inlined_call_operand.hbm [shape: f32[1,32], index: 2, kind: input, shape index: {}]   ;;  %s1356_s3 = inlined_call_operand.hbm [shape: f32[32,96], index: 3, kind: input, shape index: {}]   ;;  %s1357_s4 = inlined_call_operand.hbm [shape: f32[1,96], index: 4, kind: input, shape index: {}]   ;;  %s1358_s5 = inlined_call_operand.hbm [shape: f32[16,32], index: 5, kind: output, shape index: {0}]   ;;  %s1359_s6 = inlined_call_operand.hbm [shape: f32[16,32], index: 6, kind: output, shape index: {1}]   ;;  %s1360_s7 = inlined_call_operand.hbm [shape: f32[16,32], index: 7, kind: output, shape index: {2}]  }
   0x1   :  { %14 = vsyncpa [#allocation6], 0 }
   0x2   :  { %15 = vsyncpa [#allocation9], 0 }
   0x3   :  { %16 = vsyncpa [#allocation4], 0 }
   0x4   :  { %17 = vsyncpa [#allocation13], 0  ;;  %s1136_s24 = smov [#allocation5]   ;;  %s950_s28 = scalar_lea.hbm %s1354_s1, 16 }
   0x5   :  { %s36_s25 = sshll.u32 %s1136_s24, 4  ;;  %p951_p0 = scmp.ne.s32.totalorder %s1354_s1, %s950_s28  ;;  %s37_s25 = int_to_ptr.vmem [resolvable:$true] %s36_s25 }
   0x6   :  { %p954_p1 = scmp.lt.u32.totalorder %s950_s28, %s1354_s1 }
   0x8   :  { %p956_p2 = pnand %p954_p1, %p951_p0 }
   0xa   :  { %959 = shalt.err (!%p956_p2)
}
   0xb   :  { %s960_s10 = scalar_lea.vmem %s37_s25, 16  ;;  %s964_s11 = scalar_lea.vmem %s37_s25, 32 }
   0xc   :  { %p961_p3 = scmp.ne.s32.totalorder %s37_s25, %s960_s10  ;;  %p965_p4 = scmp.lt.s32.totalorder %s37_s25, %s37_s25 }
   0xd   :  { %p966_p5 = scmp.lt.s32.totalorder %s964_s11, %s960_s10 }
   0xf   :  { %p967_p6 = por %p966_p5, %p965_p4 }
  0x11   :  { %p968_p7 = pnand %p967_p6, %p961_p3 }
  0x13   :  { %971 = shalt.err (!%p968_p7)
}
  0x14   :  { %39 = dma.hbm_to_vmem [thread:$0]  %s1354_s1, 16, %s37_s25, [#allocation6]  }
  0x15   :  { %s1137_s14 = smov [#allocation8]   ;;  %s1138_s16 = smov [#allocation2]  }
  0x16   :  { %s55_s15 = sshll.u32 %s1137_s14, 4  ;;  %s23_s17 = sshll.u32 %s1138_s16, 4  ;;  %s56_s15 = int_to_ptr.vmem [resolvable:$true] %s55_s15  ;;  %s24_s17 = int_to_ptr.vmem [resolvable:$true] %s23_s17 }
  0x17   :  { %s972_s20 = scalar_lea.hbm %s1356_s3, 512 }
  0x18   :  { %p973_p8 = scmp.ne.s32.totalorder %s1356_s3, %s972_s20  ;;  %p976_p9 = scmp.lt.u32.totalorder %s972_s20, %s1356_s3 }
  0x1a   :  { %p978_p10 = pnand %p976_p9, %p973_p8 }
  0x1c   :  { %981 = shalt.err (!%p978_p10)
}
  0x1d   :  { %s982_s1 = scalar_lea.vmem %s56_s15, 512  ;;  %p987_p12 = scmp.lt.s32.totalorder %s56_s15, %s56_s15 }
  0x1e   :  { %p983_p11 = scmp.ne.s32.totalorder %s56_s15, %s982_s1  ;;  %p988_p13 = scmp.lt.s32.totalorder %s982_s1, %s982_s1 }
  0x20   :  { %p989_p0 = por %p988_p13, %p987_p12 }
  0x22   :  { %p990_p1 = pnand %p989_p0, %p983_p11 }
  0x24   :  { %993 = shalt.err (!%p990_p1)
}
  0x25   :  { %s1139_s25 = smov 128   ;;  %s1140_s26 = smov 8  }
  0x26   :  { %61 = dma.hbm_to_vmem [thread:$0]  %s1356_s3, 512, %s56_s15, [#allocation9], %s1139_s25, %s1139_s25, %s1140_s26  }
  0x27   :  { %s994_s8 = scalar_lea.hbm %s1353_s0, 256 }
  0x28   :  { %p995_p2 = scmp.ne.s32.totalorder %s1353_s0, %s994_s8  ;;  %p998_p3 = scmp.lt.u32.totalorder %s994_s8, %s1353_s0 }
  0x2a   :  { %p1000_p4 = pnand %p998_p3, %p995_p2 }
  0x2c   :  { %1003 = shalt.err (!%p1000_p4)
}
  0x2d   :  { %s1004_s13 = scalar_lea.vmem %s24_s17, 256  ;;  %p1009_p6 = scmp.lt.s32.totalorder %s24_s17, %s24_s17 }
  0x2e   :  { %p1005_p5 = scmp.ne.s32.totalorder %s24_s17, %s1004_s13  ;;  %p1010_p7 = scmp.lt.s32.totalorder %s1004_s13, %s1004_s13 }
  0x30   :  { %p1011_p8 = por %p1010_p7, %p1009_p6 }
  0x32   :  { %p1012_p9 = pnand %p1011_p8, %p1005_p5 }
  0x34   :  { %1015 = shalt.err (!%p1012_p9)
}
  0x35   :  { %29 = dma.hbm_to_vmem [thread:$0]  %s1353_s0, 256, %s24_s17, [#allocation3], %s1139_s25, %s1139_s25, %s1140_s26  }
  0x36   :  { %s1141_s15 = smov [#allocation7]   ;;  %s1142_s18 = smov [#allocation10]  }
  0x37   :  { %s46_s16 = sshll.u32 %s1141_s15, 4  ;;  %s68_s19 = sshll.u32 %s1142_s18, 4  ;;  %s47_s16 = int_to_ptr.vmem [resolvable:$true] %s46_s16  ;;  %s69_s19 = int_to_ptr.vmem [resolvable:$true] %s68_s19 }
  0x38   :  { %s1016_s22 = scalar_lea.hbm %s1355_s2, 16 }
  0x39   :  { %p1017_p10 = scmp.ne.s32.totalorder %s1355_s2, %s1016_s22  ;;  %p1020_p11 = scmp.lt.u32.totalorder %s1016_s22, %s1355_s2 }
  0x3b   :  { %p1022_p12 = pnand %p1020_p11, %p1017_p10 }
  0x3d   :  { %1025 = shalt.err (!%p1022_p12)
}
  0x3e   :  { %s1026_s0 = scalar_lea.vmem %s47_s16, 16  ;;  %s1030_s17 = scalar_lea.vmem %s47_s16, 32 }
  0x3f   :  { %p1027_p13 = scmp.ne.s32.totalorder %s47_s16, %s1026_s0  ;;  %p1031_p0 = scmp.lt.s32.totalorder %s47_s16, %s47_s16 }
  0x40   :  { %p1032_p1 = scmp.lt.s32.totalorder %s1030_s17, %s1026_s0 }
  0x42   :  { %p1033_p2 = por %p1032_p1, %p1031_p0 }
  0x44   :  { %p1034_p3 = pnand %p1033_p2, %p1027_p13 }
  0x46   :  { %1037 = shalt.err (!%p1034_p3)
}
  0x47   :  { %49 = dma.hbm_to_vmem [thread:$0]  %s1355_s2, 16, %s47_s16, [#allocation6]  }
  0x48   :  { %s1038_s9 = scalar_lea.hbm %s1357_s4, 16 }
  0x49   :  { %p1039_p4 = scmp.ne.s32.totalorder %s1357_s4, %s1038_s9  ;;  %p1042_p5 = scmp.lt.u32.totalorder %s1038_s9, %s1357_s4 }
  0x4b   :  { %p1044_p6 = pnand %p1042_p5, %p1039_p4 }
  0x4d   :  { %1047 = shalt.err (!%p1044_p6)
}
  0x4e   :  { %s1048_s3 = scalar_lea.vmem %s69_s19, 16  ;;  %s1052_s14 = scalar_lea.vmem %s69_s19, 32 }
  0x4f   :  { %p1049_p7 = scmp.ne.s32.totalorder %s69_s19, %s1048_s3  ;;  %p1053_p8 = scmp.lt.s32.totalorder %s69_s19, %s69_s19 }
  0x50   :  { %p1054_p9 = scmp.lt.s32.totalorder %s1052_s14, %s1048_s3 }
  0x52   :  { %p1055_p10 = por %p1054_p9, %p1053_p8 }
  0x54   :  { %p1056_p11 = pnand %p1055_p10, %p1049_p7 }
  0x56   :  { %1059 = shalt.err (!%p1056_p11)
}
  0x57   :  { %71 = dma.hbm_to_vmem [thread:$0]  %s1357_s4, 16, %s69_s19, [#allocation9]  }
  0x58   :  { %1126 = dma.done.wait [#allocation3], 256  }
  0x59   :  { %1127 = vsyncadd [#allocation3], 4294967040 }
  0x5a   :  { %1128 = dma.done.wait [#allocation6], 32  }
  0x5b   :  { %1129 = vsyncadd [#allocation6], 4294967264 }
  0x5c   :  { %1130 = dma.done.wait [#allocation9], 528  }
  0x5d   :  { %1131 = vsyncadd [#allocation9], 4294966768  ;;  %vm91_vm0 = vcmask 261120   ;;  %v87_v0 = vld [vmem:[#allocation2] sm:$0xff]  ;;  %v88_v1 = vld [vmem:[#allocation2 + $0x8] sm:$0xff]  ;;  %s1143_s4 = smov [#allocation11]  }
  0x5e   :  { %v92_v2 = vsel %vm91_vm0, %v87_v0, 0.0  ;;  %v95_v3 = vsel %vm91_vm0, %v88_v1, 0.0  ;;  %v150_v14 = vld [vmem:[#allocation8] sm:$0xff]  ;;  %v151_v15 = vld [vmem:[#allocation8 + $0x8] sm:$0xff]  ;;  %v152_v16 = vld [vmem:[#allocation8 + $0x10] sm:$0xff]  ;;  %s720_s16 = sshll.u32 %s1143_s4, 4  ;;  %s721_s16 = int_to_ptr.vmem [resolvable:$true] %s720_s16 }
  0x5f   :  { %93 = vadd.xlane.f32.xlu0 %v92_v2  ;;  %v168_v17 = vand.u32 4294901760, %v150_v14  ;;  %v171_v18 = vand.u32 4294901760, %v151_v15  ;;  %v153_v19 = vld [vmem:[#allocation8 + $0x18] sm:$0xff]  ;;  %v174_v20 = vand.u32 4294901760, %v152_v16  ;;  %s1144_s18 = smov 96   ;;  %s1060_s19 = scalar_lea.vmem %s721_s16, 256 }
  0x60   :  { %v177_v21 = vand.u32 4294901760, %v153_v19  ;;  %v765_v62 = vld [vmem:[#allocation5] ss:$0 sm:$0xff]  ;;  %p1061_p12 = scmp.ne.s32.totalorder %s721_s16, %s1060_s19  ;;  %p1065_p13 = scmp.lt.s32.totalorder %s721_s16, %s721_s16 }
  0x61   :  { %v1266_v22 = vpack.c.bf16 %v171_v18, %v168_v17  ;;  %v258_v24 = vsub.f32 %v150_v14, %v168_v17  ;;  %v265_v25 = vsub.f32 %v151_v15, %v171_v18  ;;  %v272_v31 = vsub.f32 %v152_v16, %v174_v20  ;;  %p1066_p0 = scmp.lt.s32.totalorder %s1060_s19, %s1060_s19 }
  0x62   :  { %v1268_v23 = vpack.c.bf16 %v177_v21, %v174_v20  ;;  %v279_v32 = vsub.f32 %v153_v19, %v177_v21 }
  0x63   :  { %96 = vadd.xlane.f32.xlu0 %v95_v3  ;;  %895 = vmatprep.subr.bf16.mxu0 %v1266_v22  ;;  %v259_v26 = vand.u32 4294901760, %v258_v24  ;;  %v266_v27 = vand.u32 4294901760, %v265_v25  ;;  %v273_v35 = vand.u32 4294901760, %v272_v31  ;;  %v1283_v44 = vpack.c.bf16 %v265_v25, %v258_v24  ;;  %p1067_p1 = por %p1066_p0, %p1065_p13 }
  0x64   :  { %871 = vmatprep.subr.bf16.mxu1 %v1266_v22  ;;  %897 = vmatpush3.bf16.msra.mxu0 %v1266_v22  ;;  %v280_v36 = vand.u32 4294901760, %v279_v32  ;;  %v1285_v45 = vpack.c.bf16 %v279_v32, %v272_v31 }
  0x65   :  { %873 = vmatpush3.bf16.msra.mxu1 %v1266_v22  ;;  %899 = vmatprep.subr.bf16.mxu0 %v1268_v23  ;;  %v1278_v28 = vpack.c.bf16 %v266_v27, %v259_v26  ;;  %v260_v29 = vsub.f32 %v258_v24, %v259_v26  ;;  %v267_v30 = vsub.f32 %v265_v25, %v266_v27  ;;  %p1068_p2 = pnand %p1067_p1, %p1061_p12 }
  0x66   :  { %875 = vmatprep.subr.bf16.mxu1 %v1268_v23  ;;  %v1281_v38 = vpack.c.bf16 %v280_v36, %v273_v35  ;;  %v274_v39 = vsub.f32 %v272_v31, %v273_v35  ;;  %v281_v40 = vsub.f32 %v279_v32, %v280_v36 }
  0x67   :  { %v261_v33 = vand.u32 4294901760, %v260_v29  ;;  %v268_v34 = vand.u32 4294901760, %v267_v30 }
  0x68   :  { %901 = vmatpush3.bf16.msra.mxu0 %v1268_v23  ;;  %v275_v41 = vand.u32 4294901760, %v274_v39  ;;  %v282_v42 = vand.u32 4294901760, %v281_v40 }
  0x69   :  { %877 = vmatpush3.bf16.msra.mxu1 %v1268_v23  ;;  %903 = vmatprep.subr.bf16.mxu0 %v1278_v28  ;;  %v878_v37 = vpack.c.bf16 %v268_v34, %v261_v33 }
  0x6a   :  { %v882_v43 = vpack.c.bf16 %v282_v42, %v275_v41 }
  0x6b   :  { %879 = vmatprep.subr.bf16.mxu1 %v878_v37 }
  0xec   :  { %v94_v4 = vpop.xlane.xlu0 %93 }
  0xed   :  { %v99_v5 = vmul.f32 0.03125, %v94_v4 }
  0xef   :  { %v1256_v6 = vsub.f32 %v87_v0, %v99_v5 }
  0xf0   :  { %v97_v7 = vpop.xlane.xlu0 %96 }
  0xf1   :  { %v100_v8 = vmul.f32 0.03125, %v97_v7  ;;  %v103_v9 = vmul.f32 %v1256_v6, %v1256_v6  ;;  %v120_v63 = vmul.f32 %v765_v62, %v1256_v6 }
  0xf3   :  { %v1260_v10 = vsub.f32 %v88_v1, %v100_v8  ;;  %v105_v11 = vsel %vm91_vm0, %v103_v9, 0.0  ;;  %v766_v1 = vld [vmem:[#allocation7] ss:$0 sm:$0xff] }
  0xf4   :  { %106 = vadd.xlane.f32.xlu1 %v105_v11 }
  0xf5   :  { %v104_v12 = vmul.f32 %v1260_v10, %v1260_v10  ;;  %v121_v3 = vmul.f32 %v765_v62, %v1260_v10 }
  0xf7   :  { %v108_v13 = vsel %vm91_vm0, %v104_v12, 0.0 }
  0xf8   :  { %109 = vadd.xlane.f32.xlu1 %v108_v13 }
 0x181   :  { %v107_v46 = vpop.xlane.xlu1 %106 }
 0x182   :  { %v112_v47 = vmul.f32 0.032258064, %v107_v46 }
 0x184   :  { %942 = vrsqrt.f32 %v112_v47  ;;  %vm124_vm1 = vcmp.eq.f32.partialorder %v112_v47, inf  ;;  %v127_v52 = vand.u32 2147483648, %v112_v47  ;;  %vm126_vm2 = vcmp.eq.f32.partialorder %v112_v47, 0.0 }
 0x185   :  { %v110_v48 = vpop.xlane.xlu1 %109 }
 0x186   :  { %v113_v49 = vmul.f32 0.032258064, %v110_v48 }
 0x188   :  { %944 = vrsqrt.f32 %v113_v49  ;;  %vm131_vm3 = vcmp.eq.f32.partialorder %v113_v49, inf  ;;  %v134_v58 = vand.u32 2147483648, %v113_v49  ;;  %vm133_vm4 = vcmp.eq.f32.partialorder %v113_v49, 0.0 }
 0x18e   :  { %v943_v50 = vpop.eup %942 }
 0x18f   :  { %v123_v51 = vmul.f32 %v943_v50, %v112_v47 }
 0x191   :  { %v125_v53 = vsel %vm124_vm1, %v112_v47, %v123_v51 }
 0x192   :  { %v945_v54 = vpop.eup %944  ;;  %v128_v55 = vsel %vm126_vm2, %v127_v52, %v125_v53 }
 0x193   :  { %v136_v56 = vadd.f32 1e-06, %v128_v55  ;;  %v130_v57 = vmul.f32 %v945_v54, %v113_v49 }
 0x195   :  { %946 = vrcp.f32 %v136_v56  ;;  %v132_v59 = vsel %vm131_vm3, %v113_v49, %v130_v57 }
 0x196   :  { %v135_v60 = vsel %vm133_vm4, %v134_v58, %v132_v59 }
 0x197   :  { %v137_v61 = vadd.f32 1e-06, %v135_v60 }
 0x199   :  { %948 = vrcp.f32 %v137_v61 }
 0x19f   :  { %v947_v0 = vpop.eup %946 }
 0x1a0   :  { %v139_v2 = vmul.f32 %v947_v0, %v120_v63 }
 0x1a2   :  { %v148_v4 = vadd.f32 %v766_v1, %v139_v2 }
 0x1a3   :  { %v949_v5 = vpop.eup %948 }
 0x1a4   :  { %v141_v7 = vmul.f32 %v949_v5, %v121_v3  ;;  %v162_v8 = vsel %vm91_vm0, %v148_v4, 0 }
 0x1a5   :  { %v236_v9 = vand.u32 4294901760, %v162_v8 }
 0x1a6   :  { %v149_v11 = vadd.f32 %v766_v1, %v141_v7 }
 0x1a7   :  { %v237_v12 = vsub.f32 %v162_v8, %v236_v9 }
 0x1a8   :  { %v165_v13 = vsel %vm91_vm0, %v149_v11, 0 }
 0x1a9   :  { %v238_v14 = vand.u32 4294901760, %v237_v12  ;;  %v246_v15 = vand.u32 4294901760, %v165_v13 }
 0x1ab   :  { %845 = vmatprep.mubr.f32.mxu0 %v238_v14  ;;  %v239_v16 = vsub.f32 %v237_v12, %v238_v14  ;;  %v247_v6 = vsub.f32 %v165_v13, %v246_v15 }
 0x1ad   :  { %v240_v17 = vand.u32 4294901760, %v239_v16  ;;  %v248_v18 = vand.u32 4294901760, %v247_v6 }
 0x1af   :  { %812 = vmatprep.mubr.f32.mxu1 %v240_v17  ;;  %846 = vmatmul.mubr.f32.vlgmr.msra.gmra.mrb[0].mxu0 %v248_v18  ;;  %v249_v10 = vsub.f32 %v247_v6, %v248_v18 }
 0x1b0   :  { %905 = vmatpush3.bf16.msra.mxu0 %v1278_v28  ;;  %856 = vmatprep.mubr.f32.mxu0 %v236_v9 }
 0x1b1   :  { %v250_v19 = vand.u32 4294901760, %v249_v10  ;;  %907 = vmatprep.subr.bf16.mxu0 %v1281_v38 }
 0x1b3   :  { %813 = vmatmul.mubr.f32.vlgmr.msra.gmra.mrb[0].mxu1 %v250_v19 }
 0x1b4   :  { %881 = vmatpush3.bf16.msra.mxu1 %v878_v37  ;;  %823 = vmatprep.mubr.f32.mxu1 %v236_v9 }
 0x1b5   :  { %909 = vmatpush3.bf16.msra.mxu0 %v1281_v38  ;;  %883 = vmatprep.subr.bf16.mxu1 %v882_v43 }
 0x1b6   :  { %911 = vmatprep.subr.bf16.mxu0 %v1266_v22 }
 0x1b8   :  { %885 = vmatpush3.bf16.msra.mxu1 %v882_v43  ;;  %857 = vmatmul.mubr.f32.vlgmr.msra.gmra.mrb[0].mxu0 %v246_v15 }
 0x1b9   :  { %913 = vmatpush3.bf16.msra.mxu0 %v1266_v22  ;;  %867 = vmatprep.mubr.f32.mxu0 %v236_v9  ;;  %v767_v22 = vld [vmem:[#allocation10] ss:$0 sm:$0xff] }
 0x1ba   :  { %887 = vmatprep.subr.bf16.mxu1 %v1283_v44  ;;  %915 = vmatprep.subr.bf16.mxu0 %v1268_v23 }
 0x1bb   :  { %824 = vmatmul.mubr.f32.vlgmr.msra.gmra.mrb[0].mxu1 %v246_v15 }
 0x1bc   :  { %889 = vmatpush3.bf16.msra.mxu1 %v1283_v44  ;;  %834 = vmatprep.mubr.f32.mxu1 %v237_v12 }
 0x1bd   :  { %917 = vmatpush3.bf16.msra.mxu0 %v1268_v23  ;;  %891 = vmatprep.subr.bf16.mxu1 %v1285_v45 }
 0x1c0   :  { %893 = vmatpush3.bf16.msra.mxu1 %v1285_v45  ;;  %868 = vmatmul.mubr.f32.vlgmr.msra.gmra.mrb[0].mxu0 %v246_v15 }
 0x1c3   :  { %835 = vmatmul.mubr.f32.vlgmr.msra.gmra.mrb[0].mxu1 %v247_v6 }
 0x293   :  { %v869_v20 = vpop.f32.mrb[0].mxu0 }
 0x294   :  { %v685_v21 = vpop.f32.mrb[1].mxu0 }
 0x296   :  { %v836_v24 = vpop.f32.mrb[0].mxu1 }
 0x297   :  { %v918_v25 = vadd.f32 %v836_v24, %v767_v22  ;;  %v429_v26 = vpop.f32.mrb[1].mxu1 }
 0x298   :  { %v920_v27 = vadd.f32 %v767_v22, %v429_v26 }
 0x299   :  { %v919_v28 = vadd.f32 %v918_v25, %v869_v20 }
 0x29a   :  { %v921_v29 = vadd.f32 %v920_v27, %v685_v21 }
 0x29b   :  { %696 = vst.msk [vmem:[#allocation11 + $0x8] sm:$0xff] %vm91_vm0, %v919_v28  ;;  %701 = vrot.lane.b32.xlu1 %v919_v28, %s1144_s18 }
 0x29c   :  { %695 = vst.msk [vmem:[#allocation11] sm:$0xff] %vm91_vm0, %v921_v29  ;;  %699 = vrot.lane.b32.xlu0 %v921_v29, %s1144_s18 }
 0x29d   :  { %1071 = shalt.err (!%p1068_p2)
}
 0x29e   :  { %s1072_s22 = scalar_lea.hbm %s1358_s5, 256 }
 0x29f   :  { %p1073_p3 = scmp.ne.s32.totalorder %s1358_s5, %s1072_s22  ;;  %p1076_p4 = scmp.lt.u32.totalorder %s1072_s22, %s1358_s5 }
 0x2a1   :  { %p1078_p5 = pnand %p1076_p4, %p1073_p3 }
 0x2a3   :  { %1081 = shalt.err (!%p1078_p5)
}
 0x2a4   :  { %726 = dma.vmem_to_hbm [thread:$0]  %s721_s16, 256, %s1358_s5, [#allocation4], %s1139_s25, %s1139_s25, %s1140_s26  }
 0x2a5   :  { %s1145_s28 = smov 64   ;;  %s1146_s29 = smov [#allocation12]  }
 0x2a6   :  { %707 = vrot.lane.b32.xlu1 %v921_v29, %s1145_s28  ;;  %s732_s30 = sshll.u32 %s1146_s29, 4  ;;  %s733_s30 = int_to_ptr.vmem [resolvable:$true] %s732_s30 }
 0x2a7   :  { %s1082_s8 = scalar_lea.vmem %s733_s30, 256  ;;  %p1087_p7 = scmp.lt.s32.totalorder %s733_s30, %s733_s30 }
 0x2a8   :  { %p1083_p6 = scmp.ne.s32.totalorder %s733_s30, %s1082_s8  ;;  %p1088_p8 = scmp.lt.s32.totalorder %s1082_s8, %s1082_s8 }
 0x2aa   :  { %709 = vrot.lane.b32.xlu1 %v919_v28, %s1145_s28  ;;  %p1089_p9 = por %p1088_p8, %p1087_p7 }
 0x2ac   :  { %p1090_p10 = pnand %p1089_p9, %p1083_p6 }
 0x30d   :  { %v702_v23 = vpop.permute.xlu1 %701 }
 0x30e   :  { %706 = vst.msk [vmem:[#allocation12 + $0x8] sm:$0xff] %vm91_vm0, %v702_v23  ;;  %v700_v30 = vpop.permute.xlu0 %699 }
 0x30f   :  { %705 = vst.msk [vmem:[#allocation12] sm:$0xff] %vm91_vm0, %v700_v30 }
 0x310   :  { %1093 = shalt.err (!%p1090_p10)
}
 0x311   :  { %s1094_s10 = scalar_lea.hbm %s1359_s6, 256 }
 0x312   :  { %p1095_p11 = scmp.ne.s32.totalorder %s1359_s6, %s1094_s10  ;;  %p1098_p12 = scmp.lt.u32.totalorder %s1094_s10, %s1359_s6 }
 0x314   :  { %p1100_p13 = pnand %p1098_p12, %p1095_p11 }
 0x316   :  { %1103 = shalt.err (!%p1100_p13)
}
 0x317   :  { %738 = dma.vmem_to_hbm [thread:$0]  %s733_s30, 256, %s1359_s6, [#allocation13], %s1139_s25, %s1139_s25, %s1140_s26  }
 0x318   :  { %v708_v31 = vpop.permute.xlu1 %707  ;;  %s1147_s15 = smov [#allocation14]  }
 0x319   :  { %s744_s4 = sshll.u32 %s1147_s15, 4  ;;  %713 = vst.msk [vmem:[#allocation14] sm:$0xff] %vm91_vm0, %v708_v31  ;;  %s745_s4 = int_to_ptr.vmem [resolvable:$true] %s744_s4 }
 0x31a   :  { %s1104_s16 = scalar_lea.vmem %s745_s4, 256  ;;  %p1109_p1 = scmp.lt.s32.totalorder %s745_s4, %s745_s4 }
 0x31b   :  { %p1105_p0 = scmp.ne.s32.totalorder %s745_s4, %s1104_s16  ;;  %p1110_p2 = scmp.lt.s32.totalorder %s1104_s16, %s1104_s16 }
 0x31c   :  { %v710_v32 = vpop.permute.xlu1 %709 }
 0x31d   :  { %714 = vst.msk [vmem:[#allocation14 + $0x8] sm:$0xff] %vm91_vm0, %v710_v32  ;;  %p1111_p3 = por %p1110_p2, %p1109_p1 }
 0x31f   :  { %p1112_p4 = pnand %p1111_p3, %p1105_p0 }
 0x321   :  { %1115 = shalt.err (!%p1112_p4)
}
 0x322   :  { %s1116_s6 = scalar_lea.hbm %s1360_s7, 256 }
 0x323   :  { %p1117_p5 = scmp.ne.s32.totalorder %s1360_s7, %s1116_s6  ;;  %p1120_p6 = scmp.lt.u32.totalorder %s1116_s6, %s1360_s7 }
 0x325   :  { %p1122_p7 = pnand %p1120_p6, %p1117_p5 }
 0x327   :  { %1125 = shalt.err (!%p1122_p7)
}
 0x328   :  { %750 = dma.vmem_to_hbm [thread:$0]  %s745_s4, 256, %s1360_s7, [#allocation13], %s1139_s25, %s1139_s25, %s1140_s26  }
 0x329   :  { %1132 = dma.done.wait [#allocation4], 256  }
 0x32a   :  { %1133 = vsyncadd [#allocation4], 4294967040 }
 0x32b   :  { %1134 = dma.done.wait [#allocation13], 512  }
 0x32c   :  { %1135 = vsyncadd [#allocation13], 4294966784 }
 0x32d   :  { %760 = vsyncpa [#allocation3], 1 }
 0x32e   :  { %761 = vsyncpa [#allocation6], 1 }
 0x32f   :  { %762 = vsyncpa [#allocation9], 1 }
 0x330   :  { %763 = vsyncpa [#allocation4], 1 }
 0x331   :  { %764 = vsyncpa [#allocation13], 1 }

// kernel: encoder_layer.5
= control target key start
LH: loop header
LB: loop body
LE: loop exit
PB: predicated region body
PF: predicated region fallthrough
CT: control target
= control target key end

     0   :  { %s8503_s0 = inlined_call_operand.hbm [shape: f32[16,32], index: 0, kind: input, shape index: {}]   ;;  %s8504_s1 = inlined_call_operand.hbm [shape: f32[16,32], index: 1, kind: input, shape index: {}]   ;;  %s8505_s2 = inlined_call_operand.hbm [shape: f32[32,32], index: 2, kind: input, shape index: {}]   ;;  %s8506_s3 = inlined_call_operand.hbm [shape: f32[1,32], index: 3, kind: input, shape index: {}]   ;;  %s8507_s4 = inlined_call_operand.hbm [shape: f32[1,32], index: 4, kind: input, shape index: {}]   ;;  %s8508_s5 = inlined_call_operand.hbm [shape: f32[1,32], index: 5, kind: input, shape index: {}]   ;;  %s8509_s6 = inlined_call_operand.hbm [shape: f32[32,2048], index: 6, kind: input, shape index: {}]   ;;  %s8510_s7 = inlined_call_operand.hbm [shape: f32[1,2048], index: 7, kind: input, shape index: {}]   ;;  %s8511_s8 = inlined_call_operand.hbm [shape: f32[2048,32], index: 8, kind: input, shape index: {}]   ;;  %s8512_s9 = inlined_call_operand.hbm [shape: f32[1,32], index: 9, kind: input, shape index: {}]   ;;  %s8513_s10 = inlined_call_operand.hbm [shape: f32[16,32], index: 10, kind: output, shape index: {}]  }
   0x1   :  { %8667 = sst [smem:[#allocation82_spill]] %s8503_s0 }
   0x2   :  { %8668 = sst [smem:[#allocation83_spill]] %s8504_s1 }
   0x3   :  { %8669 = sst [smem:[#allocation84_spill]] %s8509_s6 }
   0x4   :  { %8670 = sst [smem:[#allocation85_spill]] %s8513_s10 }
   0x5   :  { %15 = vsyncpa [#allocation6], 0 }
   0x6   :  { %16 = vsyncpa [#allocation9], 0 }
   0x7   :  { %17 = vsyncpa [#allocation12], 0 }
   0x8   :  { %18 = vsyncpa [#allocation15], 0 }
   0x9   :  { %19 = vsyncpa [#allocation7], 0  ;;  %s6351_s13 = smov 0   ;;  %s6353_s14 = smov 0  }
   0xa   :  { %s6355_s15 = smov 0   ;;  %s6357_s16 = smov 0  }
   0xb   :  { %s6359_s17 = smov 0   ;;  %s6361_s18 = smov 0  }
   0xc LB: > { %8671 = sst [smem:[#allocation28_spill]] %s6258_s14  ;;  %s6382_s19 = sadd.s32 4294967295, %s6274_s18   ;;  %s6274_s18 = sphi %s6361_s18, %s25_s18   ;;  %s6270_s17 = sphi %s6359_s17, %s9018_s17   ;;  %s6266_s16 = sphi %s6357_s16, %s9017_s16   ;;  %s6262_s15 = sphi %s6355_s15, %s9015_s15   ;;  %s6258_s14 = sphi %s6353_s14, %s9014_s14   ;;  %s6254_s13 = sphi %s6351_s13, %s9013_s13  }
   0xd   : > { %8672 = sst [smem:[#allocation29_spill]] %s6262_s15  ;;  %p4540_p0 = scmp.ge.s32.totalorder %s6274_s18, 1 }
   0xe   : > { %8673 = sst [smem:[#allocation30_spill]] %s6266_s16  ;;  %p8514_p1 = scmp.eq.s32.totalorder %s6382_s19, 0 }
   0xf   : > { %8674 = sst [smem:[#allocation31_spill]] %s6274_s18  ;;  %p303_p2 = scmp.lt.s32.totalorder %s6274_s18, 5 }
  0x10   : > { %s6276_s21 = smov [#allocation5]   ;;  %s6277_s24 = smov [#allocation8]  }
  0x11   : > { %p6387_p3 = pnand %p4540_p0, %p303_p2  ;;  %s318_s22 = sshll.u32 %s6276_s21, 4  ;;  %s319_s22 = int_to_ptr.vmem [resolvable:$true] %s318_s22 }
  0x12   : > { %s334_s25 = sshll.u32 %s6277_s24, 4  ;;  %s8678_s0 = sld [smem:[#allocation82_spill]]  ;;  %s6399_s25 = int_to_ptr.vmem [resolvable:$true] %s334_s25 }
  0x13   : > { %s8675_s20 = scalar_select %p6387_p3, 1, 0 }
  0x14   : > { %p5766_p4 = pneg %p6387_p3 }
  0x15   : > { %8676 = sst [smem:[#allocation32_spill]] %s8675_s20 }
  0x16   : > { %p6395_p5 = pnand %p5766_p4, %p8514_p1 }
  0x18   : > { %s8677_s23 = scalar_select %p6395_p5, 1, 0 }
  0x19   : > { %s5888_s28 = scalar_lea.hbm %s8678_s0, 256  ;;  %p6409_p7 = pneg %p6395_p5 }
  0x1a   : > { %p5889_p6 = scmp.ne.s32.totalorder %s8678_s0, %s5888_s28  ;;  %p5895_p10 = scmp.lt.u32.totalorder %s5888_s28, %s8678_s0 }
  0x1b   : > { %s8679_s11 = scalar_select %p6409_p7, 1, 0 }
  0x1c   : > { %p5891_p8 = pnand %p6409_p7, %p5889_p6 }
  0x1e   : > { %p5892_p9 = pneg %p5891_p8 }
  0x20   : > { %p5897_p11 = pnand %p5895_p10, %p5892_p9 }
  0x22   : > { %5900 = shalt.err (!%p5897_p11)
}
  0x23   : > { %s5901_s24 = scalar_lea.vmem %s319_s22, 256  ;;  %p5909_p2 = scmp.lt.s32.totalorder %s319_s22, %s319_s22 }
  0x24   : > { %p5902_p12 = scmp.ne.s32.totalorder %s319_s22, %s5901_s24  ;;  %p5910_p4 = scmp.lt.s32.totalorder %s5901_s24, %s5901_s24 }
  0x26   : > { %p5904_p13 = pnand %p5902_p12, %p6409_p7  ;;  %p5911_p1 = por %p5910_p4, %p5909_p2 }
  0x28   : > { %p5905_p0 = pneg %p5904_p13 }
  0x2a   : > { %p5912_p3 = pnand %p5911_p1, %p5905_p0 }
  0x2c   : > { %5915 = shalt.err (!%p5912_p3)
}
  0x2d   : > { %s8518_s26 = smov 128   ;;  %s8520_s27 = smov 8  }
  0x2e   : > { %5769 = dma.hbm_to_vmem [thread:$0]  (!%p6395_p5), %s8678_s0, 256, %s319_s22, [#allocation6], %s8518_s26, %s8518_s26, %s8520_s27  }
  0x2f   : > { %s8680_s1 = sld [smem:[#allocation83_spill]] }
  0x35   : > { %s5916_s21 = scalar_lea.hbm %s8680_s1, 256 }
  0x36   : > { %p5917_p1 = scmp.ne.s32.totalorder %s8680_s1, %s5916_s21  ;;  %p5923_p8 = scmp.lt.u32.totalorder %s5916_s21, %s8680_s1 }
  0x38   : > { %p5919_p3 = pnand %p5917_p1, %p6409_p7 }
  0x3a   : > { %p5920_p6 = pneg %p5919_p3 }
  0x3c   : > { %p5925_p9 = pnand %p5923_p8, %p5920_p6 }
  0x3e   : > { %5928 = shalt.err (!%p5925_p9)
}
  0x3f   : > { %s5929_s22 = scalar_lea.vmem %s6399_s25, 256  ;;  %p5937_p13 = scmp.lt.s32.totalorder %s6399_s25, %s6399_s25 }
  0x40   : > { %p5930_p10 = scmp.ne.s32.totalorder %s6399_s25, %s5929_s22  ;;  %p5938_p0 = scmp.lt.s32.totalorder %s5929_s22, %s5929_s22 }
  0x42   : > { %p5932_p11 = pnand %p5930_p10, %p6409_p7  ;;  %p5939_p2 = por %p5938_p0, %p5937_p13 }
  0x44   : > { %p5933_p12 = pneg %p5932_p11 }
  0x46   : > { %p5940_p4 = pnand %p5939_p2, %p5933_p12 }
  0x48   : > { %5943 = shalt.err (!%p5940_p4)
}
  0x49   : > { %5772 = dma.hbm_to_vmem [thread:$0]  (!%p6395_p5), %s8680_s1, 256, %s6399_s25, [#allocation9], %s8518_s26, %s8518_s26, %s8520_s27  }
  0x4a   : > { %s34_s20 = sadd.s32 1, %s6270_s17  ;;  %s180_s28 = sadd.s32 1, %s6262_s15 }
  0x4b   : > { %p35_p1 = scmp.ge.s32.totalorder %s34_s20, 4  ;;  %p187_p3 = scmp.ne.s32.totalorder %s6262_s15, %s6258_s14 }
  0x4c   : > { %p188_p6 = scmp.eq.s32.totalorder %s6274_s18, 0  ;;  %p193_p8 = scmp.ne.s32.totalorder %s6258_s14, %s6254_s13 }
  0x4d   : > { %s9020_s20 = smov (%p35_p1, %s34_s20), 0  ;;  %p8683_p10 = scmp.eq.s32.totalorder %s6382_s19, 0 }
  0x4e   : > { %8681 = sst [smem:[#allocation33_spill]] %s9020_s20  ;;  %p6463_p9 = por %p188_p6, %p187_p3 }
  0x4f   : > { %p6469_p11 = por %p8683_p10, %p193_p8  ;;  %s177_s25 = ssub.s32 %s6270_s17, %s9020_s20 }
  0x50   : > { %p5805_p12 = scmp.lt.s32.totalorder %s6274_s18, 4  ;;  %p178_p13 = scmp.eq.s32.totalorder %s177_s25, 0 }
  0x51   : > { %s8684_s30 = scalar_select %p6469_p11, 1, 0 }
  0x52   : > { %s405_s12 = sand.u32 1, %s6274_s18   ;;  %s6478_s21 = sand.u32 1, %s6262_s15  }
  0x53   : > { %8685 = sst [smem:[#allocation34_spill]] %s8684_s30  ;;  %s4549_s24 = sshll.u32 %s6478_s21, 7 }
  0x54   : > { %s6481_s13 = scalar_select %p178_p13, %s6262_s15, %s180_s28  }
  0x55   : > { %s4579_s22 = sshll.u32 %s6270_s17, 9  ;;  %s8687_s6 = sld [smem:[#allocation84_spill]] }
  0x56   : > { %8686 = sst [smem:[#allocation35_spill]] %s6481_s13  ;;  %s409_s27 = scalar_lea.vmem [#allocation16], %s4549_s24 }
  0x57   : > { %s416_s0 = sshll.u32 %s409_s27, 4  ;;  %p6492_p0 = pnand %p5805_p12, %p6463_p9  ;;  %s6496_s0 = int_to_ptr.vmem [resolvable:$true] %s416_s0 }
  0x58   : > { %s6498_s28 = scalar_lea.sflag [#allocation6], %s405_s12 }
  0x59   : > { %s8688_s25 = scalar_select %p6492_p0, 1, 0 }
  0x5a   : > { %p6504_p4 = pneg %p6492_p0 }
  0x5b   : > { %s6488_s26 = scalar_lea.hbm %s8687_s6, %s4579_s22  ;;  %s5949_s24 = scalar_lea.hbm %s8687_s6, 8192 }
  0x5c   : > { %s5944_s1 = scalar_lea.hbm %s6488_s26, 2048  ;;  %p5950_p6 = scmp.lt.u32.totalorder %s6488_s26, %s8687_s6 }
  0x5d   : > { %p5945_p2 = scmp.ne.s32.totalorder %s6488_s26, %s5944_s1  ;;  %p5951_p8 = scmp.lt.u32.totalorder %s5949_s24, %s5944_s1 }
  0x5e   : > { %s8689_s22 = scalar_select %p6504_p4, 1, 0 }
  0x5f   : > { %p5947_p1 = pnand %p6504_p4, %p5945_p2  ;;  %p5952_p9 = por %p5951_p8, %p5950_p6 }
  0x60   : > { %p5953_p10 = scmp.lt.u32.totalorder %s5944_s1, %s6488_s26 }
  0x61   : > { %p5948_p3 = pneg %p5947_p1 }
  0x62   : > { %p5954_p12 = por %p5953_p10, %p5952_p9 }
  0x64   : > { %p5955_p13 = pnand %p5954_p12, %p5948_p3 }
  0x66   : > { %5958 = shalt.err (!%p5955_p13)
}
  0x67   : > { %s5959_s12 = scalar_lea.vmem %s6496_s0, 2048  ;;  %s6280_s27 = smov [#allocation16]  }
  0x68   : > { %p5960_p2 = scmp.ne.s32.totalorder %s6496_s0, %s5959_s12  ;;  %s5964_s29 = sshll.u32 %s6280_s27, 4  ;;  %s5965_s29 = int_to_ptr.vmem [resolvable:$false] %s5964_s29 }
  0x69   : > { %s5966_s10 = scalar_lea.vmem %s5965_s29, 4096  ;;  %p5967_p5 = scmp.lt.s32.totalorder %s6496_s0, %s5965_s29 }
  0x6a   : > { %p5962_p1 = pnand %p5960_p2, %p6504_p4  ;;  %p5968_p7 = scmp.lt.s32.totalorder %s5966_s10, %s5959_s12 }
  0x6c   : > { %p5963_p11 = pneg %p5962_p1  ;;  %p5969_p6 = por %p5968_p7, %p5967_p5 }
  0x6e   : > { %p5970_p8 = pnand %p5969_p6, %p5963_p11 }
  0x70   : > { %5973 = shalt.err (!%p5970_p8)
}
  0x71   : > { %s6281_s1 = smov 2048   ;;  %s6282_s24 = smov 512  }
  0x72   : > { %s6283_s16 = smov 32   ;;  %s6284_s6 = smov [#allocation10]  }
  0x73   : > { %5791 = dma.hbm_to_vmem [thread:$0]  (!%p6492_p0), %s6488_s26, 2048, %s6496_s0, %s6498_s28, %s6281_s1, %s6282_s24, %s6283_s16  }
  0x74   : > { %s347_s20 = sshll.u32 %s6284_s6, 4  ;;  %s6285_s27 = smov [#allocation11]   ;;  %s348_s20 = int_to_ptr.vmem [resolvable:$true] %s347_s20 }
  0x75   : > { %s361_s13 = sshll.u32 %s6285_s27, 4  ;;  %s5974_s10 = scalar_lea.hbm %s8505_s2, 512  ;;  %s362_s13 = int_to_ptr.vmem [resolvable:$true] %s361_s13 }
  0x76   : > { %p5975_p5 = scmp.ne.s32.totalorder %s8505_s2, %s5974_s10  ;;  %p8690_p7 = scmp.ne.s32.totalorder %s8679_s11, 0 }
  0x77   : > { %p5981_p9 = scmp.lt.u32.totalorder %s5974_s10, %s8505_s2 }
  0x78   : > { %p5977_p11 = pnand %p5975_p5, %p8690_p7 }
  0x7a   : > { %p5978_p3 = pneg %p5977_p11 }
  0x7c   : > { %p5983_p10 = pnand %p5981_p9, %p5978_p3 }
  0x7e   : > { %5986 = shalt.err (!%p5983_p10)
}
  0x7f   : > { %s5987_s0 = scalar_lea.vmem %s348_s20, 512  ;;  %p5995_p1 = scmp.lt.s32.totalorder %s348_s20, %s348_s20 }
  0x80   : > { %p5988_p12 = scmp.ne.s32.totalorder %s348_s20, %s5987_s0  ;;  %p5996_p6 = scmp.lt.s32.totalorder %s5987_s0, %s5987_s0 }
  0x82   : > { %p5990_p13 = pnand %p5988_p12, %p8690_p7  ;;  %p5997_p8 = por %p5996_p6, %p5995_p1 }
  0x84   : > { %p5991_p2 = pneg %p5990_p13 }
  0x86   : > { %p5998_p0 = pnand %p5997_p8, %p5991_p2 }
  0x88   : > { %6001 = shalt.err (!%p5998_p0)
}
  0x89   : > { %p8691_p5 = scmp.ne.s32.totalorder %s8677_s23, 0  ;;  %s8692_s6 = smov 8  }
  0x8a   : > { %s8693_s15 = smov 128   ;;  %s4552_s26 = sshll.u32 %s6478_s21, 2 }
  0x8b   : > { %5775 = dma.hbm_to_vmem [thread:$0]  (!%p8691_p5), %s8505_s2, 512, %s348_s20, [#allocation9], %s8693_s15, %s8693_s15, %s8692_s6  }
  0x8c   : > { %s6002_s24 = scalar_lea.hbm %s8506_s3, 16 }
  0x8d   : > { %p6003_p0 = scmp.ne.s32.totalorder %s8506_s3, %s6002_s24  ;;  %p6009_p9 = scmp.lt.u32.totalorder %s6002_s24, %s8506_s3 }
  0x8f   : > { %p6005_p11 = pnand %p6003_p0, %p8690_p7 }
  0x91   : > { %p6006_p3 = pneg %p6005_p11 }
  0x93   : > { %p6011_p10 = pnand %p6009_p9, %p6006_p3 }
  0x95   : > { %6014 = shalt.err (!%p6011_p10)
}
  0x96   : > { %s6015_s20 = scalar_lea.vmem %s362_s13, 16  ;;  %s6022_s10 = scalar_lea.vmem %s362_s13, 32 }
  0x97   : > { %p6016_p12 = scmp.ne.s32.totalorder %s362_s13, %s6015_s20  ;;  %p6023_p1 = scmp.lt.s32.totalorder %s362_s13, %s362_s13 }
  0x98   : > { %p6024_p6 = scmp.lt.s32.totalorder %s6022_s10, %s6015_s20 }
  0x99   : > { %p6018_p13 = pnand %p6016_p12, %p8690_p7 }
  0x9a   : > { %p6025_p8 = por %p6024_p6, %p6023_p1 }
  0x9b   : > { %p6019_p2 = pneg %p6018_p13 }
  0x9d   : > { %p6026_p4 = pnand %p6025_p8, %p6019_p2 }
  0x9f   : > { %6029 = shalt.err (!%p6026_p4)
}
  0xa0   : > { %5778 = dma.hbm_to_vmem [thread:$0]  (!%p8691_p5), %s8506_s3, 16, %s362_s13, [#allocation12]  }
  0xa1   : > { %s4580_s18 = sshll.u32 %s6270_s17, 6  ;;  %s430_s16 = scalar_lea.vmem [#allocation17], %s4552_s26 }
  0xa2   : > { %s6572_s24 = scalar_lea.hbm %s8510_s7, %s4580_s18  ;;  %s438_s27 = sshll.u32 %s430_s16, 4  ;;  %s439_s27 = int_to_ptr.vmem [resolvable:$true] %s438_s27 }
  0xa3   : > { %s6030_s29 = scalar_lea.hbm %s6572_s24, 64  ;;  %p8694_p0 = scmp.ne.s32.totalorder %s8689_s22, 0 }
  0xa4   : > { %p6031_p4 = scmp.ne.s32.totalorder %s6572_s24, %s6030_s29  ;;  %s6035_s20 = scalar_lea.hbm %s8510_s7, 256 }
  0xa5   : > { %p6036_p9 = scmp.lt.u32.totalorder %s6572_s24, %s8510_s7  ;;  %p6037_p10 = scmp.lt.u32.totalorder %s6035_s20, %s6030_s29 }
  0xa6   : > { %p6033_p11 = pnand %p6031_p4, %p8694_p0  ;;  %p6039_p13 = scmp.lt.u32.totalorder %s6030_s29, %s6572_s24 }
  0xa7   : > { %p6038_p12 = por %p6037_p10, %p6036_p9 }
  0xa8   : > { %p6034_p3 = pneg %p6033_p11 }
  0xa9   : > { %p6040_p2 = por %p6039_p13, %p6038_p12 }
  0xab   : > { %p6041_p1 = pnand %p6040_p2, %p6034_p3 }
  0xad   : > { %6044 = shalt.err (!%p6041_p1)
}
  0xae   : > { %s6045_s26 = scalar_lea.vmem %s439_s27, 64  ;;  %s6286_s14 = smov [#allocation17]  }
  0xaf   : > { %p6046_p6 = scmp.ne.s32.totalorder %s439_s27, %s6045_s26  ;;  %s6050_s18 = sshll.u32 %s6286_s14, 4  ;;  %s6051_s18 = int_to_ptr.vmem [resolvable:$false] %s6050_s18 }
  0xb0   : > { %s6052_s30 = scalar_lea.vmem %s6051_s18, 128  ;;  %p6053_p11 = scmp.lt.s32.totalorder %s439_s27, %s6051_s18 }
  0xb1   : > { %p6048_p8 = pnand %p6046_p6, %p8694_p0  ;;  %p6054_p5 = scmp.lt.s32.totalorder %s6052_s30, %s6045_s26 }
  0xb3   : > { %p6049_p4 = pneg %p6048_p8  ;;  %p6055_p7 = por %p6054_p5, %p6053_p11 }
  0xb5   : > { %p6056_p9 = pnand %p6055_p7, %p6049_p4 }
  0xb7   : > { %6059 = shalt.err (!%p6056_p9)
}
  0xb8   : > { %p8695_p10 = scmp.ne.s32.totalorder %s8688_s25, 0  ;;  %s6287_s1 = smov [#allocation13]  }
  0xb9   : > { %s372_s16 = sshll.u32 %s6287_s1, 4  ;;  %s6288_s29 = smov [#allocation14]   ;;  %s373_s16 = int_to_ptr.vmem [resolvable:$true] %s372_s16 }
  0xba   : > { %5794 = dma.hbm_to_vmem [thread:$0]  (!%p8695_p10), %s6572_s24, 64, %s439_s27, %s6498_s28  }
  0xbb   : > { %s383_s12 = sshll.u32 %s6288_s29, 4  ;;  %s6060_s10 = scalar_lea.hbm %s8507_s4, 16  ;;  %s384_s12 = int_to_ptr.vmem [resolvable:$true] %s383_s12 }
  0xbc   : > { %p6061_p7 = scmp.ne.s32.totalorder %s8507_s4, %s6060_s10  ;;  %p8696_p5 = scmp.ne.s32.totalorder %s8679_s11, 0 }
  0xbd   : > { %p6067_p13 = scmp.lt.u32.totalorder %s6060_s10, %s8507_s4 }
  0xbe   : > { %p6063_p3 = pnand %p6061_p7, %p8696_p5 }
  0xc0   : > { %p6064_p12 = pneg %p6063_p3 }
  0xc2   : > { %p6069_p2 = pnand %p6067_p13, %p6064_p12 }
  0xc4   : > { %6072 = shalt.err (!%p6069_p2)
}
  0xc5   : > { %s6073_s24 = scalar_lea.vmem %s373_s16, 16  ;;  %s6080_s27 = scalar_lea.vmem %s373_s16, 32 }
  0xc6   : > { %p6074_p1 = scmp.ne.s32.totalorder %s373_s16, %s6073_s24  ;;  %p6081_p4 = scmp.lt.s32.totalorder %s373_s16, %s373_s16 }
  0xc7   : > { %p6082_p11 = scmp.lt.s32.totalorder %s6080_s27, %s6073_s24 }
  0xc8   : > { %p6076_p6 = pnand %p6074_p1, %p8696_p5 }
  0xc9   : > { %p6083_p9 = por %p6082_p11, %p6081_p4 }
  0xca   : > { %p6077_p8 = pneg %p6076_p6 }
  0xcc   : > { %p6084_p10 = pnand %p6083_p9, %p6077_p8 }
  0xce   : > { %6087 = shalt.err (!%p6084_p10)
}
  0xcf   : > { %p8697_p7 = scmp.ne.s32.totalorder %s8677_s23, 0  ;;  %s6088_s20 = scalar_lea.hbm %s8508_s5, 16 }
  0xd0   : > { %p6089_p3 = scmp.ne.s32.totalorder %s8508_s5, %s6088_s20  ;;  %p6095_p10 = scmp.lt.u32.totalorder %s6088_s20, %s8508_s5 }
  0xd1   : > { %5781 = dma.hbm_to_vmem [thread:$0]  (!%p8697_p7), %s8507_s4, 16, %s373_s16, [#allocation12]  }
  0xd2   : > { %p6091_p12 = pnand %p6089_p3, %p8696_p5 }
  0xd4   : > { %p6092_p13 = pneg %p6091_p12 }
  0xd6   : > { %p6097_p2 = pnand %p6095_p10, %p6092_p13 }
  0xd8   : > { %6100 = shalt.err (!%p6097_p2)
}
  0xd9   : > { %s6101_s18 = scalar_lea.vmem %s384_s12, 16  ;;  %s6108_s16 = scalar_lea.vmem %s384_s12, 32 }
  0xda   : > { %p6102_p1 = scmp.ne.s32.totalorder %s384_s12, %s6101_s18  ;;  %p6109_p4 = scmp.lt.s32.totalorder %s384_s12, %s384_s12 }
  0xdb   : > { %p6110_p11 = scmp.lt.s32.totalorder %s6108_s16, %s6101_s18 }
  0xdc   : > { %p6104_p6 = pnand %p6102_p1, %p8696_p5 }
  0xdd   : > { %p6111_p9 = por %p6110_p11, %p6109_p4 }
  0xde   : > { %p6105_p8 = pneg %p6104_p6 }
  0xe0   : > { %p6112_p0 = pnand %p6111_p9, %p6105_p8 }
  0xe2   : > { %6115 = shalt.err (!%p6112_p0)
}
  0xe3   : > { %5784 = dma.hbm_to_vmem [thread:$0]  (!%p8697_p7), %s8508_s5, 16, %s384_s12, [#allocation15]  }
  0xe4   : > { %s6289_s30 = smov [#allocation19]   ;;  %s4555_s29 = sshll.u32 %s6478_s21, 9 }
  0xe5   : > { %s394_s1 = sshll.u32 %s6289_s30, 4  ;;  %s6116_s10 = scalar_lea.hbm %s8512_s9, 16  ;;  %s395_s1 = int_to_ptr.vmem [resolvable:$true] %s394_s1 }
  0xe6   : > { %p6117_p0 = scmp.ne.s32.totalorder %s8512_s9, %s6116_s10  ;;  %p6123_p13 = scmp.lt.u32.totalorder %s6116_s10, %s8512_s9 }
  0xe8   : > { %p6119_p3 = pnand %p6117_p0, %p8696_p5 }
  0xea   : > { %p6120_p12 = pneg %p6119_p3 }
  0xec   : > { %p6125_p10 = pnand %p6123_p13, %p6120_p12 }
  0xee   : > { %6128 = shalt.err (!%p6125_p10)
}
  0xef   : > { %s6129_s12 = scalar_lea.vmem %s395_s1, 16  ;;  %s6136_s21 = scalar_lea.vmem %s395_s1, 32 }
  0xf0   : > { %p6130_p2 = scmp.ne.s32.totalorder %s395_s1, %s6129_s12  ;;  %p6137_p8 = scmp.lt.s32.totalorder %s395_s1, %s395_s1 }
  0xf1   : > { %p6138_p4 = scmp.lt.s32.totalorder %s6136_s21, %s6129_s12 }
  0xf2   : > { %p6132_p1 = pnand %p6130_p2, %p8696_p5 }
  0xf3   : > { %p6139_p11 = por %p6138_p4, %p6137_p8 }
  0xf4   : > { %p6133_p6 = pneg %p6132_p1 }
  0xf6   : > { %p6140_p9 = pnand %p6139_p11, %p6133_p6 }
  0xf8   : > { %6143 = shalt.err (!%p6140_p9)
}
  0xf9   : > { %5787 = dma.hbm_to_vmem [thread:$0]  (!%p8697_p7), %s8512_s9, 16, %s395_s1, [#allocation9]  }
  0xfa   : > { %s4581_s27 = sshll.u32 %s6270_s17, 13  ;;  %s449_s30 = scalar_lea.vmem [#allocation18], %s4555_s29 }
  0xfb   : > { %s456_s13 = sshll.u32 %s449_s30, 4  ;;  %s6651_s10 = scalar_lea.hbm %s8511_s8, %s4581_s27  ;;  %s6653_s13 = int_to_ptr.vmem [resolvable:$true] %s456_s13 }
  0xfc   : > { %s6144_s23 = scalar_lea.hbm %s6651_s10, 8192  ;;  %p8698_p0 = scmp.ne.s32.totalorder %s8689_s22, 0 }
  0xfd   : > { %p6145_p5 = scmp.ne.s32.totalorder %s6651_s10, %s6144_s23  ;;  %s6149_s29 = scalar_lea.hbm %s8511_s8, 32768 }
  0xfe   : > { %p6150_p7 = scmp.lt.u32.totalorder %s6651_s10, %s8511_s8  ;;  %p6151_p13 = scmp.lt.u32.totalorder %s6149_s29, %s6144_s23 }
  0xff   : > { %p6147_p3 = pnand %p6145_p5, %p8698_p0  ;;  %p6153_p2 = scmp.lt.u32.totalorder %s6144_s23, %s6651_s10 }
 0x100   : > { %p6152_p10 = por %p6151_p13, %p6150_p7 }
 0x101   : > { %p6148_p12 = pneg %p6147_p3 }
 0x102   : > { %p6154_p1 = por %p6153_p2, %p6152_p10 }
 0x104   : > { %p6155_p6 = pnand %p6154_p1, %p6148_p12 }
 0x106   : > { %6158 = shalt.err (!%p6155_p6)
}
 0x107   : > { %s6159_s18 = scalar_lea.vmem %s6653_s13, 8192  ;;  %s6290_s12 = smov [#allocation18]  }
 0x108   : > { %p6160_p8 = scmp.ne.s32.totalorder %s6653_s13, %s6159_s18  ;;  %s6164_s21 = sshll.u32 %s6290_s12, 4  ;;  %s6165_s21 = int_to_ptr.vmem [resolvable:$false] %s6164_s21 }
 0x109   : > { %s6166_s16 = scalar_lea.vmem %s6165_s21, 16384  ;;  %p6167_p9 = scmp.lt.s32.totalorder %s6653_s13, %s6165_s21 }
 0x10a   : > { %p6162_p4 = pnand %p6160_p8, %p8698_p0  ;;  %p6168_p5 = scmp.lt.s32.totalorder %s6166_s16, %s6159_s18 }
 0x10c   : > { %p6163_p11 = pneg %p6162_p4  ;;  %p6169_p3 = por %p6168_p5, %p6167_p9 }
 0x10e   : > { %p6170_p7 = pnand %p6169_p3, %p6163_p11 }
 0x110   : > { %6173 = shalt.err (!%p6170_p7)
}
 0x111   : > { %p8699_p12 = scmp.ne.s32.totalorder %s8688_s25, 0  ;;  %s8700_s22 = sld [smem:[#allocation32_spill]] }
 0x113   : > { %5797 = dma.hbm_to_vmem [thread:$0]  (!%p8699_p12), %s6651_s10, 8192, %s6653_s13, %s6498_s28, %s8693_s15, %s8693_s15, %s8692_s6  }
 0x117   : > { %p8701_p0 = scmp.ne.s32.totalorder %s8700_s22, 0 }
 0x119   : > { %468 = sbr.rel (%p8701_p0) target bundleno = 1630 (0x65e), region = 60 }
 0x120   : > { %p8702_p13 = scmp.eq.s32.totalorder %s6382_s19, 0 }
 0x122   : > { %6225 = dma.done.wait (%p8702_p13), [#allocation6], 256   ;;  %p8703_p10 = pmov %p8702_p13 }
 0x124   : > { %6227 = vsyncadd (%p8703_p10), [#allocation6], 4294967040  ;;  %p8704_p2 = pmov %p8703_p10 }
 0x126   : > { %6229 = dma.done.wait (%p8704_p2), [#allocation9], 768   ;;  %p8705_p1 = pmov %p8704_p2 }
 0x128   : > { %6231 = vsyncadd (%p8705_p1), [#allocation9], 4294966528  ;;  %p8706_p6 = pmov %p8705_p1 }
 0x129   : > { %p8707_p8 = pmov %p8705_p1 }
 0x12a   : > { %6233 = dma.done.wait (%p8706_p6), [#allocation12], 32  }
 0x12b   : > { %6235 = vsyncadd (%p8707_p8), [#allocation12], 4294967264  ;;  %p8708_p4 = pmov %p8705_p1 }
 0x12c   : > { %p8709_p11 = pmov %p8705_p1 }
 0x12d   : > { %6237 = dma.done.wait (%p8708_p4), [#allocation15], 16  }
 0x12e   : > { %6239 = vsyncadd (%p8709_p11), [#allocation15], 4294967280  ;;  %s8710_s25 = sld [smem:[#allocation28_spill]]  ;;  %s8711_s28 = sld [smem:[#allocation34_spill]] }
 0x12f   : > { %s494_s6 = sand.u32 1, %s6382_s19  }
 0x130   : > { %s495_s27 = scalar_lea.sflag [#allocation6], %s494_s6 }
 0x134   : > { %s496_s15 = sand.u32 1, %s8710_s25   ;;  %p8712_p9 = scmp.ne.s32.totalorder %s8711_s28, 0 }
 0x135   : > { %s4565_s24 = sshll.u32 %s496_s15, 7 }
 0x136   : > { %s6700_s30 = scalar_lea.vmem [#allocation16], %s4565_s24 }
 0x137   : > { %6241 = dma.done.wait (%p8712_p9), %s495_s27, 10304  }
 0x138   : > { %6243 = vsyncadd (%p8712_p9), %s495_s27, 4294956992  ;;  %s4566_s13 = sshll.u32 %s496_s15, 2  ;;  %s4567_s11 = sshll.u32 %s496_s15, 9 }
 0x139   : > { %s6706_s20 = scalar_lea.vmem [#allocation17], %s4566_s13  ;;  %s6708_s10 = scalar_lea.vmem [#allocation18], %s4567_s11 }
 0x13a   : > { %p8713_p5 = pmov %p8705_p1 }
 0x13b   : > { %p8714_p3 = pmov %p8705_p1 }
 0x13c   : > { %6245 = dma.done.wait (%p8713_p5), [#allocation9], 16  }
 0x13d   : > { %6247 = vsyncadd (%p8714_p3), [#allocation9], 4294967280  ;;  %s8715_s23 = sld [smem:[#allocation30_spill]] }
 0x143   : > { %p4569_p7 = scmp.ne.s32.totalorder %s8715_s23, 0 }
 0x144   : > { %v574_v0 = vld [vmem:[#allocation10] sm:$0xff] (!%p4569_p7)  ;;  %v575_v1 = vld [vmem:[#allocation10 + $0x8] sm:$0xff] (!%p4569_p7)  ;;  %v576_v2 = vld [vmem:[#allocation10 + $0x10] sm:$0xff] (!%p4569_p7)  ;;  %vm585_vm0 = vcmask (!%p4569_p7), 261120   ;;  %v6291_v8 = vmov (!%p4569_p7), 0.0  }
 0x145   : > { %571 = sbr.rel (%p4569_p7) target bundleno = 904 (0x388), region = 104  ;;  %v593_v3 = vand.u32 (!%p4569_p7), 4294901760, %v574_v0  ;;  %v596_v4 = vand.u32 (!%p4569_p7), 4294901760, %v575_v1  ;;  %v577_v5 = vld [vmem:[#allocation10 + $0x18] sm:$0xff] (!%p4569_p7)  ;;  %v599_v6 = vand.u32 (!%p4569_p7), 4294901760, %v576_v2  ;;  %v572_v7 = vld [vmem:[#allocation8] sm:$0xff] (!%p4569_p7) }
 0x146   : > { %1188 = vst.msk [vmem:[#allocation4] sm:$0xff] (!%p4569_p7), %vm585_vm0, %v6291_v8  ;;  %1189 = vst.msk [vmem:[#allocation4 + $0x8] sm:$0xff] (!%p4569_p7), %vm585_vm0, %v6291_v8  ;;  %v573_v9 = vld [vmem:[#allocation8 + $0x8] sm:$0xff] (!%p4569_p7)  ;;  %v602_v10 = vand.u32 (!%p4569_p7), 4294901760, %v577_v5  ;;  %v587_v11 = vsel (!%p4569_p7), %vm585_vm0, %v572_v7, 0  ;;  %v1121_v53 = vld [vmem:[#allocation5 + $0x8] sm:$0xff] (!%p4569_p7) }
 0x147   : > { %v590_v12 = vsel (!%p4569_p7), %vm585_vm0, %v573_v9, 0  ;;  %v5140_v13 = vpack.c.bf16 (!%p4569_p7), %v596_v4, %v593_v3  ;;  %v6719_v14 = vand.u32 (!%p4569_p7), 4294901760, %v587_v11  ;;  %v683_v16 = vsub.f32 (!%p4569_p7), %v574_v0, %v593_v3  ;;  %v4570_v47 = vld [vmem:[#allocation11] ss:$0 sm:$0xff] (!%p4569_p7) }
 0x148   : > { %v6721_v15 = vand.u32 (!%p4569_p7), 4294901760, %v590_v12  ;;  %v5144_v17 = vpack.c.bf16 (!%p4569_p7), %v602_v10, %v599_v6  ;;  %v690_v18 = vsub.f32 (!%p4569_p7), %v575_v1, %v596_v4  ;;  %v697_v19 = vsub.f32 (!%p4569_p7), %v576_v2, %v599_v6  ;;  %v1120_v56 = vld [vmem:[#allocation5] sm:$0xff] (!%p4569_p7) }
 0x149   : > { %v704_v20 = vsub.f32 (!%p4569_p7), %v577_v5, %v602_v10  ;;  %5141 = vmatprep.subr.bf16.mxu1 (!%p4569_p7), %v5140_v13  ;;  %5165 = vmatprep.subr.bf16.mxu0 (!%p4569_p7), %v5140_v13  ;;  %v662_v21 = vsub.f32 (!%p4569_p7), %v587_v11, %v6719_v14  ;;  %v684_v23 = vand.u32 (!%p4569_p7), 4294901760, %v683_v16 }
 0x14a   : > { %v672_v22 = vsub.f32 (!%p4569_p7), %v590_v12, %v6721_v15  ;;  %5143 = vmatpush3.bf16.msra.mxu1 (!%p4569_p7), %v5140_v13  ;;  %5167 = vmatpush3.bf16.msra.mxu0 (!%p4569_p7), %v5140_v13  ;;  %v691_v24 = vand.u32 (!%p4569_p7), 4294901760, %v690_v18  ;;  %v698_v25 = vand.u32 (!%p4569_p7), 4294901760, %v697_v19  ;;  %v5156_v45 = vpack.c.bf16 (!%p4569_p7), %v690_v18, %v683_v16 }
 0x14b   : > { %v705_v26 = vand.u32 (!%p4569_p7), 4294901760, %v704_v20  ;;  %5145 = vmatprep.subr.bf16.mxu1 (!%p4569_p7), %v5144_v17  ;;  %5169 = vmatprep.subr.bf16.mxu0 (!%p4569_p7), %v5144_v17  ;;  %v663_v27 = vand.u32 (!%p4569_p7), 4294901760, %v662_v21  ;;  %v685_v29 = vsub.f32 (!%p4569_p7), %v683_v16, %v684_v23  ;;  %v5160_v46 = vpack.c.bf16 (!%p4569_p7), %v704_v20, %v697_v19 }
 0x14c   : > { %v673_v28 = vand.u32 4294901760, %v672_v22  ;;  %v692_v30 = vsub.f32 %v690_v18, %v691_v24  ;;  %v5172_v31 = vpack.c.bf16 %v691_v24, %v684_v23  ;;  %v699_v32 = vsub.f32 %v697_v19, %v698_v25  ;;  %v4571_v24 = vld [vmem:[#allocation13] ss:$0 sm:$0xff] }
 0x14d   : > { %v706_v33 = vsub.f32 %v704_v20, %v705_v26  ;;  %v664_v34 = vsub.f32 %v662_v21, %v663_v27  ;;  %5115 = vmatprep.mubr.f32.mxu0 %v663_v27  ;;  %v686_v36 = vand.u32 4294901760, %v685_v29  ;;  %v5176_v44 = vpack.c.bf16 %v705_v26, %v698_v25  ;;  %v4572_v27 = vld [vmem:[#allocation14] ss:$0 sm:$0xff] }
 0x14e   : > { %v674_v35 = vsub.f32 %v672_v22, %v673_v28  ;;  %5147 = vmatpush3.bf16.msra.mxu1 %v5144_v17  ;;  %5171 = vmatpush3.bf16.msra.mxu0 %v5144_v17  ;;  %v693_v37 = vand.u32 4294901760, %v692_v30  ;;  %v700_v38 = vand.u32 4294901760, %v699_v32 }
 0x14f   : > { %v707_v39 = vand.u32 4294901760, %v706_v33  ;;  %v665_v40 = vand.u32 4294901760, %v664_v34  ;;  %5173 = vmatprep.subr.bf16.mxu0 %v5172_v31 }
 0x150   : > { %v675_v41 = vand.u32 4294901760, %v674_v35  ;;  %v5148_v42 = vpack.c.bf16 %v693_v37, %v686_v36 }
 0x151   : > { %v5152_v43 = vpack.c.bf16 %v707_v39, %v700_v38  ;;  %5082 = vmatprep.mubr.f32.mxu1 %v665_v40  ;;  %5116 = vmatmul.mubr.f32.vlgmr.msra.gmra.mrb[0].mxu0 %v673_v28 }
 0x152   : > { %5083 = vmatmul.mubr.f32.vlgmr.msra.gmra.mrb[0].mxu1 %v675_v41  ;;  %5149 = vmatprep.subr.bf16.mxu1 %v5148_v42 }
 0x153   : > { %5151 = vmatpush3.bf16.msra.mxu1 %v5148_v42  ;;  %5175 = vmatpush3.bf16.msra.mxu0 %v5172_v31 }
 0x154   : > { %5153 = vmatprep.subr.bf16.mxu1 %v5152_v43  ;;  %5177 = vmatprep.subr.bf16.mxu0 %v5176_v44 }
 0x155   : > { %5093 = vmatprep.mubr.f32.mxu1 %v6719_v14  ;;  %5126 = vmatprep.mubr.f32.mxu0 %v6719_v14 }
 0x157   : > { %5155 = vmatpush3.bf16.msra.mxu1 %v5152_v43  ;;  %5179 = vmatpush3.bf16.msra.mxu0 %v5176_v44 }
 0x158   : > { %5157 = vmatprep.subr.bf16.mxu1 %v5156_v45  ;;  %5181 = vmatprep.subr.bf16.mxu0 %v5140_v13 }
 0x15a   : > { %5094 = vmatmul.mubr.f32.vlgmr.msra.gmra.mrb[0].mxu1 %v6721_v15  ;;  %5127 = vmatmul.mubr.f32.vlgmr.msra.gmra.mrb[0].mxu0 %v6721_v15 }
 0x15b   : > { %5159 = vmatpush3.bf16.msra.mxu1 %v5156_v45  ;;  %5183 = vmatpush3.bf16.msra.mxu0 %v5140_v13 }
 0x15c   : > { %5161 = vmatprep.subr.bf16.mxu1 %v5160_v46  ;;  %5185 = vmatprep.subr.bf16.mxu0 %v5144_v17 }
 0x15d   : > { %5104 = vmatprep.mubr.f32.mxu1 %v662_v21  ;;  %5137 = vmatprep.mubr.f32.mxu0 %v6719_v14 }
 0x15f   : > { %5163 = vmatpush3.bf16.msra.mxu1 %v5160_v46  ;;  %5187 = vmatpush3.bf16.msra.mxu0 %v5144_v17 }
 0x162   : > { %5105 = vmatmul.mubr.f32.vlgmr.msra.gmra.mrb[0].mxu1 %v672_v22  ;;  %5138 = vmatmul.mubr.f32.vlgmr.msra.gmra.mrb[0].mxu0 %v6721_v15 }
 0x235   : > { %v5106_v48 = vpop.f32.mrb[0].mxu1  ;;  %v5139_v49 = vpop.f32.mrb[0].mxu0 }
 0x236   : > { %v5668_v50 = vadd.f32 %v5106_v48, %v4570_v47  ;;  %v854_v51 = vpop.f32.mrb[1].mxu1  ;;  %v1110_v52 = vpop.f32.mrb[1].mxu0 }
 0x237   : > { %v5670_v54 = vadd.f32 %v4570_v47, %v854_v51 }
 0x238   : > { %v5669_v55 = vadd.f32 %v5668_v50, %v5139_v49 }
 0x239   : > { %v5671_v57 = vadd.f32 %v5670_v54, %v1110_v52 }
 0x23a   : > { %v1123_v58 = vadd.f32 %v5669_v55, %v1121_v53 }
 0x23b   : > { %v1122_v59 = vadd.f32 %v5671_v57, %v1120_v56 }
 0x23c   : > { %1125 = vst.msk [vmem:[#allocation2 + $0x8] sm:$0xff] %vm585_vm0, %v1123_v58  ;;  %v1131_v61 = vsel %vm585_vm0, %v1123_v58, 0.0 }
 0x23d   : > { %1124 = vst.msk [vmem:[#allocation2] sm:$0xff] %vm585_vm0, %v1122_v59  ;;  %v1128_v60 = vsel %vm585_vm0, %v1122_v59, 0.0 }
 0x23e   : > { %1129 = vadd.xlane.f32.xlu0 %v1128_v60 }
 0x242   : > { %1132 = vadd.xlane.f32.xlu0 %v1131_v61 }
 0x2cb   : > { %v1130_v62 = vpop.xlane.xlu0 %1129 }
 0x2cc   : > { %v1135_v63 = vmul.f32 0.03125, %v1130_v62 }
 0x2ce   : > { %v1137_v0 = vsub.f32 %v1122_v59, %v1135_v63 }
 0x2cf   : > { %v1133_v1 = vpop.xlane.xlu0 %1132 }
 0x2d0   : > { %v1136_v2 = vmul.f32 0.03125, %v1133_v1  ;;  %v1139_v3 = vmul.f32 %v1137_v0, %v1137_v0  ;;  %v1156_v25 = vmul.f32 %v4571_v24, %v1137_v0 }
 0x2d2   : > { %v1138_v4 = vsub.f32 %v1123_v58, %v1136_v2  ;;  %v1141_v5 = vsel %vm585_vm0, %v1139_v3, 0.0 }
 0x2d3   : > { %1142 = vadd.xlane.f32.xlu1 %v1141_v5 }
 0x2d4   : > { %v1140_v6 = vmul.f32 %v1138_v4, %v1138_v4  ;;  %v1157_v29 = vmul.f32 %v4571_v24, %v1138_v4 }
 0x2d6   : > { %v1144_v7 = vsel %vm585_vm0, %v1140_v6, 0.0 }
 0x2d7   : > { %1145 = vadd.xlane.f32.xlu1 %v1144_v7 }
 0x360   : > { %v1143_v8 = vpop.xlane.xlu1 %1142 }
 0x361   : > { %v1148_v9 = vmul.f32 0.032258064, %v1143_v8 }
 0x363   : > { %5880 = vrsqrt.f32 %v1148_v9  ;;  %vm1160_vm1 = vcmp.eq.f32.partialorder %v1148_v9, inf  ;;  %v1163_v14 = vand.u32 2147483648, %v1148_v9  ;;  %vm1162_vm2 = vcmp.eq.f32.partialorder %v1148_v9, 0.0 }
 0x364   : > { %v1146_v10 = vpop.xlane.xlu1 %1145 }
 0x365   : > { %v1149_v11 = vmul.f32 0.032258064, %v1146_v10 }
 0x367   : > { %5882 = vrsqrt.f32 %v1149_v11  ;;  %vm1167_vm3 = vcmp.eq.f32.partialorder %v1149_v11, inf  ;;  %v1170_v20 = vand.u32 2147483648, %v1149_v11  ;;  %vm1169_vm4 = vcmp.eq.f32.partialorder %v1149_v11, 0.0 }
 0x36d   : > { %v5881_v12 = vpop.eup %5880 }
 0x36e   : > { %v1159_v13 = vmul.f32 %v5881_v12, %v1148_v9 }
 0x370   : > { %v1161_v15 = vsel %vm1160_vm1, %v1148_v9, %v1159_v13 }
 0x371   : > { %v5883_v16 = vpop.eup %5882  ;;  %v1164_v17 = vsel %vm1162_vm2, %v1163_v14, %v1161_v15 }
 0x372   : > { %v1172_v18 = vadd.f32 1e-06, %v1164_v17  ;;  %v1166_v19 = vmul.f32 %v5883_v16, %v1149_v11 }
 0x374   : > { %5884 = vrcp.f32 %v1172_v18  ;;  %v1168_v21 = vsel %vm1167_vm3, %v1149_v11, %v1166_v19 }
 0x375   : > { %v1171_v22 = vsel %vm1169_vm4, %v1170_v20, %v1168_v21 }
 0x376   : > { %v1173_v23 = vadd.f32 1e-06, %v1171_v22 }
 0x378   : > { %5886 = vrcp.f32 %v1173_v23 }
 0x37e   : > { %v5885_v26 = vpop.eup %5884 }
 0x37f   : > { %v1175_v28 = vmul.f32 %v5885_v26, %v1156_v25 }
 0x381   : > { %v1184_v30 = vadd.f32 %v4572_v27, %v1175_v28 }
 0x382   : > { %v5887_v31 = vpop.eup %5886 }
 0x383   : > { %1186 = vst.msk [vmem:[#allocation3] sm:$0xff] %vm585_vm0, %v1184_v30  ;;  %v1177_v32 = vmul.f32 %v5887_v31, %v1157_v29 }
 0x385   : > { %v1185_v33 = vadd.f32 %v4572_v27, %v1177_v32 }
 0x387   : > { %1187 = vst.msk [vmem:[#allocation3 + $0x8] sm:$0xff] %vm585_vm0, %v1185_v33 }
 0x388 PF: > { %v1193_v34 = vld [vmem:[%s6700_s30 + $0x8] sm:$0xff]  ;;  %v1192_v36 = vld [vmem:[%s6700_s30] sm:$0xff]  ;;  %vm1230_vm5 = vcmask 261120   ;;  %v6292_v43 = vmov 0.0   ;;  %s9010_s1 = sld [smem:[#allocation30_spill]] }
 0x389   : > { %v1197_v35 = vld [vmem:[%s6700_s30 + $0x28] sm:$0xff]  ;;  %v1237_v37 = vand.u32 4294901760, %v1193_v34  ;;  %v1196_v39 = vld [vmem:[%s6700_s30 + $0x20] sm:$0xff]  ;;  %v1239_v40 = vand.u32 4294901760, %v1192_v36  ;;  %1309 = vmatprep.mubr.f32.mxu0 %v6292_v43  ;;  %1901 = vmatprep.mubr.f32.mxu1 %v6292_v43 }
 0x38a   : > { %v1241_v38 = vand.u32 4294901760, %v1197_v35  ;;  %v1201_v41 = vld [vmem:[%s6700_s30 + $0x48] sm:$0xff]  ;;  %v1243_v44 = vand.u32 4294901760, %v1196_v39  ;;  %v1200_v47 = vld [vmem:[%s6700_s30 + $0x40] sm:$0xff] }
 0x38b   : > { %v1205_v42 = vld [vmem:[%s6700_s30 + $0x68] sm:$0xff]  ;;  %v1245_v45 = vand.u32 4294901760, %v1201_v41  ;;  %v1204_v48 = vld [vmem:[%s6700_s30 + $0x60] sm:$0xff]  ;;  %v6751_v51 = vsub.f32 %v1193_v34, %v1237_v37  ;;  %v6755_v53 = vsub.f32 %v1192_v36, %v1239_v40  ;;  %v1247_v59 = vand.u32 4294901760, %v1200_v47  ;;  %v1195_v34 = vld [vmem:[%s6700_s30 + $0x18] sm:$0xff] }
 0x38c   : > { %v1249_v46 = vand.u32 4294901760, %v1205_v42  ;;  %v1190_v49 = vld [vmem:[#allocation3] sm:$0xff]  ;;  %v6749_v50 = vpack.c.bf16 %v1241_v38, %v1237_v37  ;;  %v6753_v52 = vsub.f32 %v1197_v35, %v1241_v38  ;;  %v6757_v54 = vpack.c.bf16 %v1243_v44, %v1239_v40  ;;  %v1194_v38 = vld [vmem:[%s6700_s30 + $0x10] sm:$0xff] }
 0x38d   : > { %v6759_v55 = vsub.f32 %v1196_v39, %v1243_v44  ;;  %v6763_v57 = vsub.f32 %v1201_v41, %v1245_v45  ;;  %v1251_v60 = vand.u32 4294901760, %v1204_v48  ;;  %v1232_v61 = vsel %vm1230_vm5, %v1190_v49, 0  ;;  %v1199_v37 = vld [vmem:[%s6700_s30 + $0x38] sm:$0xff] }
 0x38e   : > { %v6761_v56 = vpack.c.bf16 %v1249_v46, %v1245_v45  ;;  %5189 = vmatprep.subr.bf16.mxu0 %v6749_v50  ;;  %v6766_v58 = vsub.f32 %v1205_v42, %v1249_v46  ;;  %v6770_v62 = vand.u32 4294901760, %v1232_v61  ;;  %v1334_v63 = vand.u32 4294901760, %v6751_v51  ;;  %v1191_v2 = vld [vmem:[#allocation3 + $0x8] sm:$0xff]  ;;  %v1198_v42 = vld [vmem:[%s6700_s30 + $0x30] sm:$0xff]  ;;  %v1203_v44 = vld [vmem:[%s6700_s30 + $0x58] sm:$0xff]  ;;  %p4573_p12 = scmp.ne.s32.totalorder %s9010_s1, 3 }
 0x38f   : > { %5191 = vmatpush1.bf16.msra.mxu0 %v6757_v54  ;;  %v1346_v0 = vand.u32 4294901760, %v6753_v52  ;;  %v1340_v1 = vand.u32 4294901760, %v6755_v53  ;;  %v6776_v3 = vpack.c.bf16 %v1251_v60, %v1247_v59  ;;  %v6778_v4 = vsub.f32 %v1200_v47, %v1247_v59  ;;  %v1207_v49 = vld [vmem:[%s6700_s30 + $0x78] sm:$0xff] }
 0x390   : > { %5193 = vmatprep.subr.bf16.mxu0 %v6761_v56  ;;  %v6780_v5 = vsub.f32 %v1204_v48, %v1251_v60  ;;  %v1352_v6 = vand.u32 4294901760, %v6759_v55  ;;  %v6784_v7 = vsub.f32 %v1232_v61, %v6770_v62  ;;  %v1335_v8 = vsub.f32 %v6751_v51, %v1334_v63 }
 0x391   : > { %v1347_v9 = vsub.f32 %v6753_v52, %v1346_v0  ;;  %v1341_v10 = vsub.f32 %v6755_v53, %v1340_v1  ;;  %v1235_v12 = vsel %vm1230_vm5, %v1191_v2, 0  ;;  %v1358_v13 = vand.u32 4294901760, %v6763_v57 }
 0x392   : > { %v1353_v11 = vsub.f32 %v6759_v55, %v1352_v6  ;;  %v1370_v14 = vand.u32 4294901760, %v6766_v58  ;;  %v6803_v15 = vand.u32 4294901760, %v6784_v7  ;;  %v1336_v16 = vand.u32 4294901760, %v1335_v8  ;;  %v1202_v8 = vld [vmem:[%s6700_s30 + $0x50] sm:$0xff] }
 0x393   : > { %5195 = vmatpush1.bf16.msra.mxu0 %v6776_v3  ;;  %v1348_v17 = vand.u32 4294901760, %v1347_v9  ;;  %v1342_v18 = vand.u32 4294901760, %v1341_v10  ;;  %v6805_v20 = vand.u32 4294901760, %v1235_v12  ;;  %v1359_v21 = vsub.f32 %v6763_v57, %v1358_v13 }
 0x394   : > { %v1354_v19 = vand.u32 4294901760, %v1353_v11  ;;  %v1371_v22 = vsub.f32 %v6766_v58, %v1370_v14  ;;  %v1313_v23 = vsub.f32 %v6784_v7, %v6803_v15  ;;  %v1364_v25 = vand.u32 4294901760, %v6778_v4 }
 0x395   : > { %v5196_v24 = vpack.c.bf16 %v1348_v17, %v1336_v16  ;;  %v1376_v26 = vand.u32 4294901760, %v6780_v5  ;;  %v6818_v28 = vsub.f32 %v1235_v12, %v6805_v20  ;;  %v1360_v29 = vand.u32 4294901760, %v1359_v21  ;;  %v1206_v16 = vld [vmem:[%s6700_s30 + $0x70] sm:$0xff] }
 0x396   : > { %v5198_v27 = vpack.c.bf16 %v1354_v19, %v1342_v18  ;;  %v1372_v30 = vand.u32 4294901760, %v1371_v22  ;;  %v6820_v31 = vand.u32 4294901760, %v1313_v23  ;;  %v1365_v32 = vsub.f32 %v6778_v4, %v1364_v25 }
 0x397   : > { %5197 = vmatprep.subr.bf16.mxu0 %v5196_v24  ;;  %v1377_v33 = vsub.f32 %v6780_v5, %v1376_v26  ;;  %v6830_v35 = vand.u32 4294901760, %v6818_v28  ;;  %v5204_v41 = vpack.c.bf16 %v6753_v52, %v6751_v51  ;;  %v5206_v46 = vpack.c.bf16 %v6759_v55, %v6755_v53 }
 0x398   : > { %v5200_v36 = vpack.c.bf16 %v1372_v30, %v1360_v29  ;;  %1315 = vmatmul.mubr.f32.vlgmr.msra.gmra.mrb[0].mxu0 %v6820_v31  ;;  %v1366_v39 = vand.u32 4294901760, %v1365_v32  ;;  %v5208_v47 = vpack.c.bf16 %v6766_v58, %v6763_v57  ;;  %v1829_v48 = vand.u32 4294901760, %v1195_v34 }
 0x399   : > { %v1378_v40 = vand.u32 4294901760, %v1377_v33  ;;  %5199 = vmatpush1.bf16.msra.mxu0 %v5198_v27  ;;  %1320 = vmatprep.mubr.f32.mxu0 %v6292_v43  ;;  %v1324_v45 = vsub.f32 %v6818_v28, %v6830_v35  ;;  %v5210_v60 = vpack.c.bf16 %v6780_v5, %v6778_v4  ;;  %v1833_v61 = vand.u32 4294901760, %v1199_v37 }
 0x39a   : > { %5201 = vmatprep.subr.bf16.mxu0 %v5200_v36  ;;  %v1831_v2 = vand.u32 4294901760, %v1194_v38  ;;  %v6852_v10 = vsub.f32 %v1195_v34, %v1829_v48  ;;  %v1835_v11 = vand.u32 4294901760, %v1198_v42  ;;  %v1837_v12 = vand.u32 4294901760, %v1203_v44 }
 0x39b   : > { %v5202_v59 = vpack.c.bf16 %v1378_v40, %v1366_v39  ;;  %v6850_v9 = vand.u32 4294901760, %v1324_v45  ;;  %v6855_v17 = vpack.c.bf16 %v1833_v61, %v1829_v48  ;;  %v6857_v18 = vsub.f32 %v1199_v37, %v1833_v61 }
 0x39c   : > { %v6859_v19 = vsub.f32 %v1194_v38, %v1831_v2  ;;  %v1841_v21 = vand.u32 4294901760, %v1207_v49  ;;  %v6862_v22 = vpack.c.bf16 %v1835_v11, %v1831_v2  ;;  %v6864_v23 = vsub.f32 %v1198_v42, %v1835_v11 }
 0x39d   : > { %1326 = vmatmul.mubr.f32.gmra.mrb[2].mxu0 %v6850_v9  ;;  %v6866_v24 = vsub.f32 %v1203_v44, %v1837_v12  ;;  %v1839_v27 = vand.u32 4294901760, %v1202_v8  ;;  %v1843_v32 = vand.u32 4294901760, %v1206_v16  ;;  %v1926_v33 = vand.u32 4294901760, %v6852_v10  ;;  %5237 = vmatprep.subr.bf16.mxu1 %v6855_v17 }
 0x39e   : > { %5203 = vmatpush1.bf16.msra.mxu0 %v5202_v59  ;;  %1436 = vmatprep.mubr.f32.mxu0 %v6292_v43  ;;  %v6869_v29 = vpack.c.bf16 %v1841_v21, %v1837_v12  ;;  %v6871_v30 = vsub.f32 %v1207_v49, %v1841_v21  ;;  %v1938_v36 = vand.u32 4294901760, %v6857_v18  ;;  %v1932_v37 = vand.u32 4294901760, %v6859_v19 }
 0x39f   : > { %5205 = vmatprep.subr.bf16.mxu0 %v5204_v41  ;;  %v6875_v34 = vsub.f32 %v1202_v8, %v1839_v27  ;;  %v1944_v38 = vand.u32 4294901760, %v6864_v23  ;;  %5239 = vmatpush1.bf16.msra.mxu1 %v6862_v22  ;;  %v6881_v39 = vpack.c.bf16 %v1843_v32, %v1839_v27  ;;  %v6883_v40 = vsub.f32 %v1206_v16, %v1843_v32 }
 0x3a0   : > { %v1927_v41 = vsub.f32 %v6852_v10, %v1926_v33  ;;  %v1950_v42 = vand.u32 4294901760, %v6866_v24  ;;  %5241 = vmatprep.subr.bf16.mxu1 %v6869_v29  ;;  %v1939_v44 = vsub.f32 %v6857_v18, %v1938_v36  ;;  %v1933_v45 = vsub.f32 %v6859_v19, %v1932_v37 }
 0x3a1   : > { %1438 = vmatmul.mubr.f32.vlgmr.msra.gmra.mrb[0].mxu0 %v6770_v62  ;;  %v1945_v48 = vsub.f32 %v6864_v23, %v1944_v38  ;;  %v1962_v49 = vand.u32 4294901760, %v6871_v30  ;;  %v1956_v2 = vand.u32 4294901760, %v6875_v34  ;;  %v1968_v8 = vand.u32 4294901760, %v6883_v40 }
 0x3a2   : > { %5207 = vmatpush1.bf16.msra.mxu0 %v5206_v46  ;;  %1443 = vmatprep.mubr.f32.mxu0 %v6292_v43  ;;  %v1928_v59 = vand.u32 4294901760, %v1927_v41  ;;  %v1951_v61 = vsub.f32 %v6866_v24, %v1950_v42  ;;  %v1940_v11 = vand.u32 4294901760, %v1939_v44  ;;  %v1934_v12 = vand.u32 4294901760, %v1933_v45 }
 0x3a3   : > { %5209 = vmatprep.subr.bf16.mxu0 %v5208_v47  ;;  %v1946_v16 = vand.u32 4294901760, %v1945_v48  ;;  %v1963_v21 = vsub.f32 %v6871_v30, %v1962_v49  ;;  %5243 = vmatpush1.bf16.msra.mxu1 %v6881_v39  ;;  %v1957_v27 = vsub.f32 %v6875_v34, %v1956_v2  ;;  %v1969_v32 = vsub.f32 %v6883_v40, %v1968_v8 }
 0x3a4   : > { %v1952_v46 = vand.u32 4294901760, %v1951_v61  ;;  %v5244_v47 = vpack.c.bf16 %v1940_v11, %v1928_v59  ;;  %v5252_v11 = vpack.c.bf16 %v6857_v18, %v6852_v10  ;;  %v5254_v51 = vpack.c.bf16 %v6864_v23, %v6859_v19  ;;  %v7092_v23 = vld [vmem:[%s6708_s10 + $0xb0] sm:$0xff] }
 0x3a5   : > { %1445 = vmatmul.mubr.f32.gmra.mrb[2].mxu0 %v6805_v20  ;;  %v5246_v41 = vpack.c.bf16 %v1946_v16, %v1934_v12  ;;  %v1964_v44 = vand.u32 4294901760, %v1963_v21  ;;  %v1958_v45 = vand.u32 4294901760, %v1957_v27  ;;  %v1970_v48 = vand.u32 4294901760, %v1969_v32  ;;  %v6937_v12 = vld [vmem:[%s6708_s10 + $0x88] sm:$0xff] }
 0x3a6   : > { %5211 = vmatpush1.bf16.msra.mxu0 %v5210_v60  ;;  %1531 = vmatprep.mubr.f32.mxu0 %v6292_v43  ;;  %v6926_v60 = vld [vmem:[%s6708_s10 + $0x80] sm:$0xff]  ;;  %v5224_v16 = vpack.c.bf16 %v1370_v14, %v1358_v13  ;;  %v6959_v21 = vld [vmem:[%s6708_s10 + $0x8] sm:$0xff]  ;;  %v5256_v53 = vpack.c.bf16 %v6871_v30, %v6866_v24  ;;  %v5258_v55 = vpack.c.bf16 %v6883_v40, %v6875_v34 }
 0x3a7   : > { %5213 = vmatprep.subr.bf16.mxu0 %v6749_v50  ;;  %1907 = vmatmul.mubr.f32.vlgmr.msra.gmra.mrb[0].mxu1 %v6820_v31  ;;  %v5248_v61 = vpack.c.bf16 %v1964_v44, %v1952_v46  ;;  %v5250_v59 = vpack.c.bf16 %v1970_v48, %v1958_v45  ;;  %v5220_v31 = vpack.c.bf16 %v1346_v0, %v1334_v63  ;;  %v2544_v52 = vand.u32 4294901760, %v6926_v60  ;;  %v6962_v46 = vld [vmem:[%s6708_s10 + $0x90] sm:$0xff] }
 0x3a8   : > { %5245 = vmatprep.subr.bf16.mxu1 %v5244_v47  ;;  %1912 = vmatprep.mubr.f32.mxu1 %v6292_v43  ;;  %v5222_v63 = vpack.c.bf16 %v1352_v6, %v1340_v1  ;;  %v2547_v0 = vand.u32 4294901760, %v6937_v12  ;;  %v6977_v1 = vld [vmem:[%s6708_s10 + $0x98] sm:$0xff]  ;;  %v6980_v6 = vld [vmem:[%s6708_s10 + $0x10] sm:$0xff]  ;;  %v5226_v13 = vpack.c.bf16 %v1376_v26, %v1364_v25  ;;  %v2499_v27 = vand.u32 4294901760, %v6959_v21 }
 0x3a9   : > { %1534 = vmatmul.mubr.f32.vlgmr.msra.gmra.mrb[0].mxu0 %v6784_v7  ;;  %5247 = vmatpush1.bf16.msra.mxu1 %v5246_v41  ;;  %v6973_v57 = vsub.f32 %v6926_v60, %v2544_v52  ;;  %v2550_v32 = vand.u32 4294901760, %v6962_v46  ;;  %v6995_v47 = vld [vmem:[%s6708_s10 + $0x18] sm:$0xff]  ;;  %v2553_v4 = vand.u32 4294901760, %v6977_v1  ;;  %v2502_v5 = vand.u32 4294901760, %v6980_v6 }
 0x3aa   : > { %5215 = vmatpush1.bf16.msra.mxu0 %v6757_v54  ;;  %1539 = vmatprep.mubr.f32.mxu0 %v6292_v43  ;;  %v6990_v14 = vsub.f32 %v6937_v12, %v2547_v0  ;;  %v8542_v41 = vand.u32 4294901760, %v6995_v47  ;;  %v7014_v45 = vsub.f32 %v6959_v21, %v2499_v27  ;;  %v7089_v19 = vpack.c.bf16 %v2547_v0, %v2544_v52 }
 0x3ab   : > { %5217 = vmatprep.subr.bf16.mxu0 %v6761_v56  ;;  %1918 = vmatmul.mubr.f32.gmra.mrb[2].mxu1 %v6850_v9  ;;  %v6952_v9 = vld [vmem:[%s6708_s10] sm:$0xff]  ;;  %v8541_v25 = vand.u32 4294901760, %v6973_v57  ;;  %v7019_v48 = vsub.f32 %v6962_v46, %v2550_v32  ;;  %v2562_v52 = vand.u32 4294901760, %v7092_v23  ;;  %v5274_v0 = vpack.c.bf16 %v1968_v8, %v1956_v2  ;;  %v7162_v8 = vld [vmem:[%s6708_s10 + $0x30] sm:$0xff]  ;;  %v7165_v46 = vld [vmem:[%s6708_s10 + $0x38] sm:$0xff] }
 0x3ac   : > { %5249 = vmatprep.subr.bf16.mxu1 %v5248_v61  ;;  %2028 = vmatprep.mubr.f32.mxu1 %v6292_v43  ;;  %v2496_v58 = vand.u32 4294901760, %v6952_v9  ;;  %v8540_v44 = vand.u32 4294901760, %v6990_v14  ;;  %v7028_v61 = vsub.f32 %v6977_v1, %v2553_v4 }
 0x3ad   : > { %1542 = vmatmul.mubr.f32.gmra.mrb[2].mxu0 %v6818_v28  ;;  %5251 = vmatpush1.bf16.msra.mxu1 %v5250_v59  ;;  %v7033_v59 = vsub.f32 %v6980_v6, %v2502_v5  ;;  %v2517_v6 = vand.u32 4294901760, %v7165_v46 }
 0x3ae   : > { %5219 = vmatpush1.bf16.msra.mxu0 %v6776_v3  ;;  %1620 = vmatprep.mubr.f32.mxu0 %v6292_v43  ;;  %v7006_v26 = vsub.f32 %v6952_v9, %v2496_v58  ;;  %v8548_v10 = vand.u32 4294901760, %v7028_v61  ;;  %v7126_v12 = vpack.c.bf16 %v2499_v27, %v2496_v58  ;;  %v7142_v9 = vpack.c.bf16 %v2553_v4, %v2550_v32 }
 0x3af   : > { %5221 = vmatprep.subr.bf16.mxu0 %v5220_v31  ;;  %5253 = vmatprep.subr.bf16.mxu1 %v5252_v11  ;;  %v7036_v31 = vld [vmem:[%s6708_s10 + $0xa0] sm:$0xff]  ;;  %v8547_v18 = vand.u32 4294901760, %v7033_v59 }
 0x3b0   : > { %2030 = vmatmul.mubr.f32.vlgmr.msra.gmra.mrb[0].mxu1 %v6770_v62  ;;  %v8554_v11 = vand.u32 4294901760, %v7006_v26 }
 0x3b1   : > { %1624 = vmatmul.mubr.f32.vlgmr.msra.gmra.mrb[0].mxu0 %v6803_v15  ;;  %5255 = vmatpush1.bf16.msra.mxu1 %v5254_v51  ;;  %v7050_v51 = vsub.f32 %v6995_v47, %v8542_v41  ;;  %v7075_v41 = vld [vmem:[%s6708_s10 + $0x28] sm:$0xff]  ;;  %v7149_v34 = vsub.f32 %v7033_v59, %v8547_v18 }
 0x3b2   : > { %5223 = vmatpush1.bf16.msra.mxu0 %v5222_v63  ;;  %1629 = vmatprep.mubr.f32.mxu0 %v6292_v43  ;;  %v2745_v63 = vsub.f32 %v6990_v14, %v8540_v44  ;;  %v2556_v44 = vand.u32 4294901760, %v7036_v31  ;;  %v2626_v24 = vsub.f32 %v7006_v26, %v8554_v11 }
 0x3b3   : > { %5225 = vmatprep.subr.bf16.mxu0 %v5224_v16  ;;  %2035 = vmatprep.mubr.f32.mxu1 %v6292_v43  ;;  %v8553_v16 = vand.u32 4294901760, %v7014_v45  ;;  %v8546_v30 = vand.u32 4294901760, %v7050_v51 }
 0x3b4   : > { %2037 = vmatmul.mubr.f32.gmra.mrb[2].mxu1 %v6805_v20  ;;  %5257 = vmatprep.subr.bf16.mxu1 %v5256_v53  ;;  %v8549_v53 = vand.u32 4294901760, %v7019_v48  ;;  %v7117_v60 = vsub.f32 %v7036_v31, %v2556_v44  ;;  %v2759_v31 = vsub.f32 %v7028_v61, %v8548_v10 }
 0x3b5   : > { %1633 = vmatmul.mubr.f32.gmra.mrb[2].mxu0 %v6830_v35  ;;  %5259 = vmatpush1.bf16.msra.mxu1 %v5258_v55  ;;  %v7060_v55 = vld [vmem:[%s6708_s10 + $0x20] sm:$0xff]  ;;  %v7154_v40 = vsub.f32 %v7050_v51, %v8546_v30 }
 0x3b6   : > { %5227 = vmatpush1.bf16.msra.mxu0 %v5226_v13  ;;  %1727 = vmatprep.mubr.f32.mxu0 %v6292_v43  ;;  %v5270_v13 = vpack.c.bf16 %v1944_v38, %v1932_v37  ;;  %v2746_v37 = vand.u32 4294901760, %v2745_v63  ;;  %v2633_v38 = vsub.f32 %v7014_v45, %v8553_v16  ;;  %v8544_v4 = vand.u32 4294901760, %v7117_v60 }
 0x3b7   : > { %5229 = vmatprep.subr.bf16.mxu0 %v6749_v50  ;;  %2123 = vmatprep.mubr.f32.mxu1 %v6292_v43  ;;  %v7039_v50 = vld [vmem:[%s6708_s10 + $0xa8] sm:$0xff]  ;;  %v8716_v63 = vand.u32 4294901760, %v6995_v47 }
 0x3b8   : > { %2126 = vmatmul.mubr.f32.vlgmr.msra.gmra.mrb[0].mxu1 %v6784_v7  ;;  %5261 = vmatprep.subr.bf16.mxu1 %v6855_v17  ;;  %v2738_v7 = vsub.f32 %v6973_v57, %v8541_v25  ;;  %v2559_v25 = vand.u32 4294901760, %v7039_v50  ;;  %v2634_v1 = vand.u32 4294901760, %v2633_v38  ;;  %v7214_v38 = vld [vmem:[%s6708_s10 + $0x40] sm:$0xff] }
 0x3b9   : > { %1729 = vmatmul.mubr.f32.vlgmr.msra.gmra.mrb[0].mxu0 %v6770_v62  ;;  %5263 = vmatpush1.bf16.msra.mxu1 %v6862_v22 }
 0x3ba   : > { %5231 = vmatpush1.bf16.msra.mxu0 %v6757_v54  ;;  %1734 = vmatprep.mubr.f32.mxu0 %v6292_v43  ;;  %v5268_v54 = vpack.c.bf16 %v1938_v36, %v1926_v33  ;;  %v2508_v33 = vand.u32 4294901760, %v7060_v55  ;;  %v7102_v36 = vld [vmem:[%s6708_s10 + $0xb8] sm:$0xff]  ;;  %v7200_v47 = vpack.c.bf16 %v2559_v25, %v2556_v44 }
 0x3bb   : > { %5233 = vmatprep.subr.bf16.mxu0 %v6761_v56  ;;  %2131 = vmatprep.mubr.f32.mxu1 %v6292_v43  ;;  %v5272_v56 = vpack.c.bf16 %v1962_v49, %v1950_v42  ;;  %v7112_v42 = vsub.f32 %v7019_v48, %v8549_v53  ;;  %v2511_v49 = vand.u32 4294901760, %v7075_v41  ;;  %v2565_v21 = vand.u32 4294901760, %v7102_v36 }
 0x3bc   : > { %2134 = vmatmul.mubr.f32.gmra.mrb[2].mxu1 %v6818_v28  ;;  %5265 = vmatprep.subr.bf16.mxu1 %v6869_v29  ;;  %v2739_v28 = vand.u32 4294901760, %v2738_v7  ;;  %v7159_v2 = vsub.f32 %v7060_v55, %v2508_v33  ;;  %v7179_v7 = vsub.f32 %v7092_v23, %v2562_v52  ;;  %v2514_v23 = vand.u32 4294901760, %v7162_v8 }
 0x3bd   : > { %1736 = vmatmul.mubr.f32.gmra.mrb[2].mxu0 %v6805_v20  ;;  %5267 = vmatpush1.bf16.msra.mxu1 %v6881_v39  ;;  %v2753_v27 = vand.u32 4294901760, %v7112_v42  ;;  %v7173_v32 = vsub.f32 %v7075_v41, %v2511_v49  ;;  %v7191_v41 = vld [vmem:[%s6708_s10 + $0xc8] sm:$0xff]  ;;  %v7246_v55 = vpack.c.bf16 %v2565_v21, %v2562_v52 }
 0x3be   : > { %5235 = vmatpush1.bf16.msra.mxu0 %v6776_v3  ;;  %1814 = vmatprep.mubr.f32.mxu0 %v6292_v43  ;;  %v7120_v3 = vsub.f32 %v7039_v50, %v2559_v25  ;;  %v7169_v58 = vpack.c.bf16 %v2746_v37, %v2739_v28  ;;  %v2641_v28 = vand.u32 4294901760, %v7149_v34  ;;  %v8557_v37 = vand.u32 4294901760, %v7191_v41  ;;  %v7217_v42 = vld [vmem:[%s6708_s10 + $0x48] sm:$0xff]  ;;  %v7232_v34 = vld [vmem:[%s6708_s10 + $0xd0] sm:$0xff] }
 0x3bf   : > { %2212 = vmatprep.mubr.f32.mxu1 %v6292_v43  ;;  %5269 = vmatprep.subr.bf16.mxu1 %v5268_v54  ;;  %v7185_v54 = vpack.c.bf16 %v8716_v63, %v2502_v5  ;;  %v2760_v5 = vand.u32 4294901760, %v2759_v31  ;;  %v8552_v25 = vand.u32 4294901760, %v7173_v32  ;;  %v8551_v31 = vand.u32 4294901760, %v7179_v7 }
 0x3c0   : > { %2216 = vmatmul.mubr.f32.vlgmr.msra.gmra.mrb[0].mxu1 %v6803_v15  ;;  %5285 = vmatprep.subr.bf16.mxu0 %v7089_v19  ;;  %v2627_v15 = vand.u32 4294901760, %v2626_v24  ;;  %v8543_v50 = vand.u32 4294901760, %v7120_v3  ;;  %v8545_v24 = vand.u32 4294901760, %v7159_v2  ;;  %v7240_v63 = vsub.f32 %v7162_v8, %v2514_v23 }
 0x3c1   : > { %1816 = vmatmul.mubr.f32.vlgmr.msra.gmra.mrb[0].mxu0 %v6770_v62  ;;  %5271 = vmatpush1.bf16.msra.mxu1 %v5270_v13  ;;  %v7188_v13 = vld [vmem:[%s6708_s10 + $0xc0] sm:$0xff]  ;;  %v8556_v8 = vand.u32 4294901760, %v7214_v38  ;;  %v2661_v30 = vsub.f32 %v7173_v32, %v8552_v25  ;;  %v7278_v18 = vpack.c.bf16 %v2517_v6, %v2514_v23  ;;  %v2780_v10 = vsub.f32 %v7179_v7, %v8551_v31 }
 0x3c2   : > { %1821 = vmatprep.mubr.f32.mxu0 %v6292_v43  ;;  %2221 = vmatprep.mubr.f32.mxu1 %v6292_v43  ;;  %v8558_v44 = vand.u32 4294901760, %v7188_v13 }
 0x3c3   : > { %5273 = vmatprep.subr.bf16.mxu1 %v5272_v56  ;;  %5287 = vmatpush3.bf16.msra.mxu0 %v7126_v12  ;;  %v7196_v56 = vsub.f32 %v7102_v36, %v2565_v21  ;;  %v7208_v36 = vpack.c.bf16 %v2634_v1, %v2627_v15  ;;  %v7229_v15 = vpack.c.bf16 %v2511_v49, %v2508_v33  ;;  %v8559_v21 = vand.u32 4294901760, %v7232_v34 }
 0x3c4   : > { %2225 = vmatmul.mubr.f32.gmra.mrb[2].mxu1 %v6830_v35  ;;  %5289 = vmatprep.subr.bf16.mxu0 %v7142_v9  ;;  %v2648_v35 = vand.u32 4294901760, %v7154_v40  ;;  %v7235_v40 = vld [vmem:[%s6708_s10 + $0xd8] sm:$0xff]  ;;  %v5320_v33 = vpack.c.bf16 %v2760_v5, %v2753_v27  ;;  %v2654_v49 = vsub.f32 %v7159_v2, %v8545_v24  ;;  %v7259_v52 = vsub.f32 %v7188_v13, %v8558_v44  ;;  %v7269_v27 = vld [vmem:[%s6708_s10 + $0x50] sm:$0xff] }
 0x3c5   : > { %1823 = vmatmul.mubr.f32.gmra.mrb[2].mxu0 %v6805_v20  ;;  %5275 = vmatpush1.bf16.msra.mxu1 %v5274_v0  ;;  %v2766_v0 = vsub.f32 %v7117_v60, %v8544_v4  ;;  %v8550_v1 = vand.u32 4294901760, %v7196_v56  ;;  %v8555_v4 = vand.u32 4294901760, %v7217_v42  ;;  %v7272_v5 = vld [vmem:[%s6708_s10 + $0x58] sm:$0xff]  ;;  %8719 = vst [vmem:[#allocation38_spill] sm:$0xff] %v7278_v18  ;;  %v7295_v23 = vsub.f32 %v7214_v38, %v8556_v8 }
 0x3c6   : > { %2319 = vmatprep.mubr.f32.mxu1 %v6292_v43  ;;  %5277 = vmatprep.subr.bf16.mxu1 %v6855_v17  ;;  %v2773_v17 = vsub.f32 %v7120_v3, %v8543_v50  ;;  %v7243_v50 = vsub.f32 %v7165_v46, %v2517_v6  ;;  %8717 = vst [vmem:[#allocation36_spill] sm:$0xff] %v7259_v52  ;;  %v8564_v46 = vand.u32 4294901760, %v7235_v40  ;;  %v8562_v31 = vand.u32 4294901760, %v7272_v5 }
 0x3c7   : > { %5291 = vmatpush3.bf16.msra.mxu0 %v7185_v54  ;;  %v2767_v24 = vand.u32 4294901760, %v2766_v0  ;;  %v2787_v53 = vsub.f32 %v7196_v56, %v8550_v1  ;;  %v8561_v0 = vand.u32 4294901760, %v7240_v63  ;;  %8720 = vst [vmem:[#allocation39_spill] sm:$0xff] %v7295_v23  ;;  %v7300_v6 = vsub.f32 %v7217_v42, %v8555_v4 }
 0x3c8   : > { %2321 = vmatmul.mubr.f32.vlgmr.msra.gmra.mrb[0].mxu1 %v6770_v62  ;;  %5293 = vmatprep.subr.bf16.mxu0 %v7200_v47  ;;  %v8563_v1 = vand.u32 4294901760, %v7269_v27  ;;  %v7310_v16 = vsub.f32 %v7232_v34, %v8559_v21  ;;  %v7315_v11 = vsub.f32 %v7235_v40, %v8564_v46  ;;  %v5322_v4 = vpack.c.bf16 %v2648_v35, %v2641_v28 }
 0x3c9   : > { %5279 = vmatpush1.bf16.msra.mxu1 %v6862_v22  ;;  %2326 = vmatprep.mubr.f32.mxu1 %v6292_v43  ;;  %v7264_v22 = vsub.f32 %v7191_v41, %v8557_v37  ;;  %8721 = vst [vmem:[#allocation40_spill] sm:$0xff] %v7300_v6  ;;  %v2655_v37 = vand.u32 4294901760, %v2654_v49  ;;  %v2662_v44 = vand.u32 4294901760, %v2661_v30  ;;  %v2788_v25 = vand.u32 4294901760, %v2787_v53 }
 0x3ca   : > { %5281 = vmatprep.subr.bf16.mxu1 %v6869_v29  ;;  %v2774_v29 = vand.u32 4294901760, %v2773_v17  ;;  %v8560_v17 = vand.u32 4294901760, %v7243_v50  ;;  %8722 = vst [vmem:[#allocation41_spill] sm:$0xff] %v7310_v16  ;;  %8723 = vst [vmem:[#allocation42_spill] sm:$0xff] %v7315_v11  ;;  %v2668_v21 = vsub.f32 %v7240_v63, %v8561_v0  ;;  %v8570_v30 = vand.u32 4294901760, %v7295_v23 }
 0x3cb   : > { %8718 = vst [vmem:[#allocation37_spill] sm:$0xff] %v7264_v22  ;;  %5295 = vmatpush3.bf16.msra.mxu0 %v7229_v15  ;;  %v8569_v28 = vand.u32 4294901760, %v7300_v6  ;;  %v7337_v53 = vsub.f32 %v7272_v5, %v8562_v31  ;;  %v8727_v35 = vand.u32 4294901760, %v7264_v22  ;;  %v8567_v49 = vand.u32 4294901760, %v7315_v11 }
 0x3cc   : > { %2328 = vmatmul.mubr.f32.gmra.mrb[2].mxu1 %v6805_v20  ;;  %5297 = vmatprep.subr.bf16.mxu0 %v7246_v55  ;;  %v5324_v8 = vpack.c.bf16 %v2774_v29, %v2767_v24  ;;  %v5326_v29 = vpack.c.bf16 %v2662_v44, %v2655_v37  ;;  %v2669_v0 = vand.u32 4294901760, %v2668_v21 }
 0x3cd   : > { %5283 = vmatpush1.bf16.msra.mxu1 %v6881_v39  ;;  %2406 = vmatprep.mubr.f32.mxu1 %v6292_v43  ;;  %v2675_v39 = vsub.f32 %v7243_v50, %v8560_v17  ;;  %8725 = vst [vmem:[#allocation44_spill] sm:$0xff] %v7337_v53  ;;  %v2801_v24 = vsub.f32 %v7264_v22, %v8727_v35 }
 0x3ce   : > { %5317 = vmatprep.subr.bf16.mxu1 %v7169_v58  ;;  %v2781_v58 = vand.u32 4294901760, %v2780_v10  ;;  %v8726_v10 = vand.u32 4294901760, %v7259_v52 }
 0x3cf   : > { %5299 = vmatpush3.bf16.msra.mxu0 %v7278_v18  ;;  %v2676_v31 = vand.u32 4294901760, %v2675_v39 }
 0x3d0   : > { %2408 = vmatmul.mubr.f32.vlgmr.msra.gmra.mrb[0].mxu1 %v6770_v62  ;;  %v7332_v62 = vsub.f32 %v7269_v27, %v8563_v1  ;;  %v5328_v17 = vpack.c.bf16 %v2788_v25, %v2781_v58  ;;  %v8565_v1 = vand.u32 4294901760, %v7337_v53 }
 0x3d1   : > { %2413 = vmatprep.mubr.f32.mxu1 %v6292_v43  ;;  %5319 = vmatpush3.bf16.msra.mxu1 %v7208_v36  ;;  %v2794_v43 = vsub.f32 %v7259_v52, %v8726_v10  ;;  %v8568_v36 = vand.u32 4294901760, %v7310_v16  ;;  %v2689_v10 = vsub.f32 %v7300_v6, %v8569_v28  ;;  %v5330_v44 = vpack.c.bf16 %v2676_v31, %v2669_v0 }
 0x3d2   : > { %8724 = vst [vmem:[#allocation43_spill] sm:$0xff] %v7332_v62  ;;  %5321 = vmatprep.subr.bf16.mxu1 %v5320_v33  ;;  %v2682_v33 = vsub.f32 %v7295_v23, %v8570_v30  ;;  %v8566_v35 = vand.u32 4294901760, %v7332_v62  ;;  %v8728_v52 = vand.u32 4294901760, %v7188_v13 }
 0x3d3   : > { %v2795_v46 = vand.u32 4294901760, %v2794_v43  ;;  %v2808_v25 = vsub.f32 %v7310_v16, %v8568_v36  ;;  %v2690_v21 = vand.u32 4294901760, %v2689_v10 }
 0x3d4   : > { %2415 = vmatmul.mubr.f32.gmra.mrb[2].mxu1 %v6805_v20  ;;  %v2802_v20 = vand.u32 4294901760, %v2801_v24  ;;  %v2683_v37 = vand.u32 4294901760, %v2682_v33  ;;  %v2696_v39 = vsub.f32 %v7332_v62, %v8566_v35  ;;  %v2446_v35 = vld [vmem:[%s6708_s10 + $0x78] sm:$0xff] }
 0x3d5   : > { %5323 = vmatpush3.bf16.msra.mxu1 %v5322_v4  ;;  %v2815_v4 = vsub.f32 %v7315_v11, %v8567_v49  ;;  %v2809_v43 = vand.u32 4294901760, %v2808_v25  ;;  %v7377_v25 = vld [vmem:[%s6708_s10 + $0x60] sm:$0xff]  ;;  %v2541_v36 = vand.u32 4294901760, %v2446_v35 }
 0x3d6   : > { %5325 = vmatprep.subr.bf16.mxu1 %v5324_v8  ;;  %v2703_v8 = vsub.f32 %v7337_v53, %v8565_v1  ;;  %v5332_v58 = vpack.c.bf16 %v2802_v20, %v2795_v46  ;;  %v5334_v31 = vpack.c.bf16 %v2690_v21, %v2683_v37  ;;  %v2697_v0 = vand.u32 4294901760, %v2696_v39  ;;  %v7369_v1 = vld [vmem:[%s6708_s10 + $0xe0] sm:$0xff] }
 0x3d7   : > { %v2816_v24 = vand.u32 4294901760, %v2815_v4  ;;  %v2580_v46 = vand.u32 4294901760, %v7369_v1  ;;  %v2444_v4 = vld [vmem:[%s6708_s10 + $0x68] sm:$0xff]  ;;  %v7418_v16 = vsub.f32 %v2446_v35, %v2541_v36 }
 0x3d8   : > { %v2535_v37 = vand.u32 4294901760, %v2444_v4 }
 0x3d9   : > { %5327 = vmatpush3.bf16.msra.mxu1 %v5326_v29  ;;  %v2704_v29 = vand.u32 4294901760, %v2703_v8  ;;  %v5336_v33 = vpack.c.bf16 %v2816_v24, %v2809_v43  ;;  %v7382_v21 = vsub.f32 %v7369_v1, %v2580_v46  ;;  %v2461_v43 = vld [vmem:[%s6708_s10 + $0xf0] sm:$0xff]  ;;  %v2462_v24 = vld [vmem:[%s6708_s10 + $0xf8] sm:$0xff] }
 0x3da   : > { %5329 = vmatprep.subr.bf16.mxu1 %v5328_v17  ;;  %v7372_v17 = vld [vmem:[%s6708_s10 + $0xe8] sm:$0xff] }
 0x3db   : > { %v5338_v10 = vpack.c.bf16 %v2704_v29, %v2697_v0  ;;  %v2583_v20 = vand.u32 4294901760, %v7372_v17  ;;  %v2586_v29 = vand.u32 4294901760, %v2461_v43 }
 0x3dd   : > { %5331 = vmatpush3.bf16.msra.mxu1 %v5330_v44  ;;  %v2532_v44 = vand.u32 4294901760, %v7377_v25  ;;  %v7385_v39 = vsub.f32 %v7372_v17, %v2583_v20  ;;  %v7406_v28 = vsub.f32 %v2461_v43, %v2586_v29 }
 0x3de   : > { %5333 = vmatprep.subr.bf16.mxu1 %v5332_v58  ;;  %v7390_v58 = vsub.f32 %v2444_v4, %v2535_v37 }
 0x3df   : > { %v7388_v8 = vsub.f32 %v7377_v25, %v2532_v44  ;;  %v8582_v0 = vand.u32 4294901760, %v7385_v39 }
 0x3e0   : > { %v8590_v17 = vand.u32 4294901760, %v7390_v58 }
 0x3e1   : > { %5335 = vmatpush3.bf16.msra.mxu1 %v5334_v31  ;;  %v8579_v31 = vand.u32 4294901760, %v7382_v21  ;;  %v8587_v1 = vand.u32 4294901760, %v7388_v8  ;;  %v2829_v4 = vsub.f32 %v7385_v39, %v8582_v0  ;;  %v8593_v0 = vand.u32 4294901760, %v7406_v28 }
 0x3e2   : > { %5337 = vmatprep.subr.bf16.mxu1 %v5336_v33  ;;  %v2589_v33 = vand.u32 4294901760, %v2462_v24  ;;  %v2717_v62 = vsub.f32 %v7390_v58, %v8590_v17  ;;  %v8729_v17 = vand.u32 4294901760, %v7191_v41 }
 0x3e3   : > { %v2822_v25 = vsub.f32 %v7382_v21, %v8579_v31  ;;  %v2710_v53 = vsub.f32 %v7388_v8, %v8587_v1  ;;  %v2830_v6 = vand.u32 4294901760, %v2829_v4  ;;  %v8591_v1 = vand.u32 4294901760, %v7418_v16 }
 0x3e4   : > { %v7408_v30 = vsub.f32 %v2462_v24, %v2589_v33  ;;  %v2718_v23 = vand.u32 4294901760, %v2717_v62  ;;  %v8731_v4 = vand.u32 4294901760, %v7214_v38 }
 0x3e5   : > { %5339 = vmatpush3.bf16.msra.mxu1 %v5338_v10  ;;  %v2445_v10 = vld [vmem:[%s6708_s10 + $0x70] sm:$0xff]  ;;  %v2823_v31 = vand.u32 4294901760, %v2822_v25  ;;  %v2711_v24 = vand.u32 4294901760, %v2710_v53  ;;  %v2836_v25 = vsub.f32 %v7406_v28, %v8593_v0  ;;  %v8732_v53 = vand.u32 4294901760, %v7217_v42 }
 0x3e6   : > { %v2538_v49 = vand.u32 4294901760, %v2445_v10  ;;  %v8592_v43 = vand.u32 4294901760, %v7408_v30  ;;  %v2731_v38 = vsub.f32 %v7418_v16, %v8591_v1 }
 0x3e7   : > { %v5340_v35 = vpack.c.bf16 %v2830_v6, %v2823_v31  ;;  %v7437_v62 = vpack.c.bf16 %v8732_v53, %v8731_v4  ;;  %v5342_v22 = vpack.c.bf16 %v2718_v23, %v2711_v24  ;;  %v2837_v6 = vand.u32 4294901760, %v2836_v25 }
 0x3e8   : > { %v7416_v11 = vsub.f32 %v2445_v10, %v2538_v49  ;;  %v7428_v10 = vpack.c.bf16 %v8729_v17, %v8728_v52  ;;  %v2843_v13 = vsub.f32 %v7408_v30, %v8592_v43  ;;  %v8735_v31 = vand.u32 4294901760, %v7232_v34 }
 0x3e9   : > { %8733 = vst [vmem:[#allocation46_spill] sm:$0xff] %v7437_v62  ;;  %5341 = vmatprep.subr.bf16.mxu1 %v5340_v35  ;;  %v8736_v17 = vand.u32 4294901760, %v7235_v40  ;;  %v2732_v4 = vand.u32 4294901760, %v2731_v38  ;;  %v8738_v35 = vand.u32 4294901760, %v7269_v27  ;;  %v8739_v25 = vand.u32 4294901760, %v7272_v5 }
 0x3ea   : > { %8730 = vst [vmem:[#allocation45_spill] sm:$0xff] %v7428_v10  ;;  %v8734_v41 = vand.u32 4294901760, %v7416_v11  ;;  %5301 = vmatprep.subr.bf16.mxu0 %v7428_v10  ;;  %5343 = vmatpush3.bf16.msra.mxu1 %v5342_v22  ;;  %v2844_v42 = vand.u32 4294901760, %v2843_v13  ;;  %v7464_v34 = vpack.c.bf16 %v2583_v20, %v2580_v46  ;;  %v7467_v40 = vpack.c.bf16 %v2535_v37, %v2532_v44 }
 0x3eb   : > { %5303 = vmatpush3.bf16.msra.mxu0 %v7437_v62  ;;  %v7454_v24 = vpack.c.bf16 %v8736_v17, %v8735_v31  ;;  %v7471_v22 = vpack.c.bf16 %v2589_v33, %v2586_v29  ;;  %v7473_v27 = vpack.c.bf16 %v2541_v36, %v2538_v49  ;;  %v5348_v5 = vpack.c.bf16 %v6990_v14, %v6973_v57  ;;  %v7491_v33 = vld [vmem:[%s6706_s20] sm:$0xf] }
 0x3ec   : > { %v2724_v52 = vsub.f32 %v7416_v11, %v8734_v41  ;;  %v5344_v53 = vpack.c.bf16 %v2844_v42, %v2837_v6  ;;  %v7460_v41 = vpack.c.bf16 %v8739_v25, %v8738_v35  ;;  %8741 = vst [vmem:[#allocation49_spill] sm:$0xff] %v7464_v34  ;;  %8742 = vst [vmem:[#allocation50_spill] sm:$0xff] %v7467_v40  ;;  %v1210_v49 = vlaneseq }
 0x3ed   : > { %8737 = vst [vmem:[#allocation47_spill] sm:$0xff] %v7454_v24  ;;  %5305 = vmatprep.subr.bf16.mxu0 %v7454_v24  ;;  %8743 = vst [vmem:[#allocation51_spill] sm:$0xff] %v7471_v22  ;;  %v5354_v20 = vpack.c.bf16 %v7050_v51, %v7033_v59 }
 0x3ee   : > { %v2725_v23 = vand.u32 4294901760, %v2724_v52  ;;  %8740 = vst [vmem:[#allocation48_spill] sm:$0xff] %v7460_v41  ;;  %5345 = vmatprep.subr.bf16.mxu1 %v5344_v53  ;;  %v7487_v37 = vshrl.u32 %v1210_v49, 7 }
 0x3ef   : > { %5307 = vmatpush3.bf16.msra.mxu0 %v7460_v41 }
 0x3f0   : > { %v5346_v1 = vpack.c.bf16 %v2732_v4, %v2725_v23  ;;  %5309 = vmatprep.subr.bf16.mxu0 %v7464_v34  ;;  %v1212_v29 = vsub.s32 0, %v7487_v37 }
 0x3f2   : > { %5347 = vmatpush3.bf16.msra.mxu1 %v5346_v1  ;;  %v1216_v1 = vsub.s32 1, %v7487_v37  ;;  %v1213_v13 = vrot.slane %v7491_v33, %v1212_v29 }
 0x3f3   : > { %5381 = vmatprep.subr.bf16.mxu1 %v7089_v19  ;;  %5311 = vmatpush3.bf16.msra.mxu0 %v7467_v40 }
 0x3f4   : > { %5313 = vmatprep.subr.bf16.mxu0 %v7471_v22  ;;  %v1217_v52 = vrot.slane %v7491_v33, %v1216_v1 }
 0x3f7   : > { %5315 = vmatpush3.bf16.msra.mxu0 %v7473_v27 }
 0x3f8   : > { %5349 = vmatprep.subr.bf16.mxu0 %v5348_v5 }
 0x494   : > { %v1817_v6 = vpop.f32.mrb[0].mxu0 }
 0x495   : > { %v5680_v38 = vadd.f32 %v1817_v6, %v1213_v13  ;;  %v1819_v42 = vpop.f32.mrb[1].mxu0 }
 0x496   : > { %v5681_v23 = vadd.f32 %v1819_v42, %v1217_v52 }
 0x497   : > { %v2421_v31 = vmax.f32 %v5680_v38, 0.0 }
 0x498   : > { %v2422_v17 = vmax.f32 %v5681_v23, 0.0  ;;  %v1824_v4 = vpop.f32.mrb[2].mxu0 }
 0x499   : > { %v7496_v53 = vand.u32 4294901760, %v2421_v31  ;;  %v5682_v35 = vadd.f32 %v1824_v4, %v1213_v13  ;;  %v1826_v25 = vpop.f32.mrb[3].mxu0 }
 0x49a   : > { %v7498_v5 = vand.u32 4294901760, %v2422_v17  ;;  %v5683_v49 = vadd.f32 %v1826_v25, %v1217_v52  ;;  %v5350_v25 = vpack.c.bf16 %v7014_v45, %v7006_v26 }
 0x49b   : > { %8744 = vst [vmem:[#allocation52_spill] sm:$0xff] %v7496_v53  ;;  %v7501_v43 = vsub.f32 %v2421_v31, %v7496_v53  ;;  %v2425_v29 = vmax.f32 %v5682_v35, 0.0 }
 0x49c   : > { %v2592_v1 = vsub.f32 %v2422_v17, %v7498_v5  ;;  %v2426_v0 = vmax.f32 %v5683_v49, 0.0  ;;  %2847 = vmatprep.mubr.f32.mxu1 %v7498_v5 }
 0x49d   : > { %v8596_v6 = vand.u32 4294901760, %v7501_v43  ;;  %v7506_v38 = vand.u32 4294901760, %v2425_v29  ;;  %2849 = vmatmul.mubr.f32.vlgmr.msra.gmra.mrb[4].mxu1 %v7496_v53 }
 0x49e   : > { %v7509_v13 = vand.u32 4294901760, %v2426_v0  ;;  %5383 = vmatpush3.bf16.msra.mxu1 %v7126_v12  ;;  %v2593_v52 = vand.u32 4294901760, %v2592_v1 }
 0x49f   : > { %8745 = vst [vmem:[#allocation53_spill] sm:$0xff] %v7506_v38  ;;  %v2600_v42 = vsub.f32 %v7501_v43, %v8596_v6  ;;  %v7516_v23 = vsub.f32 %v2425_v29, %v7506_v38  ;;  %5385 = vmatprep.subr.bf16.mxu1 %v7142_v9  ;;  %v8755_v6 = vld [vmem:[#allocation36_spill] sm:$0xff] }
 0x4a0   : > { %8746 = vst [vmem:[#allocation54_spill] sm:$0xff] %v7509_v13  ;;  %v7520_v31 = vsub.f32 %v2426_v0, %v7509_v13  ;;  %2854 = vmatprep.mubr.f32.mxu1 %v7509_v13  ;;  %v2594_v17 = vsub.f32 %v2592_v1, %v2593_v52  ;;  %v5352_v0 = vpack.c.bf16 %v7028_v61, %v7019_v48 }
 0x4a1   : > { %2856 = vmatmul.mubr.f32.gmra.mrb[6].mxu1 %v7506_v38  ;;  %v8594_v4 = vand.u32 4294901760, %v7516_v23  ;;  %v2601_v29 = vand.u32 4294901760, %v2600_v42 }
 0x4a2   : > { %5387 = vmatpush3.bf16.msra.mxu1 %v7185_v54  ;;  %3107 = vmatprep.mubr.f32.mxu1 %v2593_v52  ;;  %v2595_v35 = vand.u32 4294901760, %v2594_v17  ;;  %v8595_v49 = vand.u32 4294901760, %v7520_v31 }
 0x4a3   : > { %5389 = vmatprep.subr.bf16.mxu1 %v7200_v47  ;;  %v2615_v36 = vsub.f32 %v7516_v23, %v8594_v4  ;;  %v7535_v44 = vpop.f32.mrb[0].mxu1  ;;  %v5356_v4 = vpack.c.bf16 %v7120_v3, %v7117_v60 }
 0x4a4   : > { %8747 = vst [vmem:[#allocation55_spill] sm:$0xff] %v7535_v44  ;;  %2596 = vmatprep.mubr.f32.mxu0 %v2595_v35  ;;  %v2609_v52 = vsub.f32 %v7520_v31, %v8595_v49  ;;  %v7540_v17 = vpop.f32.mrb[1].mxu1  ;;  %v8759_v44 = vld [vmem:[#allocation39_spill] sm:$0xff] }
 0x4a5   : > { %8748 = vst [vmem:[#allocation56_spill] sm:$0xff] %v7540_v17  ;;  %2602 = vmatmul.mubr.f32.vlgmr.msra.gmra.mrb[4].mxu0 %v2601_v29  ;;  %v2616_v35 = vand.u32 4294901760, %v2615_v36  ;;  %v5360_v36 = vpack.c.bf16 %v7196_v56, %v7179_v7 }
 0x4a6   : > { %5351 = vmatpush3.bf16.msra.mxu0 %v5350_v25  ;;  %5391 = vmatpush3.bf16.msra.mxu1 %v7229_v15  ;;  %v2610_v42 = vand.u32 4294901760, %v2609_v52  ;;  %v5358_v25 = vpack.c.bf16 %v7173_v32, %v7159_v2  ;;  %v7561_v52 = vld [vmem:[%s6708_s10 + $0x158] sm:$0xff] }
 0x4a7   : > { %5353 = vmatprep.subr.bf16.mxu0 %v5352_v0  ;;  %5393 = vmatprep.subr.bf16.mxu1 %v7246_v55  ;;  %v7548_v49 = vpop.f32.mrb[2].mxu1  ;;  %v7558_v0 = vld [vmem:[%s6708_s10 + $0x150] sm:$0xff]  ;;  %8752 = vst [vmem:[#allocation60_spill] sm:$0xff] %v7561_v52 }
 0x4a8   : > { %8749 = vst [vmem:[#allocation57_spill] sm:$0xff] %v7548_v49  ;;  %2611 = vmatprep.mubr.f32.mxu0 %v2610_v42  ;;  %v7550_v29 = vpop.f32.mrb[3].mxu1  ;;  %8751 = vst [vmem:[#allocation59_spill] sm:$0xff] %v7558_v0  ;;  %v7570_v42 = vld [vmem:[%s6708_s10 + $0x1e0] sm:$0xff]  ;;  %v8761_v13 = vand.u32 4294901760, %v7558_v0 }
 0x4a9   : > { %8750 = vst [vmem:[#allocation58_spill] sm:$0xff] %v7550_v29  ;;  %2617 = vmatmul.mubr.f32.gmra.mrb[6].mxu0 %v2616_v35  ;;  %8753 = vst [vmem:[#allocation61_spill] sm:$0xff] %v7570_v42  ;;  %v7573_v35 = vld [vmem:[%s6708_s10 + $0x1e8] sm:$0xff]  ;;  %v7579_v49 = vld [vmem:[%s6708_s10 + $0x160] sm:$0xff] }
 0x4aa   : > { %5355 = vmatpush3.bf16.msra.mxu0 %v5354_v20  ;;  %5395 = vmatpush3.bf16.msra.mxu1 %v7278_v18  ;;  %v5362_v20 = vpack.c.bf16 %v7243_v50, %v7240_v63  ;;  %8754 = vst [vmem:[#allocation62_spill] sm:$0xff] %v7573_v35  ;;  %8757 = vst [vmem:[#allocation36_spill] sm:$0xff] %v7579_v49  ;;  %v7582_v29 = vld [vmem:[%s6708_s10 + $0x168] sm:$0xff]  ;;  %v7592_v53 = vsub.f32 %v7558_v0, %v8761_v13  ;;  %v7611_v0 = vld [vmem:[%s6708_s10 + $0x170] sm:$0xff]  ;;  %v8776_v18 = vand.u32 4294901760, %v7579_v49 }
 0x4ab   : > { %2991 = vmatprep.mubr.f32.mxu0 %v2592_v1  ;;  %5357 = vmatprep.subr.bf16.mxu0 %v5356_v4  ;;  %v8766_v1 = vld [vmem:[#allocation41_spill] sm:$0xff]  ;;  %8768 = vst [vmem:[#allocation66_spill] sm:$0xff] %v7611_v0  ;;  %v8770_v4 = vand.u32 4294901760, %v7570_v42 }
 0x4ac   : > { %5397 = vmatprep.subr.bf16.mxu1 %v7428_v10  ;;  %v7640_v13 = vld [vmem:[%s6708_s10 + $0x180] sm:$0xff] }
 0x4ae   : > { %5359 = vmatpush3.bf16.msra.mxu0 %v5358_v25  ;;  %5399 = vmatpush3.bf16.msra.mxu1 %v7437_v62  ;;  %v8756_v25 = vld [vmem:[#allocation37_spill] sm:$0xff]  ;;  %v7601_v62 = vld [vmem:[%s6708_s10 + $0x1f0] sm:$0xff] }
 0x4af   : > { %5361 = vmatprep.subr.bf16.mxu0 %v5360_v36  ;;  %5401 = vmatprep.subr.bf16.mxu1 %v7454_v24  ;;  %v5364_v46 = vpack.c.bf16 %v8756_v25, %v8755_v6  ;;  %8758 = vst [vmem:[#allocation37_spill] sm:$0xff] %v7582_v29  ;;  %v8760_v36 = vld [vmem:[#allocation40_spill] sm:$0xff]  ;;  %v8762_v24 = vand.u32 4294901760, %v7561_v52  ;;  %8764 = vst [vmem:[#allocation64_spill] sm:$0xff] %v7601_v62 }
 0x4b0   : > { %v5366_v38 = vpack.c.bf16 %v8760_v36, %v8759_v44  ;;  %v8775_v44 = vld [vmem:[#allocation44_spill] sm:$0xff] }
 0x4b1   : > { %v7597_v17 = vsub.f32 %v7561_v52, %v8762_v24  ;;  %v7614_v24 = vld [vmem:[%s6708_s10 + $0x178] sm:$0xff]  ;;  %v7619_v52 = vsub.f32 %v7570_v42, %v8770_v4 }
 0x4b2   : > { %5363 = vmatpush3.bf16.msra.mxu0 %v5362_v20  ;;  %5403 = vmatpush3.bf16.msra.mxu1 %v7460_v41  ;;  %v7604_v20 = vld [vmem:[%s6708_s10 + $0x1f8] sm:$0xff]  ;;  %v8767_v41 = vld [vmem:[#allocation42_spill] sm:$0xff]  ;;  %8769 = vst [vmem:[#allocation67_spill] sm:$0xff] %v7614_v24 }
 0x4b3   : > { %8763 = vst [vmem:[#allocation63_spill] sm:$0xff] %v7597_v17  ;;  %8765 = vst [vmem:[#allocation65_spill] sm:$0xff] %v7604_v20  ;;  %5365 = vmatprep.subr.bf16.mxu0 %v5364_v46  ;;  %5405 = vmatprep.subr.bf16.mxu1 %v7464_v34  ;;  %v5368_v36 = vpack.c.bf16 %v8767_v41, %v8766_v1  ;;  %v8772_v46 = vand.u32 4294901760, %v7573_v35  ;;  %v8774_v1 = vld [vmem:[#allocation43_spill] sm:$0xff]  ;;  %v8777_v41 = vand.u32 4294901760, %v7582_v29  ;;  %v8782_v42 = vand.u32 4294901760, %v7604_v20 }
 0x4b4   : > { %8771 = vst [vmem:[#allocation68_spill] sm:$0xff] %v7619_v52  ;;  %v5370_v10 = vpack.c.bf16 %v8775_v44, %v8774_v1  ;;  %v8783_v44 = vpack.c.bf16 %v7385_v39, %v7382_v21 }
 0x4b5   : > { %v7624_v34 = vsub.f32 %v7573_v35, %v8772_v46  ;;  %v7636_v46 = vsub.f32 %v7579_v49, %v8776_v18  ;;  %v7648_v35 = vsub.f32 %v7582_v29, %v8777_v41  ;;  %v8778_v18 = vand.u32 4294901760, %v7592_v53 }
 0x4b6   : > { %5367 = vmatpush3.bf16.msra.mxu0 %v5366_v38  ;;  %5407 = vmatpush3.bf16.msra.mxu1 %v7467_v40  ;;  %v7643_v38 = vld [vmem:[%s6708_s10 + $0x188] sm:$0xff]  ;;  %v8781_v29 = vand.u32 4294901760, %v7601_v62  ;;  %v8787_v41 = vand.u32 4294901760, %v7619_v52 }
 0x4b7   : > { %8773 = vst [vmem:[#allocation69_spill] sm:$0xff] %v7624_v34  ;;  %5369 = vmatprep.subr.bf16.mxu0 %v5368_v36  ;;  %5409 = vmatprep.subr.bf16.mxu1 %v7471_v22  ;;  %v8779_v36 = vand.u32 4294901760, %v7597_v17  ;;  %v7659_v22 = vld [vmem:[%s6708_s10 + $0x100] sm:$0xff]  ;;  %v7662_v40 = vld [vmem:[%s6708_s10 + $0x108] sm:$0xff]  ;;  %v7674_v17 = vsub.f32 %v7604_v20, %v8782_v42  ;;  %v8792_v52 = vand.u32 4294901760, %v7648_v35  ;;  %v8797_v42 = vand.u32 4294901760, %v6990_v14 }
 0x4b8   : > { %v7669_v4 = vsub.f32 %v7601_v62, %v8781_v29  ;;  %v7685_v29 = vld [vmem:[%s6708_s10 + $0x190] sm:$0xff]  ;;  %v7707_v62 = vld [vmem:[%s6708_s10 + $0x198] sm:$0xff] }
 0x4b9   : > { %v7656_v49 = vpack.c.bf16 %v8779_v36, %v8778_v18  ;;  %v8785_v18 = vand.u32 4294901760, %v7614_v24 }
 0x4ba   : > { %5371 = vmatpush3.bf16.msra.mxu0 %v5370_v10  ;;  %5411 = vmatpush3.bf16.msra.mxu1 %v7473_v27  ;;  %v8784_v10 = vand.u32 4294901760, %v7611_v0 }
 0x4bb   : > { %8780 = vst [vmem:[#allocation43_spill] sm:$0xff] %v7656_v49  ;;  %5373 = vmatprep.subr.bf16.mxu0 %v8783_v44  ;;  %5445 = vmatprep.subr.bf16.mxu1 %v7089_v19  ;;  %v7696_v36 = vsub.f32 %v7614_v24, %v8785_v18  ;;  %v8788_v44 = vand.u32 4294901760, %v7624_v34  ;;  %v8791_v24 = vand.u32 4294901760, %v7636_v46  ;;  %v8798_v18 = vand.u32 4294901760, %v7640_v13 }
 0x4bc   : > { %v7691_v49 = vsub.f32 %v7611_v0, %v8784_v10  ;;  %v8790_v10 = vand.u32 4294901760, %v7501_v43 }
 0x4bd   : > { %8786 = vst [vmem:[#allocation70_spill] sm:$0xff] %v7696_v36  ;;  %v7702_v20 = vpack.c.bf16 %v8788_v44, %v8787_v41  ;;  %v7717_v34 = vpack.c.bf16 %v8792_v52, %v8791_v24  ;;  %v8794_v41 = vpack.c.bf16 %v7390_v58, %v7388_v8  ;;  %v8795_v44 = vand.u32 4294901760, %v7520_v31 }
 0x4be   : > { %3111 = vmatmul.mubr.f32.vlgmr.msra.gmra.mrb[8].mxu1 %v8790_v10  ;;  %v8796_v10 = vand.u32 4294901760, %v6973_v57  ;;  %v7731_v0 = vsub.f32 %v7640_v13, %v8798_v18  ;;  %v8800_v52 = vand.u32 4294901760, %v7643_v38  ;;  %v8802_v57 = vpack.c.bf16 %v7408_v30, %v7406_v28 }
 0x4bf   : > { %8789 = vst [vmem:[#allocation71_spill] sm:$0xff] %v7702_v20  ;;  %8793 = vst [vmem:[#allocation72_spill] sm:$0xff] %v7717_v34  ;;  %5375 = vmatpush3.bf16.msra.mxu0 %v8794_v41  ;;  %3118 = vmatprep.mubr.f32.mxu1 %v8795_v44  ;;  %v8803_v44 = vand.u32 4294901760, %v7669_v4  ;;  %v8810_v18 = vand.u32 4294901760, %v7516_v23 }
 0x4c0   : > { %v5412_v19 = vpack.c.bf16 %v8797_v42, %v8796_v10  ;;  %8799 = vst [vmem:[#allocation73_spill] sm:$0xff] %v7731_v0  ;;  %v7736_v24 = vsub.f32 %v7643_v38, %v8800_v52  ;;  %5447 = vmatpush3.bf16.msra.mxu1 %v7126_v12  ;;  %5377 = vmatprep.subr.bf16.mxu0 %v8802_v57  ;;  %v8804_v10 = vand.u32 4294901760, %v7674_v17  ;;  %v8806_v12 = vand.u32 4294901760, %v7659_v22  ;;  %v7764_v42 = vld [vmem:[%s6708_s10 + $0x110] sm:$0xff] }
 0x4c1   : > { %5449 = vmatprep.subr.bf16.mxu1 %v7142_v9  ;;  %v8808_v57 = vand.u32 4294901760, %v7662_v40 }
 0x4c2   : > { %8801 = vst [vmem:[#allocation74_spill] sm:$0xff] %v7736_v24  ;;  %v7750_v52 = vpack.c.bf16 %v8804_v10, %v8803_v44  ;;  %v7756_v41 = vsub.f32 %v7659_v22, %v8806_v12  ;;  %3122 = vmatmul.mubr.f32.gmra.mrb[10].mxu1 %v8810_v18  ;;  %v8811_v44 = vand.u32 4294901760, %v7691_v49  ;;  %v8812_v10 = vand.u32 4294901760, %v7696_v36 }
 0x4c3   : > { %v7761_v14 = vsub.f32 %v7662_v40, %v8808_v57  ;;  %v8814_v12 = vpack.c.bf16 %v7418_v16, %v7416_v11  ;;  %3399 = vmatprep.mubr.f32.mxu1 %v7498_v5  ;;  %v8815_v57 = vand.u32 4294901760, %v7006_v26  ;;  %v8628_v18 = vand.u32 4294901760, %v7731_v0 }
 0x4c4   : > { %8805 = vst [vmem:[#allocation75_spill] sm:$0xff] %v7750_v52  ;;  %8807 = vst [vmem:[#allocation76_spill] sm:$0xff] %v7756_v41  ;;  %v7772_v9 = vpack.c.bf16 %v8812_v10, %v8811_v44  ;;  %v8816_v52 = vand.u32 4294901760, %v7014_v45  ;;  %v8627_v20 = vand.u32 4294901760, %v7736_v24  ;;  %5451 = vmatpush3.bf16.msra.mxu1 %v7185_v54  ;;  %v8817_v44 = vand.u32 4294901760, %v7019_v48 }
 0x4c5   : > { %8809 = vst [vmem:[#allocation77_spill] sm:$0xff] %v7761_v14  ;;  %5379 = vmatpush3.bf16.msra.mxu0 %v8814_v12  ;;  %v8818_v10 = vand.u32 4294901760, %v7028_v61  ;;  %v8819_v12 = vand.u32 4294901760, %v7685_v29  ;;  %v8821_v45 = vand.u32 4294901760, %v7707_v62  ;;  %5453 = vmatprep.subr.bf16.mxu1 %v7200_v47  ;;  %v1224_v48 = vsub.s32 3, %v7487_v37 }
 0x4c6   : > { %8813 = vst [vmem:[#allocation78_spill] sm:$0xff] %v7772_v9  ;;  %v5414_v34 = vpack.c.bf16 %v8816_v52, %v8815_v57  ;;  %5413 = vmatprep.subr.bf16.mxu0 %v5412_v19  ;;  %v8629_v61 = vand.u32 4294901760, %v7756_v41  ;;  %v7805_v57 = vld [vmem:[%s6708_s10 + $0x118] sm:$0xff]  ;;  %v8825_v47 = vand.u32 4294901760, %v7117_v60  ;;  %v3656_v19 = vsub.f32 %v7731_v0, %v8628_v18 }
 0x4c7   : > { %v5416_v9 = vpack.c.bf16 %v8818_v10, %v8817_v44  ;;  %v7792_v26 = vsub.f32 %v7685_v29, %v8819_v12  ;;  %v7797_v52 = vsub.f32 %v7707_v62, %v8821_v45  ;;  %v8823_v44 = vand.u32 4294901760, %v7033_v59  ;;  %v7824_v59 = vld [vmem:[%s6708_s10 + $0x1a0] sm:$0xff] }
 0x4c8   : > { %2994 = vmatmul.mubr.f32.vlgmr.msra.gmra.mrb[8].mxu0 %v7501_v43  ;;  %v8824_v10 = vand.u32 4294901760, %v7050_v51  ;;  %v8826_v45 = vand.u32 4294901760, %v7120_v3  ;;  %v3663_v43 = vsub.f32 %v7736_v24, %v8627_v20  ;;  %v7827_v51 = vld [vmem:[%s6708_s10 + $0x1a8] sm:$0xff]  ;;  %5455 = vmatpush3.bf16.msra.mxu1 %v7229_v15  ;;  %v3544_v15 = vsub.f32 %v7756_v41, %v8629_v61 }
 0x4c9   : > { %8820 = vst [vmem:[#allocation79_spill] sm:$0xff] %v7792_v26  ;;  %8822 = vst [vmem:[#allocation80_spill] sm:$0xff] %v7797_v52  ;;  %3000 = vmatprep.mubr.f32.mxu0 %v7520_v31  ;;  %5415 = vmatpush3.bf16.msra.mxu0 %v5414_v34  ;;  %v8630_v60 = vand.u32 4294901760, %v7792_v26  ;;  %v8631_v3 = vand.u32 4294901760, %v7797_v52  ;;  %v8827_v31 = vand.u32 4294901760, %v7764_v42  ;;  %v8838_v61 = vld [vmem:[#allocation38_spill] sm:$0xff] }
 0x4ca   : > { %v5418_v12 = vpack.c.bf16 %v8824_v10, %v8823_v44  ;;  %v5420_v54 = vpack.c.bf16 %v8826_v45, %v8825_v47  ;;  %5417 = vmatprep.subr.bf16.mxu0 %v5416_v9  ;;  %5457 = vmatprep.subr.bf16.mxu1 %v7246_v55  ;;  %v7840_v10 = vrot.slane %v7491_v33, %v1224_v48  ;;  %v8829_v9 = vand.u32 4294901760, %v7761_v14 }
 0x4cb   : > { %v7836_v44 = vsub.f32 %v7764_v42, %v8827_v31  ;;  %v8830_v45 = vand.u32 4294901760, %v7159_v2  ;;  %v8831_v31 = vand.u32 4294901760, %v7173_v32  ;;  %v8832_v55 = vand.u32 4294901760, %v7179_v7 }
 0x4cc   : > { %v3551_v47 = vsub.f32 %v7761_v14, %v8829_v9  ;;  %3003 = vmatmul.mubr.f32.gmra.mrb[10].mxu0 %v7516_v23  ;;  %v8833_v48 = vand.u32 4294901760, %v7196_v56  ;;  %v8834_v23 = vand.u32 4294901760, %v7240_v63  ;;  %v8835_v2 = vand.u32 4294901760, %v7243_v50  ;;  %5459 = vmatpush3.bf16.msra.mxu1 %v8838_v61  ;;  %v8841_v61 = vld [vmem:[#allocation45_spill] sm:$0xff] }
 0x4cd   : > { %8828 = vst [vmem:[#allocation81_spill] sm:$0xff] %v7836_v44  ;;  %v5422_v20 = vpack.c.bf16 %v8831_v31, %v8830_v45  ;;  %5419 = vmatpush3.bf16.msra.mxu0 %v5418_v12  ;;  %3288 = vmatprep.mubr.f32.mxu0 %v7498_v5  ;;  %v8836_v32 = vand.u32 4294901760, %v8755_v6  ;;  %v8837_v7 = vand.u32 4294901760, %v8756_v25  ;;  %v3657_v56 = vand.u32 4294901760, %v3656_v19  ;;  %v7888_v19 = vld [vmem:[%s6708_s10 + $0x1b0] sm:$0xff] }
 0x4ce   : > { %v5424_v18 = vpack.c.bf16 %v8833_v48, %v8832_v55  ;;  %v5426_v9 = vpack.c.bf16 %v8835_v2, %v8834_v23  ;;  %v3664_v31 = vand.u32 4294901760, %v3663_v43  ;;  %v7869_v55 = vld [vmem:[%s6708_s10 + $0x120] sm:$0xff]  ;;  %v7872_v48 = vld [vmem:[%s6708_s10 + $0x128] sm:$0xff]  ;;  %5421 = vmatprep.subr.bf16.mxu0 %v5420_v54  ;;  %v3670_v50 = vsub.f32 %v7792_v26, %v8630_v60  ;;  %5461 = vmatprep.subr.bf16.mxu1 %v8841_v61  ;;  %v8844_v43 = vld [vmem:[#allocation40_spill] sm:$0xff] }
 0x4cf   : > { %v5428_v45 = vpack.c.bf16 %v8837_v7, %v8836_v32  ;;  %v3677_v63 = vsub.f32 %v7797_v52, %v8631_v3  ;;  %v8839_v6 = vand.u32 4294901760, %v7805_v57  ;;  %v8842_v54 = vld [vmem:[#allocation39_spill] sm:$0xff]  ;;  %v8845_v23 = vand.u32 4294901760, %v8844_v43  ;;  %v8846_v32 = vld [vmem:[#allocation41_spill] sm:$0xff]  ;;  %v8848_v60 = vld [vmem:[#allocation42_spill] sm:$0xff] }
 0x4d0   : > { %v8843_v12 = vand.u32 4294901760, %v8842_v54  ;;  %v8847_v7 = vand.u32 4294901760, %v8846_v32  ;;  %v8849_v3 = vand.u32 4294901760, %v8848_v60  ;;  %v3545_v5 = vand.u32 4294901760, %v3544_v15  ;;  %v7912_v60 = vld [vmem:[%s6708_s10 + $0x1b8] sm:$0xff] }
 0x4d1   : > { %v7885_v25 = vsub.f32 %v7805_v57, %v8839_v6  ;;  %v3552_v52 = vand.u32 4294901760, %v3551_v47  ;;  %v8850_v26 = vand.u32 4294901760, %v7824_v59  ;;  %v8852_v14 = vand.u32 4294901760, %v7827_v51  ;;  %5423 = vmatpush3.bf16.msra.mxu0 %v5422_v20  ;;  %v8855_v15 = vld [vmem:[#allocation44_spill] sm:$0xff] }
 0x4d2   : > { %v5430_v2 = vpack.c.bf16 %v8845_v23, %v8843_v12  ;;  %v5432_v34 = vpack.c.bf16 %v8849_v3, %v8847_v7  ;;  %v8638_v54 = vand.u32 4294901760, %v7869_v55  ;;  %v8854_v3 = vand.u32 4294901760, %v8774_v1  ;;  %v8859_v12 = vld [vmem:[#allocation46_spill] sm:$0xff]  ;;  %5425 = vmatprep.subr.bf16.mxu0 %v5424_v18  ;;  %v8862_v18 = vld [vmem:[#allocation47_spill] sm:$0xff] }
 0x4d3   : > { %8840 = vst [vmem:[#allocation38_spill] sm:$0xff] %v7885_v25  ;;  %v7902_v6 = vsub.f32 %v7824_v59, %v8850_v26  ;;  %v7907_v61 = vsub.f32 %v7827_v51, %v8852_v14  ;;  %v8856_v47 = vand.u32 4294901760, %v8855_v15  ;;  %v8857_v43 = vand.u32 4294901760, %v7382_v21  ;;  %5463 = vmatpush3.bf16.msra.mxu1 %v8859_v12 }
 0x4d4   : > { %v8858_v23 = vand.u32 4294901760, %v7385_v39  ;;  %v7926_v32 = vpack.c.bf16 %v3664_v31, %v3657_v56  ;;  %v8639_v7 = vand.u32 4294901760, %v7888_v19  ;;  %v3671_v20 = vand.u32 4294901760, %v3670_v50  ;;  %v7937_v39 = vld [vmem:[%s6708_s10 + $0x130] sm:$0xff]  ;;  %v7940_v56 = vld [vmem:[%s6708_s10 + $0x138] sm:$0xff]  ;;  %5465 = vmatprep.subr.bf16.mxu1 %v8862_v18  ;;  %v7969_v18 = vld [vmem:[%s6708_s10 + $0x1c0] sm:$0xff] }
 0x4d5   : > { %8851 = vst [vmem:[#allocation45_spill] sm:$0xff] %v7902_v6  ;;  %8853 = vst [vmem:[#allocation39_spill] sm:$0xff] %v7907_v61  ;;  %v7918_v26 = vpack.c.bf16 %v8856_v47, %v8854_v3  ;;  %v3678_v1 = vand.u32 4294901760, %v3677_v63  ;;  %v8860_v3 = vand.u32 4294901760, %v7836_v44  ;;  %v8861_v31 = vld [vmem:[#allocation56_spill] sm:$0xff]  ;;  %v8863_v50 = vand.u32 4294901760, %v7388_v8  ;;  %5427 = vmatpush3.bf16.msra.mxu0 %v5426_v9 }
 0x4d6   : > { %v7924_v14 = vpack.c.bf16 %v8858_v23, %v8857_v43  ;;  %v7944_v47 = vadd.f32 %v8861_v31, %v7840_v10  ;;  %v8864_v63 = vand.u32 4294901760, %v7390_v58  ;;  %v7953_v43 = vpack.c.bf16 %v3552_v52, %v3545_v5  ;;  %v7972_v52 = vld [vmem:[%s6708_s10 + $0x1c8] sm:$0xff]  ;;  %5429 = vmatprep.subr.bf16.mxu0 %v5428_v45  ;;  %v8001_v23 = vld [vmem:[%s6708_s10 + $0x140] sm:$0xff] }
 0x4d7   : > { %v7933_v15 = vsub.f32 %v7836_v44, %v8860_v3  ;;  %v7961_v31 = vsub.f32 %v7869_v55, %v8638_v54  ;;  %v8866_v8 = vand.u32 4294901760, %v7872_v48  ;;  %v8868_v5 = vand.u32 4294901760, %v7406_v28  ;;  %v8871_v3 = vld [vmem:[#allocation48_spill] sm:$0xff] }
 0x4d8   : > { %v7951_v12 = vpack.c.bf16 %v8864_v63, %v8863_v50  ;;  %v8869_v50 = vand.u32 4294901760, %v7408_v30  ;;  %v7983_v54 = vsub.f32 %v7888_v19, %v8639_v7  ;;  %5467 = vmatpush3.bf16.msra.mxu1 %v8871_v3  ;;  %v7988_v28 = vpack.c.bf16 %v3678_v1, %v3671_v20  ;;  %v8875_v3 = vld [vmem:[#allocation49_spill] sm:$0xff]  ;;  %v8013_v1 = vld [vmem:[%s6708_s10 + $0x148] sm:$0xff] }
 0x4d9   : > { %8865 = vst [vmem:[#allocation40_spill] sm:$0xff] %v7961_v31  ;;  %v7966_v58 = vsub.f32 %v7872_v48, %v8866_v8  ;;  %v8872_v30 = vand.u32 4294901760, %v7416_v11  ;;  %v8873_v9 = vand.u32 4294901760, %v7418_v16  ;;  %v8874_v7 = vand.u32 4294901760, %v7885_v25  ;;  %5469 = vmatprep.subr.bf16.mxu1 %v8875_v3  ;;  %5431 = vmatpush3.bf16.msra.mxu0 %v5430_v2 }
 0x4da   : > { %v7978_v63 = vpack.c.bf16 %v8869_v50, %v8868_v5  ;;  %8870 = vst [vmem:[#allocation42_spill] sm:$0xff] %v7983_v54  ;;  %v3559_v50 = vand.u32 4294901760, %v7933_v15  ;;  %v2424_v21 = vmax.f32 %v7944_v47, 0.0  ;;  %v8876_v45 = vand.u32 4294901760, %v7912_v60  ;;  %v8016_v15 = vld [vmem:[%s6708_s10 + $0x1d0] sm:$0xff]  ;;  %5433 = vmatprep.subr.bf16.mxu0 %v5432_v34 }
 0x4db   : > { %8867 = vst [vmem:[#allocation41_spill] sm:$0xff] %v7966_v58  ;;  %v7994_v5 = vpack.c.bf16 %v8873_v9, %v8872_v30  ;;  %v3565_v8 = vsub.f32 %v7885_v25, %v8874_v7  ;;  %8877 = vst [vmem:[#allocation44_spill] sm:$0xff] %v8016_v15  ;;  %v8019_v7 = vld [vmem:[%s6708_s10 + $0x1d8] sm:$0xff]  ;;  %v8879_v30 = vand.u32 4294901760, %v7902_v6  ;;  %v8880_v9 = vand.u32 4294901760, %v7907_v61 }
 0x4dc   : > { %v8008_v11 = vsub.f32 %v7912_v60, %v8876_v45  ;;  %8878 = vst [vmem:[#allocation46_spill] sm:$0xff] %v8019_v7  ;;  %v8881_v25 = vand.u32 4294901760, %v7937_v39  ;;  %v8882_v41 = vand.u32 4294901760, %v7940_v56  ;;  %v8886_v34 = vand.u32 4294901760, %v7972_v52 }
 0x4dd   : > { %v3684_v47 = vsub.f32 %v7902_v6, %v8879_v30  ;;  %v3691_v3 = vsub.f32 %v7907_v61, %v8880_v9  ;;  %v8883_v9 = vld [vmem:[#allocation50_spill] sm:$0xff]  ;;  %v3566_v45 = vand.u32 4294901760, %v3565_v8  ;;  %v8045_v61 = vand.u32 4294901760, %v2424_v21  ;;  %5435 = vmatpush3.bf16.msra.mxu0 %v7918_v26 }
 0x4de   : > { %v8033_v44 = vsub.f32 %v7937_v39, %v8881_v25  ;;  %v8038_v30 = vsub.f32 %v7940_v56, %v8882_v41  ;;  %5471 = vmatpush3.bf16.msra.mxu1 %v8883_v9  ;;  %v8884_v25 = vld [vmem:[#allocation51_spill] sm:$0xff]  ;;  %v8885_v41 = vand.u32 4294901760, %v7969_v18  ;;  %v8057_v8 = vsub.f32 %v7972_v52, %v8886_v34  ;;  %5437 = vmatprep.subr.bf16.mxu0 %v7924_v14 }
 0x4df   : > { %5473 = vmatprep.subr.bf16.mxu1 %v8884_v25  ;;  %v3685_v9 = vand.u32 4294901760, %v3684_v47  ;;  %v3692_v20 = vand.u32 4294901760, %v3691_v3  ;;  %v8887_v16 = vand.u32 4294901760, %v7961_v31  ;;  %v8888_v25 = vand.u32 4294901760, %v7966_v58 }
 0x4e0   : > { %v8052_v6 = vsub.f32 %v7969_v18, %v8885_v41  ;;  %v8889_v41 = vand.u32 4294901760, %v7983_v54  ;;  %v8890_v47 = vand.u32 4294901760, %v8001_v23  ;;  %v8893_v34 = vand.u32 4294901760, %v8019_v7 }
 0x4e1   : > { %v3572_v2 = vsub.f32 %v7961_v31, %v8887_v16  ;;  %v3579_v24 = vsub.f32 %v7966_v58, %v8888_v25  ;;  %v8891_v16 = vand.u32 4294901760, %v8013_v1  ;;  %v8892_v25 = vand.u32 4294901760, %v8016_v15  ;;  %5439 = vmatpush3.bf16.msra.mxu0 %v7951_v12  ;;  %v8907_v12 = vld [vmem:[#allocation53_spill] sm:$0xff] }
 0x4e2   : > { %v3698_v0 = vsub.f32 %v7983_v54, %v8889_v41  ;;  %v8074_v3 = vsub.f32 %v8001_v23, %v8890_v47  ;;  %5475 = vmatpush3.bf16.msra.mxu1 %v7473_v27  ;;  %v8091_v36 = vsub.f32 %v8019_v7, %v8893_v34  ;;  %v8094_v47 = vsub.f32 %v2424_v21, %v8045_v61 }
 0x4e3   : > { %v8081_v26 = vsub.f32 %v8013_v1, %v8891_v16  ;;  %v8086_v41 = vsub.f32 %v8016_v15, %v8892_v25  ;;  %5509 = vmatprep.subr.bf16.mxu1 %v7926_v32  ;;  %v8894_v27 = vand.u32 4294901760, %v8008_v11  ;;  %v5514_v25 = vpack.c.bf16 %v3566_v45, %v3559_v50  ;;  %v8897_v15 = vld [vmem:[#allocation52_spill] sm:$0xff]  ;;  %5441 = vmatprep.subr.bf16.mxu0 %v7978_v63 }
 0x4e4   : > { %v8895_v58 = vand.u32 4294901760, %v7640_v13  ;;  %v8896_v31 = vand.u32 4294901760, %v7643_v38  ;;  %v5516_v7 = vpack.c.bf16 %v3692_v20, %v3685_v9  ;;  %v3573_v21 = vand.u32 4294901760, %v3572_v2  ;;  %v8900_v38 = vld [vmem:[#allocation54_spill] sm:$0xff] }
 0x4e5   : > { %v3705_v14 = vsub.f32 %v8008_v11, %v8894_v27  ;;  %3401 = vmatmul.mubr.f32.vlgmr.msra.gmra.mrb[12].mxu1 %v8897_v15  ;;  %v3580_v32 = vand.u32 4294901760, %v3579_v24  ;;  %v8898_v27 = vand.u32 4294901760, %v8033_v44  ;;  %v8899_v54 = vand.u32 4294901760, %v8038_v30  ;;  %5443 = vmatpush3.bf16.msra.mxu0 %v7994_v5 }
 0x4e6   : > { %v8106_v34 = vpack.c.bf16 %v8896_v31, %v8895_v58  ;;  %v8664_v13 = vand.u32 4294901760, %v8074_v3  ;;  %3406 = vmatprep.mubr.f32.mxu1 %v8900_v38  ;;  %5511 = vmatpush3.bf16.msra.mxu1 %v7953_v43  ;;  %v3699_v31 = vand.u32 4294901760, %v3698_v0  ;;  %v8901_v45 = vand.u32 4294901760, %v8052_v6 }
 0x4e7   : > { %v3586_v16 = vsub.f32 %v8033_v44, %v8898_v27  ;;  %v3593_v50 = vsub.f32 %v8038_v30, %v8899_v54  ;;  %5513 = vmatprep.subr.bf16.mxu1 %v7988_v28  ;;  %v3706_v20 = vand.u32 4294901760, %v3705_v14  ;;  %v8902_v43 = vand.u32 4294901760, %v8057_v8 }
 0x4e8   : > { %v3712_v2 = vsub.f32 %v8052_v6, %v8901_v45  ;;  %v1220_v9 = vsub.s32 2, %v7487_v37  ;;  %v8903_v27 = vand.u32 4294901760, %v7659_v22  ;;  %v8904_v24 = vand.u32 4294901760, %v7662_v40  ;;  %5477 = vmatprep.subr.bf16.mxu0 %v8106_v34  ;;  %3290 = vmatmul.mubr.f32.vlgmr.msra.gmra.mrb[12].mxu0 %v8897_v15 }
 0x4e9   : > { %v3719_v0 = vsub.f32 %v8057_v8, %v8902_v43  ;;  %v8905_v28 = vand.u32 4294901760, %v7685_v29  ;;  %v8906_v14 = vand.u32 4294901760, %v7707_v62  ;;  %3408 = vmatmul.mubr.f32.gmra.mrb[14].mxu1 %v8907_v12  ;;  %v5518_v45 = vpack.c.bf16 %v3580_v32, %v3573_v21  ;;  %3295 = vmatprep.mubr.f32.mxu0 %v8900_v38 }
 0x4ea   : > { %v8136_v63 = vpack.c.bf16 %v8904_v24, %v8903_v27  ;;  %v3587_v43 = vand.u32 4294901760, %v3586_v16  ;;  %v3594_v58 = vand.u32 4294901760, %v3593_v50  ;;  %v3600_v22 = vsub.f32 %v8074_v3, %v8664_v13  ;;  %5515 = vmatpush3.bf16.msra.mxu1 %v5514_v25  ;;  %3765 = vmatprep.mubr.f32.mxu1 %v8045_v61  ;;  %v8976_v13 = vld [vmem:[#allocation45_spill] sm:$0xff] }
 0x4eb   : > { %v8142_v54 = vpack.c.bf16 %v8906_v14, %v8905_v28  ;;  %v8908_v40 = vand.u32 4294901760, %v8081_v26  ;;  %v8909_v37 = vand.u32 4294901760, %v8086_v41  ;;  %v8910_v5 = vand.u32 4294901760, %v8091_v36  ;;  %5517 = vmatprep.subr.bf16.mxu1 %v5516_v7 }
 0x4ec   : > { %v5520_v21 = vpack.c.bf16 %v3706_v20, %v3699_v31  ;;  %v8911_v25 = vand.u32 4294901760, %v8094_v47  ;;  %v3713_v50 = vand.u32 4294901760, %v3712_v2  ;;  %v3720_v24 = vand.u32 4294901760, %v3719_v0  ;;  %5479 = vmatpush3.bf16.msra.mxu0 %v8136_v63  ;;  %v8917_v2 = vld [vmem:[#allocation63_spill] sm:$0xff] }
 0x4ed   : > { %v3607_v62 = vsub.f32 %v8081_v26, %v8908_v40  ;;  %v3726_v29 = vsub.f32 %v8086_v41, %v8909_v37  ;;  %v3733_v16 = vsub.f32 %v8091_v36, %v8910_v5  ;;  %v1221_v27 = vrot.slane %v7491_v33, %v1220_v9  ;;  %5481 = vmatprep.subr.bf16.mxu0 %v8142_v54  ;;  %v8919_v5 = vld [vmem:[#allocation68_spill] sm:$0xff] }
 0x4ee   : > { %v3512_v32 = vsub.f32 %v8094_v47, %v8911_v25  ;;  %v8912_v28 = vand.u32 4294901760, %v7764_v42  ;;  %v8913_v14 = vand.u32 4294901760, %v7805_v57  ;;  %v8914_v37 = vand.u32 4294901760, %v7824_v59  ;;  %5519 = vmatpush3.bf16.msra.mxu1 %v5518_v45  ;;  %3297 = vmatmul.mubr.f32.gmra.mrb[14].mxu0 %v8907_v12 }
 0x4ef   : > { %v8915_v7 = vand.u32 4294901760, %v7827_v51  ;;  %v5522_v20 = vpack.c.bf16 %v3594_v58, %v3587_v43  ;;  %v3601_v33 = vand.u32 4294901760, %v3600_v22  ;;  %v8916_v15 = vand.u32 4294901760, %v7592_v53  ;;  %5521 = vmatprep.subr.bf16.mxu1 %v5520_v21  ;;  %v8921_v22 = vld [vmem:[#allocation69_spill] sm:$0xff] }
 0x4f0   : > { %v8169_v40 = vpack.c.bf16 %v8913_v14, %v8912_v28  ;;  %v8918_v57 = vand.u32 4294901760, %v8917_v2  ;;  %v3608_v59 = vand.u32 4294901760, %v3607_v62  ;;  %v3727_v51 = vand.u32 4294901760, %v3726_v29 }
 0x4f1   : > { %v8175_v31 = vpack.c.bf16 %v8915_v7, %v8914_v37  ;;  %v3614_v42 = vsub.f32 %v7592_v53, %v8916_v15  ;;  %v3734_v9 = vand.u32 4294901760, %v3733_v16  ;;  %v8920_v38 = vand.u32 4294901760, %v8919_v5 }
 0x4f2   : > { %v3621_v0 = vsub.f32 %v8917_v2, %v8918_v57  ;;  %v3513_v58 = vand.u32 4294901760, %v3512_v32  ;;  %v5524_v43 = vpack.c.bf16 %v3720_v24, %v3713_v50  ;;  %v8922_v28 = vand.u32 4294901760, %v8921_v22  ;;  %5483 = vmatpush3.bf16.msra.mxu0 %v8169_v40  ;;  %v8929_v24 = vld [vmem:[#allocation55_spill] sm:$0xff]  ;;  %5523 = vmatpush3.bf16.msra.mxu1 %v5522_v20 }
 0x4f3   : > { %v3740_v25 = vsub.f32 %v8919_v5, %v8920_v38  ;;  %v8923_v45 = vand.u32 4294901760, %v7869_v55  ;;  %v8924_v37 = vand.u32 4294901760, %v7872_v48  ;;  %v8925_v29 = vand.u32 4294901760, %v7888_v19  ;;  %5485 = vmatprep.subr.bf16.mxu0 %v8175_v31  ;;  %v8930_v38 = vld [vmem:[#allocation58_spill] sm:$0xff] }
 0x4f4   : > { %v3747_v14 = vsub.f32 %v8921_v22, %v8922_v28  ;;  %v8926_v16 = vand.u32 4294901760, %v7912_v60  ;;  %3514 = vmatprep.mubr.f32.mxu0 %v3513_v58  ;;  %v3615_v21 = vand.u32 4294901760, %v3614_v42  ;;  %v3622_v32 = vand.u32 4294901760, %v3621_v0  ;;  %5525 = vmatprep.subr.bf16.mxu1 %v5524_v43 }
 0x4f5   : > { %v8197_v62 = vpack.c.bf16 %v8924_v37, %v8923_v45  ;;  %v8927_v50 = vand.u32 4294901760, %v7636_v46  ;;  %v8928_v55 = vand.u32 4294901760, %v7648_v35  ;;  %v5684_v15 = vadd.f32 %v8929_v24, %v1221_v27 }
 0x4f6   : > { %v8203_v7 = vpack.c.bf16 %v8926_v16, %v8925_v29  ;;  %v5526_v19 = vpack.c.bf16 %v3608_v59, %v3601_v33  ;;  %v5528_v60 = vpack.c.bf16 %v3734_v9, %v3727_v51  ;;  %v3741_v57 = vand.u32 4294901760, %v3740_v25  ;;  %v8937_v16 = vld [vmem:[#allocation57_spill] sm:$0xff] }
 0x4f7   : > { %v3628_v12 = vsub.f32 %v7636_v46, %v8927_v50  ;;  %v3635_v48 = vsub.f32 %v7648_v35, %v8928_v55  ;;  %v5687_v42 = vadd.f32 %v8930_v38, %v7840_v10  ;;  %v3748_v0 = vand.u32 4294901760, %v3747_v14  ;;  %5487 = vmatpush3.bf16.msra.mxu0 %v8197_v62  ;;  %v8939_v55 = vld [vmem:[#allocation70_spill] sm:$0xff]  ;;  %v8943_v38 = vld [vmem:[#allocation44_spill] sm:$0xff] }
 0x4f8   : > { %v8931_v58 = vand.u32 4294901760, %v7669_v4  ;;  %v8932_v45 = vand.u32 4294901760, %v7674_v17  ;;  %v8933_v20 = vand.u32 4294901760, %v7937_v39  ;;  %v8934_v29 = vand.u32 4294901760, %v7940_v56  ;;  %5527 = vmatpush3.bf16.msra.mxu1 %v5526_v19  ;;  %5489 = vmatprep.subr.bf16.mxu0 %v8203_v7 }
 0x4f9   : > { %v5530_v59 = vpack.c.bf16 %v3622_v32, %v3615_v21  ;;  %v8935_v10 = vand.u32 4294901760, %v7969_v18  ;;  %v8936_v51 = vand.u32 4294901760, %v7972_v52  ;;  %v3629_v25 = vand.u32 4294901760, %v3628_v12  ;;  %5529 = vmatprep.subr.bf16.mxu1 %v5528_v60 }
 0x4fa   : > { %v3754_v28 = vsub.f32 %v7669_v4, %v8931_v58  ;;  %v3761_v37 = vsub.f32 %v7674_v17, %v8932_v45  ;;  %v8226_v33 = vpack.c.bf16 %v8934_v29, %v8933_v20  ;;  %v3636_v43 = vand.u32 4294901760, %v3635_v48  ;;  %v8945_v45 = vld [vmem:[#allocation46_spill] sm:$0xff] }
 0x4fb   : > { %v8233_v9 = vpack.c.bf16 %v8936_v51, %v8935_v10  ;;  %v2423_v14 = vmax.f32 %v5684_v15, 0.0  ;;  %v5686_v50 = vadd.f32 %v8937_v16, %v1221_v27  ;;  %v8938_v39 = vand.u32 4294901760, %v7691_v49  ;;  %v8949_v10 = vld [vmem:[#allocation60_spill] sm:$0xff] }
 0x4fc   : > { %v8940_v21 = vand.u32 4294901760, %v8939_v55  ;;  %v2428_v32 = vmax.f32 %v5687_v42, 0.0  ;;  %v5532_v52 = vpack.c.bf16 %v3748_v0, %v3741_v57  ;;  %v3755_v24 = vand.u32 4294901760, %v3754_v28  ;;  %5491 = vmatpush3.bf16.msra.mxu0 %v8226_v33  ;;  %5531 = vmatpush3.bf16.msra.mxu1 %v5530_v59  ;;  %v8947_v28 = vld [vmem:[#allocation59_spill] sm:$0xff] }
 0x4fd   : > { %v3642_v56 = vsub.f32 %v7691_v49, %v8938_v39  ;;  %v3762_v12 = vand.u32 4294901760, %v3761_v37  ;;  %v8941_v27 = vand.u32 4294901760, %v8001_v23  ;;  %v8942_v48 = vand.u32 4294901760, %v8013_v1  ;;  %5493 = vmatprep.subr.bf16.mxu0 %v8233_v9 }
 0x4fe   : > { %v3649_v18 = vsub.f32 %v8939_v55, %v8940_v21  ;;  %v5534_v19 = vpack.c.bf16 %v3636_v43, %v3629_v25  ;;  %v8944_v58 = vand.u32 4294901760, %v8943_v38  ;;  %v8946_v20 = vand.u32 4294901760, %v8945_v45  ;;  %5533 = vmatprep.subr.bf16.mxu1 %v5532_v52  ;;  %v8961_v45 = vld [vmem:[#allocation65_spill] sm:$0xff] }
 0x4ff   : > { %v8248_v15 = vpack.c.bf16 %v8942_v48, %v8941_v27  ;;  %v8256_v42 = vand.u32 4294901760, %v2423_v14  ;;  %v2427_v60 = vmax.f32 %v5686_v50, 0.0  ;;  %v3643_v57 = vand.u32 4294901760, %v3642_v56  ;;  %v8951_v50 = vld [vmem:[#allocation61_spill] sm:$0xff]  ;;  %v8953_v56 = vld [vmem:[#allocation62_spill] sm:$0xff] }
 0x500   : > { %v8254_v29 = vpack.c.bf16 %v8946_v20, %v8944_v58  ;;  %v3650_v0 = vand.u32 4294901760, %v3649_v18  ;;  %v8259_v23 = vand.u32 4294901760, %v2428_v32  ;;  %v5536_v1 = vpack.c.bf16 %v3762_v12, %v3755_v24  ;;  %5535 = vmatpush3.bf16.msra.mxu1 %v5534_v19  ;;  %v8957_v12 = vld [vmem:[#allocation37_spill] sm:$0xff] }
 0x501   : > { %5495 = vmatpush3.bf16.msra.mxu0 %v8248_v15  ;;  %v8948_v37 = vand.u32 4294901760, %v8947_v28  ;;  %v8950_v51 = vand.u32 4294901760, %v8949_v10  ;;  %v8269_v43 = vsub.f32 %v2423_v14, %v8256_v42  ;;  %v8271_v59 = vand.u32 4294901760, %v2427_v60  ;;  %v8955_v14 = vld [vmem:[#allocation36_spill] sm:$0xff]  ;;  %v8965_v28 = vld [vmem:[#allocation67_spill] sm:$0xff] }
 0x502   : > { %5497 = vmatprep.subr.bf16.mxu0 %v8254_v29  ;;  %v5538_v16 = vpack.c.bf16 %v3650_v0, %v3643_v57  ;;  %v8952_v39 = vand.u32 4294901760, %v8951_v50  ;;  %v8954_v21 = vand.u32 4294901760, %v8953_v56  ;;  %v8281_v52 = vsub.f32 %v2428_v32, %v8259_v23  ;;  %5537 = vmatprep.subr.bf16.mxu1 %v5536_v1  ;;  %v8959_v32 = vld [vmem:[#allocation64_spill] sm:$0xff]  ;;  %v8963_v1 = vld [vmem:[#allocation66_spill] sm:$0xff]  ;;  %v8967_v50 = vld [vmem:[#allocation73_spill] sm:$0xff] }
 0x503   : > { %v8266_v25 = vpack.c.bf16 %v8950_v51, %v8948_v37  ;;  %v8956_v24 = vand.u32 4294901760, %v8955_v14  ;;  %v8958_v27 = vand.u32 4294901760, %v8957_v12  ;;  %v3517_v19 = vand.u32 4294901760, %v8269_v43  ;;  %v8969_v14 = vld [vmem:[#allocation76_spill] sm:$0xff] }
 0x504   : > { %v8278_v18 = vpack.c.bf16 %v8954_v21, %v8952_v39  ;;  %v8292_v38 = vsub.f32 %v2427_v60, %v8271_v59  ;;  %5539 = vmatpush3.bf16.msra.mxu1 %v5538_v16  ;;  %v8960_v58 = vand.u32 4294901760, %v8959_v32  ;;  %v8962_v20 = vand.u32 4294901760, %v8961_v45  ;;  %v8968_v39 = vld [vmem:[#allocation74_spill] sm:$0xff]  ;;  %v8972_v45 = vld [vmem:[#allocation79_spill] sm:$0xff] }
 0x505   : > { %5499 = vmatpush3.bf16.msra.mxu0 %v8266_v25  ;;  %v8288_v48 = vpack.c.bf16 %v8958_v27, %v8956_v24  ;;  %5573 = vmatprep.subr.bf16.mxu1 %v8106_v34  ;;  %v8665_v0 = vand.u32 4294901760, %v8281_v52  ;;  %v8964_v60 = vand.u32 4294901760, %v8963_v1  ;;  %v8966_v37 = vand.u32 4294901760, %v8965_v28  ;;  %v8970_v24 = vld [vmem:[#allocation77_spill] sm:$0xff] }
 0x506   : > { %5501 = vmatprep.subr.bf16.mxu0 %v8278_v18  ;;  %v8300_v57 = vpack.c.bf16 %v8962_v20, %v8960_v58  ;;  %v3518_v51 = vsub.f32 %v8269_v43, %v3517_v19  ;;  %v8666_v16 = vand.u32 4294901760, %v8292_v38  ;;  %v5540_v56 = vpack.c.bf16 %v8968_v39, %v8967_v50  ;;  %v8973_v20 = vld [vmem:[#allocation80_spill] sm:$0xff]  ;;  %v8974_v28 = vld [vmem:[#allocation81_spill] sm:$0xff] }
 0x507   : > { %3767 = vmatmul.mubr.f32.vlgmr.msra.gmra.mrb[16].mxu1 %v8256_v42  ;;  %v8309_v10 = vpack.c.bf16 %v8966_v37, %v8964_v60  ;;  %v3527_v21 = vsub.f32 %v8281_v52, %v8665_v0  ;;  %v5542_v12 = vpack.c.bf16 %v8970_v24, %v8969_v14  ;;  %v8971_v32 = vand.u32 4294901760, %v8094_v47  ;;  %v8975_v37 = vld [vmem:[#allocation38_spill] sm:$0xff]  ;;  %v8977_v0 = vld [vmem:[#allocation39_spill] sm:$0xff] }
 0x508   : > { %3772 = vmatprep.mubr.f32.mxu1 %v8259_v23  ;;  %5575 = vmatpush3.bf16.msra.mxu1 %v8136_v63  ;;  %v3519_v27 = vand.u32 4294901760, %v3518_v51  ;;  %v3533_v58 = vsub.f32 %v8292_v38, %v8666_v16  ;;  %v5544_v1 = vpack.c.bf16 %v8973_v20, %v8972_v45  ;;  %v5546_v51 = vpack.c.bf16 %v8975_v37, %v8974_v28 }
 0x509   : > { %5503 = vmatpush3.bf16.msra.mxu0 %v8288_v48  ;;  %5577 = vmatprep.subr.bf16.mxu1 %v8142_v54  ;;  %v3528_v60 = vand.u32 4294901760, %v3527_v21  ;;  %v5548_v16 = vpack.c.bf16 %v8977_v0, %v8976_v13  ;;  %v8979_v21 = vld [vmem:[#allocation41_spill] sm:$0xff] }
 0x50a   : > { %5505 = vmatprep.subr.bf16.mxu0 %v8300_v57 }
 0x50b   : > { %3774 = vmatmul.mubr.f32.gmra.mrb[18].mxu1 %v8271_v59 }
 0x50c   : > { %5579 = vmatpush3.bf16.msra.mxu1 %v8169_v40  ;;  %4025 = vmatprep.mubr.f32.mxu1 %v8971_v32  ;;  %v3534_v32 = vand.u32 4294901760, %v3533_v58  ;;  %v5554_v58 = vpack.c.bf16 %v8038_v30, %v8033_v44 }
 0x50d   : > { %5507 = vmatpush3.bf16.msra.mxu0 %v8309_v10  ;;  %5581 = vmatprep.subr.bf16.mxu1 %v8175_v31 }
 0x50e   : > { %5541 = vmatprep.subr.bf16.mxu0 %v5540_v56  ;;  %v8978_v56 = vld [vmem:[#allocation40_spill] sm:$0xff] }
 0x510   : > { %3520 = vmatmul.mubr.f32.vlgmr.msra.gmra.mrb[16].mxu0 %v3519_v27  ;;  %5583 = vmatpush3.bf16.msra.mxu1 %v8197_v62  ;;  %v5550_v27 = vpack.c.bf16 %v8979_v21, %v8978_v56 }
 0x511   : > { %3529 = vmatprep.mubr.f32.mxu0 %v3528_v60  ;;  %5543 = vmatpush3.bf16.msra.mxu0 %v5542_v12  ;;  %v8980_v12 = vld [vmem:[#allocation42_spill] sm:$0xff] }
 0x512   : > { %5545 = vmatprep.subr.bf16.mxu0 %v5544_v1  ;;  %5585 = vmatprep.subr.bf16.mxu1 %v8203_v7  ;;  %v5552_v60 = vpack.c.bf16 %v8008_v11, %v8980_v12  ;;  %v5560_v1 = vpack.c.bf16 %v8091_v36, %v8086_v41 }
 0x514   : > { %3535 = vmatmul.mubr.f32.gmra.mrb[18].mxu0 %v3534_v32  ;;  %5587 = vmatpush3.bf16.msra.mxu1 %v8226_v33  ;;  %v5564_v32 = vpack.c.bf16 %v8921_v22, %v8919_v5  ;;  %v8981_v5 = vand.u32 4294901760, %v8281_v52 }
 0x515   : > { %5547 = vmatpush3.bf16.msra.mxu0 %v5546_v51  ;;  %3909 = vmatprep.mubr.f32.mxu0 %v8094_v47  ;;  %v5556_v47 = vpack.c.bf16 %v8057_v8, %v8052_v6  ;;  %v5562_v51 = vpack.c.bf16 %v8917_v2, %v7592_v53  ;;  %v5568_v53 = vpack.c.bf16 %v7674_v17, %v7669_v4  ;;  %v8984_v4 = vand.u32 4294901760, %v8292_v38 }
 0x516   : > { %5549 = vmatprep.subr.bf16.mxu0 %v5548_v16  ;;  %5589 = vmatprep.subr.bf16.mxu1 %v8233_v9  ;;  %v5558_v16 = vpack.c.bf16 %v8081_v26, %v8074_v3  ;;  %v5570_v2 = vpack.c.bf16 %v8939_v55, %v7691_v49  ;;  %v8986_v49 = vand.u32 4294901760, %v8970_v24 }
 0x518   : > { %5591 = vmatpush3.bf16.msra.mxu1 %v8248_v15 }
 0x519   : > { %5551 = vmatpush3.bf16.msra.mxu0 %v5550_v27  ;;  %5593 = vmatprep.subr.bf16.mxu1 %v8254_v29  ;;  %v5566_v27 = vpack.c.bf16 %v7648_v35, %v7636_v46  ;;  %v8982_v35 = vand.u32 4294901760, %v8967_v50  ;;  %v8983_v46 = vand.u32 4294901760, %v8968_v39  ;;  %v8990_v50 = vand.u32 4294901760, %v8975_v37 }
 0x51a   : > { %5553 = vmatprep.subr.bf16.mxu0 %v5552_v60  ;;  %v8991_v39 = vand.u32 4294901760, %v8976_v13  ;;  %v8995_v13 = vand.u32 4294901760, %v8980_v12 }
 0x51b   : > { %v5604_v17 = vpack.c.bf16 %v8983_v46, %v8982_v35 }
 0x51c   : > { %5595 = vmatpush3.bf16.msra.mxu1 %v8266_v25 }
 0x51d   : > { %5555 = vmatpush3.bf16.msra.mxu0 %v5554_v58  ;;  %5597 = vmatprep.subr.bf16.mxu1 %v8278_v18 }
 0x51e   : > { %5557 = vmatprep.subr.bf16.mxu0 %v5556_v47 }
 0x520   : > { %5599 = vmatpush3.bf16.msra.mxu1 %v8288_v48 }
 0x521   : > { %5559 = vmatpush3.bf16.msra.mxu0 %v5558_v16  ;;  %5601 = vmatprep.subr.bf16.mxu1 %v8300_v57 }
 0x522   : > { %5561 = vmatprep.subr.bf16.mxu0 %v5560_v1 }
 0x524   : > { %5603 = vmatpush3.bf16.msra.mxu1 %v8309_v10 }
 0x525   : > { %5563 = vmatpush3.bf16.msra.mxu0 %v5562_v51  ;;  %5637 = vmatprep.subr.bf16.mxu1 %v8106_v34  ;;  %v8985_v34 = vand.u32 4294901760, %v8969_v14  ;;  %v8992_v14 = vand.u32 4294901760, %v8977_v0 }
 0x526   : > { %5565 = vmatprep.subr.bf16.mxu0 %v5564_v32 }
 0x527   : > { %4029 = vmatmul.mubr.f32.vlgmr.msra.gmra.mrb[20].mxu1 %v3517_v19  ;;  %v5606_v22 = vpack.c.bf16 %v8986_v49, %v8985_v34  ;;  %v8989_v19 = vand.u32 4294901760, %v8974_v28  ;;  %v5612_v24 = vpack.c.bf16 %v8992_v14, %v8991_v39 }
 0x528   : > { %4036 = vmatprep.mubr.f32.mxu1 %v8981_v5  ;;  %5639 = vmatpush3.bf16.msra.mxu1 %v8136_v63  ;;  %v8988_v63 = vand.u32 4294901760, %v8973_v20 }
 0x529   : > { %5567 = vmatpush3.bf16.msra.mxu0 %v5566_v27  ;;  %5641 = vmatprep.subr.bf16.mxu1 %v8142_v54  ;;  %v8987_v54 = vand.u32 4294901760, %v8972_v45  ;;  %v8999_v45 = vand.u32 4294901760, %v8052_v6  ;;  %v9005_v6 = vld [vmem:[#allocation43_spill] sm:$0xff] }
 0x52a   : > { %5569 = vmatprep.subr.bf16.mxu0 %v5568_v53 }
 0x52b   : > { %4040 = vmatmul.mubr.f32.gmra.mrb[22].mxu1 %v8984_v4  ;;  %v5608_v55 = vpack.c.bf16 %v8988_v63, %v8987_v54 }
 0x52c   : > { %5643 = vmatpush3.bf16.msra.mxu1 %v8169_v40  ;;  %4317 = vmatprep.mubr.f32.mxu1 %v8045_v61  ;;  %v5610_v40 = vpack.c.bf16 %v8990_v50, %v8989_v19 }
 0x52d   : > { %5571 = vmatpush3.bf16.msra.mxu0 %v5570_v2  ;;  %5645 = vmatprep.subr.bf16.mxu1 %v8175_v31  ;;  %v8993_v31 = vand.u32 4294901760, %v8978_v56 }
 0x52e   : > { %5605 = vmatprep.subr.bf16.mxu0 %v5604_v17 }
 0x530   : > { %3912 = vmatmul.mubr.f32.vlgmr.msra.gmra.mrb[20].mxu0 %v8269_v43  ;;  %5647 = vmatpush3.bf16.msra.mxu1 %v8197_v62  ;;  %v8994_v43 = vand.u32 4294901760, %v8979_v21  ;;  %v8996_v62 = vand.u32 4294901760, %v8008_v11  ;;  %v9001_v11 = vand.u32 4294901760, %v8074_v3  ;;  %v9007_v3 = vld [vmem:[#allocation72_spill] sm:$0xff] }
 0x531   : > { %3918 = vmatprep.mubr.f32.mxu0 %v8281_v52  ;;  %5607 = vmatpush3.bf16.msra.mxu0 %v5606_v22 }
 0x532   : > { %5609 = vmatprep.subr.bf16.mxu0 %v5608_v55  ;;  %5649 = vmatprep.subr.bf16.mxu1 %v8203_v7  ;;  %v5614_v52 = vpack.c.bf16 %v8994_v43, %v8993_v31  ;;  %v5616_v0 = vpack.c.bf16 %v8996_v62, %v8995_v13  ;;  %v8997_v7 = vand.u32 4294901760, %v8033_v44  ;;  %v9003_v44 = vand.u32 4294901760, %v8086_v41 }
 0x534   : > { %3921 = vmatmul.mubr.f32.gmra.mrb[22].mxu0 %v8292_v38  ;;  %5651 = vmatpush3.bf16.msra.mxu1 %v8226_v33  ;;  %v9000_v33 = vand.u32 4294901760, %v8057_v8  ;;  %v9006_v8 = vld [vmem:[#allocation71_spill] sm:$0xff] }
 0x535   : > { %5611 = vmatpush3.bf16.msra.mxu0 %v5610_v40  ;;  %4206 = vmatprep.mubr.f32.mxu0 %v8045_v61  ;;  %v8998_v61 = vand.u32 4294901760, %v8038_v30  ;;  %v9004_v30 = vand.u32 4294901760, %v8091_v36  ;;  %v9008_v36 = vld [vmem:[#allocation75_spill] sm:$0xff] }
 0x536   : > { %5613 = vmatprep.subr.bf16.mxu0 %v5612_v24  ;;  %5653 = vmatprep.subr.bf16.mxu1 %v8233_v9  ;;  %v5620_v20 = vpack.c.bf16 %v9000_v33, %v8999_v45  ;;  %v9002_v9 = vand.u32 4294901760, %v8081_v26  ;;  %v9009_v26 = vld [vmem:[#allocation78_spill] sm:$0xff] }
 0x537   : > { %v5618_v38 = vpack.c.bf16 %v8998_v61, %v8997_v7 }
 0x538   : > { %5655 = vmatpush3.bf16.msra.mxu1 %v8248_v15  ;;  %v5622_v28 = vpack.c.bf16 %v9002_v9, %v9001_v11  ;;  %v5624_v15 = vpack.c.bf16 %v9004_v30, %v9003_v44 }
 0x539   : > { %5615 = vmatpush3.bf16.msra.mxu0 %v5614_v52  ;;  %5657 = vmatprep.subr.bf16.mxu1 %v8254_v29 }
 0x53a   : > { %5617 = vmatprep.subr.bf16.mxu0 %v5616_v0 }
 0x53c   : > { %5659 = vmatpush3.bf16.msra.mxu1 %v8266_v25 }
 0x53d   : > { %5619 = vmatpush3.bf16.msra.mxu0 %v5618_v38  ;;  %5661 = vmatprep.subr.bf16.mxu1 %v8278_v18 }
 0x53e   : > { %5621 = vmatprep.subr.bf16.mxu0 %v5620_v20 }
 0x540   : > { %5663 = vmatpush3.bf16.msra.mxu1 %v8288_v48 }
 0x541   : > { %5623 = vmatpush3.bf16.msra.mxu0 %v5622_v28  ;;  %5665 = vmatprep.subr.bf16.mxu1 %v8300_v57 }
 0x542   : > { %5625 = vmatprep.subr.bf16.mxu0 %v5624_v15 }
 0x544   : > { %5667 = vmatpush3.bf16.msra.mxu1 %v8309_v10 }
 0x545   : > { %5627 = vmatpush3.bf16.msra.mxu0 %v9005_v6 }
 0x546   : > { %5629 = vmatprep.subr.bf16.mxu0 %v9006_v8 }
 0x547   : > { %4319 = vmatmul.mubr.f32.vlgmr.msra.gmra.mrb[24].mxu1 %v8256_v42 }
 0x548   : > { %4324 = vmatprep.mubr.f32.mxu1 %v8259_v23 }
 0x549   : > { %5631 = vmatpush3.bf16.msra.mxu0 %v9007_v3 }
 0x54a   : > { %5633 = vmatprep.subr.bf16.mxu0 %v9008_v36 }
 0x54b   : > { %4326 = vmatmul.mubr.f32.gmra.mrb[26].mxu1 %v8271_v59 }
 0x54d   : > { %5635 = vmatpush3.bf16.msra.mxu0 %v9009_v26 }
 0x550   : > { %4208 = vmatmul.mubr.f32.vlgmr.msra.gmra.mrb[24].mxu0 %v8256_v42 }
 0x551   : > { %4213 = vmatprep.mubr.f32.mxu0 %v8259_v23 }
 0x554   : > { %4215 = vmatmul.mubr.f32.gmra.mrb[26].mxu0 %v8271_v59 }
 0x570   : > { %v4688_v41 = vpop.f32.mrb[4].mxu1 }
 0x571   : > { %v4689_v29 = vpop.f32.mrb[5].mxu1 }
 0x572   : > { %v4690_v25 = vadd.f32 %v4689_v29, %v4688_v41 }
 0x574   : > { %v4691_v18 = vpop.f32.mrb[6].mxu1 }
 0x575   : > { %v4692_v48 = vpop.f32.mrb[7].mxu1 }
 0x576   : > { %v4693_v57 = vadd.f32 %v4692_v48, %v4691_v18 }
 0x578   : > { %v4650_v10 = vpop.f32.mrb[4].mxu0 }
 0x579   : > { %v4651_v37 = vpop.f32.mrb[5].mxu0 }
 0x57a   : > { %v4652_v56 = vadd.f32 %v4651_v37, %v4650_v10 }
 0x57c   : > { %v2851_v21 = vadd.f32 %v4690_v25, %v4652_v56  ;;  %v4653_v12 = vpop.f32.mrb[6].mxu0 }
 0x57d   : > { %v4654_v60 = vpop.f32.mrb[7].mxu0 }
 0x57e   : > { %v4655_v58 = vadd.f32 %v4654_v60, %v4653_v12 }
 0x580   : > { %v2858_v47 = vadd.f32 %v4693_v57, %v4655_v58 }
 0x591   : > { %v4764_v16 = vpop.f32.mrb[8].mxu1 }
 0x592   : > { %v4765_v42 = vpop.f32.mrb[9].mxu1 }
 0x593   : > { %v4766_v1 = vadd.f32 %v4765_v42, %v4764_v16 }
 0x595   : > { %v4767_v23 = vpop.f32.mrb[10].mxu1 }
 0x596   : > { %v4768_v51 = vpop.f32.mrb[11].mxu1 }
 0x597   : > { %v4769_v59 = vadd.f32 %v4768_v51, %v4767_v23 }
 0x59b   : > { %v4726_v32 = vpop.f32.mrb[8].mxu0 }
 0x59c   : > { %v4727_v27 = vpop.f32.mrb[9].mxu0 }
 0x59d   : > { %v4728_v53 = vadd.f32 %v4727_v27, %v4726_v32 }
 0x59f   : > { %v2996_v2 = vadd.f32 %v4728_v53, %v2851_v21  ;;  %v4729_v5 = vpop.f32.mrb[10].mxu0 }
 0x5a0   : > { %v4730_v35 = vpop.f32.mrb[11].mxu0 }
 0x5a1   : > { %v4731_v46 = vadd.f32 %v4730_v35, %v4729_v5  ;;  %v3113_v17 = vadd.f32 %v4766_v1, %v2996_v2  ;;  %v2429_v35 = vld [vmem:[#allocation4] sm:$0xff] }
 0x5a3   : > { %v3005_v4 = vadd.f32 %v4731_v46, %v2858_v47 }
 0x5a5   : > { %v3124_v34 = vadd.f32 %v4769_v59, %v3005_v4 }
 0x5b8   : > { %v4840_v49 = vpop.f32.mrb[12].mxu1 }
 0x5b9   : > { %v4841_v22 = vpop.f32.mrb[13].mxu1 }
 0x5ba   : > { %v4842_v54 = vadd.f32 %v4841_v22, %v4840_v49  ;;  %v2430_v22 = vld [vmem:[#allocation4 + $0x8] sm:$0xff] }
 0x5bb   : > { %v4802_v50 = vpop.f32.mrb[12].mxu0 }
 0x5bc   : > { %v4843_v63 = vpop.f32.mrb[14].mxu1  ;;  %v4803_v40 = vpop.f32.mrb[13].mxu0 }
 0x5bd   : > { %v4844_v55 = vpop.f32.mrb[15].mxu1  ;;  %v4804_v39 = vadd.f32 %v4803_v40, %v4802_v50  ;;  %v4574_v50 = vld [vmem:[#allocation19] ss:$0 sm:$0xff] (!%p4573_p12) }
 0x5be   : > { %v4845_v19 = vadd.f32 %v4844_v55, %v4843_v63  ;;  %v4339_v55 = vld [vmem:[#allocation2] sm:$0xff] (!%p4573_p12) }
 0x5bf   : > { %v3292_v14 = vadd.f32 %v4804_v39, %v3113_v17  ;;  %v4340_v39 = vld [vmem:[#allocation2 + $0x8] sm:$0xff] (!%p4573_p12) }
 0x5c1   : > { %v4805_v24 = vpop.f32.mrb[14].mxu0  ;;  %v3403_v52 = vadd.f32 %v4842_v54, %v3292_v14 }
 0x5c2   : > { %v4806_v31 = vpop.f32.mrb[15].mxu0 }
 0x5c3   : > { %v4807_v43 = vadd.f32 %v4806_v31, %v4805_v24 }
 0x5c5   : > { %v3299_v13 = vadd.f32 %v4807_v43, %v3124_v34 }
 0x5c7   : > { %v3410_v62 = vadd.f32 %v4845_v19, %v3299_v13 }
 0x5da   : > { %v4916_v0 = vpop.f32.mrb[16].mxu1 }
 0x5db   : > { %v4917_v7 = vpop.f32.mrb[17].mxu1 }
 0x5dc   : > { %v4918_v61 = vadd.f32 %v4917_v7, %v4916_v0 }
 0x5de   : > { %v4919_v38 = vpop.f32.mrb[18].mxu1 }
 0x5df   : > { %v4920_v45 = vpop.f32.mrb[19].mxu1 }
 0x5e0   : > { %v4921_v33 = vadd.f32 %v4920_v45, %v4919_v38 }
 0x5e3   : > { %v4878_v20 = vpop.f32.mrb[16].mxu0 }
 0x5e4   : > { %v4879_v11 = vpop.f32.mrb[17].mxu0 }
 0x5e5   : > { %v4880_v9 = vadd.f32 %v4879_v11, %v4878_v20 }
 0x5e7   : > { %v3522_v28 = vadd.f32 %v4880_v9, %v3403_v52  ;;  %v4881_v44 = vpop.f32.mrb[18].mxu0 }
 0x5e8   : > { %v4882_v30 = vpop.f32.mrb[19].mxu0 }
 0x5e9   : > { %v4883_v15 = vadd.f32 %v4882_v30, %v4881_v44  ;;  %v3769_v6 = vadd.f32 %v4918_v61, %v3522_v28 }
 0x5eb   : > { %v3537_v8 = vadd.f32 %v4883_v15, %v3410_v62 }
 0x5ed   : > { %v3776_v3 = vadd.f32 %v4921_v33, %v3537_v8 }
 0x5fa   : > { %v4992_v36 = vpop.f32.mrb[20].mxu1 }
 0x5fb   : > { %v4993_v26 = vpop.f32.mrb[21].mxu1 }
 0x5fc   : > { %v4994_v41 = vadd.f32 %v4993_v26, %v4992_v36 }
 0x5fe   : > { %v4995_v29 = vpop.f32.mrb[22].mxu1 }
 0x5ff   : > { %v4996_v25 = vpop.f32.mrb[23].mxu1 }
 0x600   : > { %v4997_v18 = vadd.f32 %v4996_v25, %v4995_v29 }
 0x603   : > { %v4954_v48 = vpop.f32.mrb[20].mxu0 }
 0x604   : > { %v4955_v57 = vpop.f32.mrb[21].mxu0 }
 0x605   : > { %v4956_v10 = vadd.f32 %v4955_v57, %v4954_v48 }
 0x607   : > { %v3914_v37 = vadd.f32 %v4956_v10, %v3769_v6  ;;  %v4957_v56 = vpop.f32.mrb[22].mxu0 }
 0x608   : > { %v4958_v21 = vpop.f32.mrb[23].mxu0 }
 0x609   : > { %v4959_v12 = vadd.f32 %v4958_v21, %v4957_v56  ;;  %v4031_v60 = vadd.f32 %v4994_v41, %v3914_v37 }
 0x60b   : > { %v3923_v58 = vadd.f32 %v4959_v12, %v3776_v3 }
 0x60d   : > { %v4042_v47 = vadd.f32 %v4997_v18, %v3923_v58 }
 0x61a   : > { %v5068_v16 = vpop.f32.mrb[24].mxu1 }
 0x61b   : > { %v5069_v42 = vpop.f32.mrb[25].mxu1 }
 0x61c   : > { %v5070_v1 = vadd.f32 %v5069_v42, %v5068_v16 }
 0x61e   : > { %v5071_v23 = vpop.f32.mrb[26].mxu1 }
 0x61f   : > { %v5072_v51 = vpop.f32.mrb[27].mxu1 }
 0x620   : > { %v5073_v59 = vadd.f32 %v5072_v51, %v5071_v23 }
 0x623   : > { %v5030_v32 = vpop.f32.mrb[24].mxu0 }
 0x624   : > { %v5031_v27 = vpop.f32.mrb[25].mxu0 }
 0x625   : > { %v5032_v53 = vadd.f32 %v5031_v27, %v5030_v32 }
 0x627   : > { %v4210_v2 = vadd.f32 %v5032_v53, %v4031_v60  ;;  %v5033_v5 = vpop.f32.mrb[26].mxu0 }
 0x628   : > { %v5034_v46 = vpop.f32.mrb[27].mxu0 }
 0x629   : > { %v4321_v17 = vadd.f32 %v5070_v1, %v4210_v2  ;;  %v5035_v4 = vadd.f32 %v5034_v46, %v5033_v5 }
 0x62b   : > { %v4331_v34 = vadd.f32 %v4321_v17, %v2429_v35  ;;  %v4217_v49 = vadd.f32 %v5035_v4, %v4042_v47  ;;  %4338 = sbr.rel (%p4573_p12) target bundleno = 1598 (0x63e), region = 108 }
 0x62d   : > { %4333 = vst.msk [vmem:[#allocation4] sm:$0xff] %vm1230_vm5, %v4331_v34  ;;  %v4328_v54 = vadd.f32 %v5073_v59, %v4217_v49 }
 0x62f   : > { %v4332_v63 = vadd.f32 %v4328_v54, %v2430_v22 }
 0x631   : > { %4334 = vst.msk [vmem:[#allocation4 + $0x8] sm:$0xff] %vm1230_vm5, %v4332_v63 }
 0x634   : > { %v4341_v19 = vld [vmem:[#allocation4] sm:$0xff] }
 0x635   : > { %v4343_v40 = vadd.f32 %v4341_v19, %v4339_v55 }
 0x637   : > { %v4352_v31 = vadd.f32 %v4574_v50, %v4343_v40 }
 0x638   : > { %v4342_v14 = vld [vmem:[#allocation4 + $0x8] sm:$0xff] }
 0x639   : > { %v4344_v24 = vadd.f32 %v4342_v14, %v4340_v39  ;;  %4354 = vst.msk [vmem:[#allocation20] sm:$0xff] %vm1230_vm5, %v4352_v31 }
 0x63b   : > { %v4353_v43 = vadd.f32 %v4574_v50, %v4344_v24 }
 0x63d   : > { %4355 = vst.msk [vmem:[#allocation20 + $0x8] sm:$0xff] %vm1230_vm5, %v4353_v43 }
 0x63e PF: > { %p5813_p0 = scmp.eq.s32.totalorder %s6382_s19, 3  ;;  %s6293_s0 = smov [#allocation20]  }
 0x63f   : > { %s4365_s29 = sshll.u32 %s6293_s0, 4  ;;  %s4366_s29 = int_to_ptr.vmem [resolvable:$true] %s4365_s29 }
 0x640   : > { %s6174_s26 = scalar_lea.vmem %s4366_s29, 256  ;;  %p6181_p1 = scmp.lt.s32.totalorder %s4366_s29, %s4366_s29 }
 0x641   : > { %p6175_p13 = scmp.ne.s32.totalorder %s4366_s29, %s6174_s26  ;;  %p6182_p6 = scmp.lt.s32.totalorder %s6174_s26, %s6174_s26 }
 0x643   : > { %p6176_p10 = pnand %p6175_p13, %p5813_p0  ;;  %p6183_p8 = por %p6182_p6, %p6181_p1 }
 0x645   : > { %p6177_p2 = pneg %p6176_p10 }
 0x647   : > { %p6184_p4 = pnand %p6183_p8, %p6177_p2 }
 0x649   : > { %6187 = shalt.err (!%p6184_p4)
}
 0x64a   : > { %s9011_s12 = sld [smem:[#allocation85_spill]] }
 0x650   : > { %s6188_s21 = scalar_lea.hbm %s9011_s12, 256 }
 0x651   : > { %p6189_p11 = scmp.ne.s32.totalorder %s9011_s12, %s6188_s21  ;;  %p6194_p3 = scmp.lt.u32.totalorder %s6188_s21, %s9011_s12 }
 0x653   : > { %p6190_p9 = pnand %p6189_p11, %p5813_p0 }
 0x655   : > { %p6191_p5 = pneg %p6190_p9 }
 0x657   : > { %p6196_p7 = pnand %p6194_p3, %p6191_p5 }
 0x659   : > { %6199 = shalt.err (!%p6196_p7)
}
 0x65a   : > { %s6294_s6 = smov 128   ;;  %s6295_s15 = smov 8  }
 0x65b   : > { %5763 = dma.vmem_to_hbm [thread:$0]  (%p5813_p0), %s4366_s29, 256, %s9011_s12, [#allocation7], %s6294_s6, %s6294_s6, %s6295_s15  }
 0x65c   : > { %6249 = dma.done.wait (%p5813_p0), [#allocation7], 256  }
 0x65d   : > { %6251 = vsyncadd (%p5813_p0), [#allocation7], 4294967040 }
 0x65e PF: > { %s9012_s30 = sld [smem:[#allocation31_spill]]  ;;  %s9013_s13 = sld [smem:[#allocation28_spill]] }
 0x65f   : > { %s9014_s14 = sld [smem:[#allocation29_spill]]  ;;  %s9015_s15 = sld [smem:[#allocation35_spill]] }
 0x660   : > { %s9016_s11 = sld [smem:[#allocation33_spill]]  ;;  %s9017_s16 = smov %s6270_s17 }
 0x664   : > { %s25_s18 = sadd.s32 1, %s9012_s30  }
 0x665   : > { %p22_p12 = scmp.ge.s32.totalorder %s25_s18, 6  }
 0x666   : > { %s9018_s17 = smov %s9016_s11 }
 0x667   :  { %24 = sbr.rel (!%p22_p12) target bundleno = 12 (0xc), region = 157 }
 0x66e   :  { %4381 = vsyncpa [#allocation6], 1 }
 0x66f   :  { %4383 = vsyncpa [#allocation6 + $0x1], 1 }
 0x670   :  { %4384 = vsyncpa [#allocation9], 1 }
 0x671   :  { %4385 = vsyncpa [#allocation12], 1 }
 0x672   :  { %4386 = vsyncpa [#allocation15], 1 }
 0x673   :  { %4387 = vsyncpa [#allocation7], 1 }
 0x674   :  { %4389 = vsyncpa [#allocation7 + $0x1], 1 }

// kernel: encoder_layer.4
= control target key start
LH: loop header
LB: loop body
LE: loop exit
PB: predicated region body
PF: predicated region fallthrough
CT: control target
= control target key end

     0   :  { %s7955_s0 = inlined_call_operand.hbm [shape: f32[2,8,32], index: 0, kind: input, shape index: {}]   ;;  %s7956_s1 = inlined_call_operand.hbm [shape: f32[2,8,32], index: 1, kind: input, shape index: {}]   ;;  %s7957_s2 = inlined_call_operand.hbm [shape: f32[2,8,32], index: 2, kind: input, shape index: {}]   ;;  %s7958_s3 = inlined_call_operand.hbm [shape: f32[2,1,8], index: 3, kind: input, shape index: {}]   ;;  %s7959_s4 = inlined_call_operand.hbm [shape: f32[2,8,32], index: 4, kind: output, shape index: {0}]   ;;  %s7960_s5 = inlined_call_operand.hbm [shape: f32[2,4,8,8], index: 5, kind: output, shape index: {1}]  }
   0x1   :  { %7971 = sst [smem:[#allocation24_spill]] %s7956_s1 }
   0x2   :  { %11 = vsyncpa [#allocation3], 0 }
   0x3   :  { %13 = vsyncpa [#allocation3 + $0x1], 0 }
   0x4   :  { %14 = vsyncpa [#allocation6], 0 }
   0x5   :  { %16 = vsyncpa [#allocation6 + $0x1], 0 }
   0x6   :  { %17 = vsyncpa [#allocation9], 0 }
   0x7   :  { %19 = vsyncpa [#allocation9 + $0x1], 0 }
   0x8   :  { %20 = vsyncpa [#allocation4], 0 }
   0x9   :  { %22 = vsyncpa [#allocation4 + $0x1], 0 }
   0xa   :  { %23 = vsyncpa [#allocation12], 0 }
   0xb   :  { %25 = vsyncpa [#allocation12 + $0x1], 0  ;;  %s7123_s18 = smov 0   ;;  %s7125_s19 = smov 0  }
   0xc   :  { %s7127_s20 = smov 0   ;;  %s7129_s21 = smov 0  }
   0xd   :  { %s7131_s22 = smov 0   ;;  %s7133_s23 = smov 0  }
   0xe LB: > { %7972 = sst [smem:[#allocation18_spill]] %s7054_s18  ;;  %s7154_s24 = sadd.s32 4294967295, %s7074_s23   ;;  %s7074_s23 = sphi %s7133_s23, %s31_s23   ;;  %s7070_s22 = sphi %s7131_s22, %s8004_s22   ;;  %s7066_s21 = sphi %s7129_s21, %s8003_s21   ;;  %s7062_s20 = sphi %s7127_s20, %s7999_s20   ;;  %s7058_s19 = sphi %s7125_s19, %s8002_s19   ;;  %s7054_s18 = sphi %s7123_s18, %s8001_s18  }
   0xf   : > { %7973 = sst [smem:[#allocation19_spill]] %s7062_s20  ;;  %s6278_s25 = sadd.s32 4294967294, %s7074_s23  }
  0x10   : > { %7974 = sst [smem:[#allocation20_spill]] %s7074_s23  ;;  %s43_s26 = sadd.s32 1, %s7070_s22 }
  0x11   : > { %s52_s27 = sadd.s32 1, %s7062_s20  ;;  %p45_p0 = scmp.ge.s32.totalorder %s43_s26, 2 }
  0x12   : > { %p59_p1 = scmp.ne.s32.totalorder %s7062_s20, %s7058_s19  ;;  %p60_p2 = scmp.eq.s32.totalorder %s7074_s23, 0 }
  0x13   : > { %p65_p3 = scmp.ne.s32.totalorder %s7058_s19, %s7054_s18  ;;  %s8006_s26 = smov (%p45_p0, %s43_s26), 0 }
  0x14   : > { %7975 = sst [smem:[#allocation21_spill]] %s8006_s26  ;;  %p7166_p4 = por %p60_p2, %p59_p1 }
  0x15   : > { %p66_p5 = scmp.eq.s32.totalorder %s7154_s24, 0  ;;  %s47_s29 = ssub.s32 %s7070_s22, %s8006_s26 }
  0x16   : > { %p169_p6 = scmp.eq.s32.totalorder %s7154_s24, 1  ;;  %p50_p7 = scmp.eq.s32.totalorder %s47_s29, 0 }
  0x17   : > { %p7174_p8 = por %p66_p5, %p65_p3  ;;  %p175_p10 = scmp.eq.s32.totalorder %s6278_s25, 1 }
  0x18   : > { %p7178_p9 = por %p169_p6, %p59_p1  ;;  %p6755_p13 = scmp.lt.s32.totalorder %s7074_s23, 2 }
  0x19   : > { %s7977_s30 = scalar_select %p7174_p8, 1, 0 }
  0x1a   : > { %s7978_s6 = scalar_select %p7178_p9, 1, 0 }
  0x1b   : > { %s7183_s7 = scalar_select %p50_p7, %s7062_s20, %s52_s27  }
  0x1c   : > { %p7185_p11 = por %p175_p10, %p65_p3  ;;  %s7192_s9 = sand.u32 1, %s7062_s20  }
  0x1d   : > { %7979 = sst [smem:[#allocation22_spill]] %s7183_s7  ;;  %s7195_s10 = sshll.u32 %s7192_s9, 3 }
  0x1e   : > { %s7980_s8 = scalar_select %p7185_p11, 1, 0 }
  0x1f   : > { %s7198_s11 = sshll.u32 %s7070_s22, 7  ;;  %p7202_p0 = pnand %p6755_p13, %p7166_p4 }
  0x20   : > { %7981 = sst [smem:[#allocation23_spill]] %s7980_s8  ;;  %s242_s13 = sand.u32 1, %s7074_s23  }
  0x21   : > { %s7982_s12 = scalar_select %p7202_p0, 1, 0 }
  0x22   : > { %s7983_s1 = sld [smem:[#allocation24_spill]]  ;;  %s246_s17 = scalar_lea.vmem [#allocation5], %s7195_s10 }
  0x23   : > { %s253_s25 = sshll.u32 %s246_s17, 4  ;;  %s7218_s27 = scalar_lea.sflag [#allocation6], %s242_s13  ;;  %s7215_s25 = int_to_ptr.vmem [resolvable:$true] %s253_s25 }
  0x24   : > { %p7224_p4 = pneg %p7202_p0 }
  0x28   : > { %s7211_s16 = scalar_lea.hbm %s7983_s1, %s7198_s11  ;;  %s6837_s17 = scalar_lea.hbm %s7983_s1, 256 }
  0x29   : > { %s6832_s28 = scalar_lea.hbm %s7211_s16, 128  ;;  %p6838_p7 = scmp.lt.u32.totalorder %s7211_s16, %s7983_s1 }
  0x2a   : > { %p6833_p3 = scmp.ne.s32.totalorder %s7211_s16, %s6832_s28  ;;  %p6839_p10 = scmp.lt.u32.totalorder %s6837_s17, %s6832_s28 }
  0x2b   : > { %p6841_p12 = scmp.lt.u32.totalorder %s6832_s28, %s7211_s16 }
  0x2c   : > { %p6835_p5 = pnand %p7224_p4, %p6833_p3  ;;  %p6840_p13 = por %p6839_p10, %p6838_p7 }
  0x2e   : > { %p6836_p6 = pneg %p6835_p5  ;;  %p6842_p1 = por %p6841_p12, %p6840_p13 }
  0x30   : > { %p6843_p2 = pnand %p6842_p1, %p6836_p6 }
  0x32   : > { %6846 = shalt.err (!%p6843_p2)
}
  0x33   : > { %s6847_s13 = scalar_lea.vmem %s7215_s25, 128  ;;  %s7076_s14 = smov [#allocation5]  }
  0x34   : > { %p6848_p3 = scmp.ne.s32.totalorder %s7215_s25, %s6847_s13  ;;  %s6852_s15 = sshll.u32 %s7076_s14, 4  ;;  %s6853_s15 = int_to_ptr.vmem [resolvable:$false] %s6852_s15 }
  0x35   : > { %s6854_s26 = scalar_lea.vmem %s6853_s15, 256  ;;  %p6855_p9 = scmp.lt.s32.totalorder %s7215_s25, %s6853_s15 }
  0x36   : > { %p6850_p5 = pnand %p6848_p3, %p7224_p4  ;;  %p6856_p8 = scmp.lt.s32.totalorder %s6854_s26, %s6847_s13 }
  0x38   : > { %p6851_p11 = pneg %p6850_p5  ;;  %p6857_p7 = por %p6856_p8, %p6855_p9 }
  0x3a   : > { %p6858_p10 = pnand %p6857_p7, %p6851_p11 }
  0x3c   : > { %6861 = shalt.err (!%p6858_p10)
}
  0x3d   : > { %6741 = dma.hbm_to_vmem [thread:$0]  (!%p7202_p0), %s7211_s16, 128, %s7215_s25, %s7218_s27  }
  0x3e   : > { %p7985_p12 = scmp.lt.s32.totalorder %s7074_s23, 3  ;;  %p7986_p1 = scmp.ge.s32.totalorder %s7074_s23, 1 }
  0x3f   : > { %s7260_s13 = scalar_lea.hbm %s7955_s0, %s7198_s11  ;;  %s227_s14 = scalar_lea.vmem [#allocation2], %s7195_s10 }
  0x40   : > { %p7252_p2 = pnand %p7986_p1, %p7985_p12  ;;  %s235_s15 = sshll.u32 %s227_s14, 4  ;;  %s7263_s15 = int_to_ptr.vmem [resolvable:$true] %s235_s15 }
  0x41   : > { %s7269_s26 = scalar_lea.hbm %s7957_s2, %s7198_s11  ;;  %s224_s1 = scalar_lea.sflag [#allocation3], %s7192_s9 }
  0x42   : > { %s7987_s7 = scalar_select %p7252_p2, 1, 0 }
  0x43   : > { %s6862_s20 = scalar_lea.hbm %s7260_s13, 128  ;;  %s6867_s23 = scalar_lea.hbm %s7955_s0, 256 }
  0x44   : > { %p6863_p8 = scmp.ne.s32.totalorder %s7260_s13, %s6862_s20  ;;  %p6868_p6 = scmp.lt.u32.totalorder %s7260_s13, %s7955_s0 }
  0x45   : > { %p6869_p13 = scmp.lt.u32.totalorder %s6867_s23, %s6862_s20  ;;  %p6871_p5 = scmp.lt.u32.totalorder %s6862_s20, %s7260_s13 }
  0x46   : > { %p6865_p9 = pnand %p6863_p8, %p7224_p4 }
  0x47   : > { %p6870_p3 = por %p6869_p13, %p6868_p6 }
  0x48   : > { %p6866_p11 = pneg %p6865_p9 }
  0x49   : > { %p6872_p7 = por %p6871_p5, %p6870_p3 }
  0x4b   : > { %p6873_p10 = pnand %p6872_p7, %p6866_p11 }
  0x4d   : > { %6876 = shalt.err (!%p6873_p10)
}
  0x4e   : > { %s6877_s11 = scalar_lea.vmem %s7263_s15, 128  ;;  %s7077_s14 = smov [#allocation2]  }
  0x4f   : > { %p6878_p12 = scmp.ne.s32.totalorder %s7263_s15, %s6877_s11  ;;  %s6882_s16 = sshll.u32 %s7077_s14, 4  ;;  %s6883_s16 = int_to_ptr.vmem [resolvable:$false] %s6882_s16 }
  0x50   : > { %s6884_s18 = scalar_lea.vmem %s6883_s16, 256  ;;  %p6885_p9 = scmp.lt.s32.totalorder %s7263_s15, %s6883_s16 }
  0x51   : > { %p6880_p1 = pnand %p6878_p12, %p7224_p4  ;;  %p6886_p2 = scmp.lt.s32.totalorder %s6884_s18, %s6877_s11 }
  0x53   : > { %p6881_p8 = pneg %p6880_p1  ;;  %p6887_p6 = por %p6886_p2, %p6885_p9 }
  0x55   : > { %p6888_p13 = pnand %p6887_p6, %p6881_p8 }
  0x57   : > { %6891 = shalt.err (!%p6888_p13)
}
  0x58   : > { %6738 = dma.hbm_to_vmem [thread:$0]  (!%p7202_p0), %s7260_s13, 128, %s7263_s15, %s224_s1  }
  0x59   : > { %s264_s20 = scalar_lea.vmem [#allocation7], %s7195_s10  ;;  %s6892_s8 = scalar_lea.hbm %s7269_s26, 128 }
  0x5a   : > { %s271_s23 = sshll.u32 %s264_s20, 4  ;;  %p6893_p11 = scmp.ne.s32.totalorder %s7269_s26, %s6892_s8  ;;  %s272_s23 = int_to_ptr.vmem [resolvable:$true] %s271_s23 }
  0x5b   : > { %s6897_s17 = scalar_lea.hbm %s7957_s2, 256  ;;  %p6898_p5 = scmp.lt.u32.totalorder %s7269_s26, %s7957_s2 }
  0x5c   : > { %p6895_p2 = pnand %p6893_p11, %p7224_p4  ;;  %p6899_p7 = scmp.lt.u32.totalorder %s6897_s17, %s6892_s8 }
  0x5d   : > { %p6901_p12 = scmp.lt.u32.totalorder %s6892_s8, %s7269_s26 }
  0x5e   : > { %p6896_p3 = pneg %p6895_p2  ;;  %p6900_p10 = por %p6899_p7, %p6898_p5 }
  0x60   : > { %p6902_p1 = por %p6901_p12, %p6900_p10 }
  0x62   : > { %p6903_p8 = pnand %p6902_p1, %p6896_p3 }
  0x64   : > { %6906 = shalt.err (!%p6903_p8)
}
  0x65   : > { %s6907_s1 = scalar_lea.vmem %s272_s23, 128  ;;  %s7078_s10 = smov [#allocation7]  }
  0x66   : > { %p6908_p9 = scmp.ne.s32.totalorder %s272_s23, %s6907_s1  ;;  %s6912_s13 = sshll.u32 %s7078_s10, 4  ;;  %s6913_s13 = int_to_ptr.vmem [resolvable:$false] %s6912_s13 }
  0x67   : > { %s6914_s15 = scalar_lea.vmem %s6913_s13, 256  ;;  %p6915_p11 = scmp.lt.s32.totalorder %s272_s23, %s6913_s13 }
  0x68   : > { %p6910_p6 = pnand %p6908_p9, %p7224_p4  ;;  %p6916_p2 = scmp.lt.s32.totalorder %s6914_s15, %s6907_s1 }
  0x6a   : > { %p6911_p13 = pneg %p6910_p6  ;;  %p6917_p0 = por %p6916_p2, %p6915_p11 }
  0x6c   : > { %p6918_p5 = pnand %p6917_p0, %p6911_p13 }
  0x6e   : > { %6921 = shalt.err (!%p6918_p5)
}
  0x6f   : > { %p7988_p7 = scmp.ne.s32.totalorder %s7982_s12, 0  ;;  %s6287_s16 = sshll.u32 %s7070_s22, 4 }
  0x70   : > { %s281_s18 = scalar_lea.vmem [#allocation8], %s7192_s9  ;;  %s7317_s28 = scalar_lea.hbm %s7958_s3, %s6287_s16 }
  0x71   : > { %6744 = dma.hbm_to_vmem [thread:$0]  (!%p7988_p7), %s7269_s26, 128, %s272_s23, %s7218_s27  }
  0x72   : > { %s288_s20 = sshll.u32 %s281_s18, 4  ;;  %s279_s17 = scalar_lea.sflag [#allocation9], %s7192_s9  ;;  %s289_s20 = int_to_ptr.vmem [resolvable:$true] %s288_s20 }
  0x73   : > { %s6922_s11 = scalar_lea.hbm %s7317_s28, 16  ;;  %s6927_s23 = scalar_lea.hbm %s7958_s3, 32 }
  0x74   : > { %p6923_p0 = scmp.ne.s32.totalorder %s7317_s28, %s6922_s11  ;;  %p6928_p12 = scmp.lt.u32.totalorder %s7317_s28, %s7958_s3 }
  0x75   : > { %p6929_p1 = scmp.lt.u32.totalorder %s6927_s23, %s6922_s11  ;;  %p6931_p9 = scmp.lt.u32.totalorder %s6922_s11, %s7317_s28 }
  0x76   : > { %p6925_p3 = pnand %p6923_p0, %p7224_p4 }
  0x77   : > { %p6930_p8 = por %p6929_p1, %p6928_p12 }
  0x78   : > { %p6926_p10 = pneg %p6925_p3 }
  0x79   : > { %p6932_p6 = por %p6931_p9, %p6930_p8 }
  0x7b   : > { %p6933_p13 = pnand %p6932_p6, %p6926_p10 }
  0x7d   : > { %6936 = shalt.err (!%p6933_p13)
}
  0x7e   : > { %s6937_s9 = scalar_lea.vmem %s289_s20, 16  ;;  %s7079_s10 = smov [#allocation8]  }
  0x7f   : > { %p6938_p11 = scmp.ne.s32.totalorder %s289_s20, %s6937_s9  ;;  %s6942_s13 = sshll.u32 %s7079_s10, 4  ;;  %s6943_s13 = int_to_ptr.vmem [resolvable:$false] %s6942_s13 }
  0x80   : > { %s6944_s15 = scalar_lea.vmem %s6943_s13, 32  ;;  %p6945_p0 = scmp.lt.s32.totalorder %s289_s20, %s6943_s13 }
  0x81   : > { %p6940_p2 = pnand %p6938_p11, %p7224_p4  ;;  %p6946_p3 = scmp.lt.s32.totalorder %s6944_s15, %s6937_s9 }
  0x83   : > { %p6941_p5 = pneg %p6940_p2  ;;  %p6947_p7 = por %p6946_p3, %p6945_p0 }
  0x85   : > { %p6948_p1 = pnand %p6947_p7, %p6941_p5 }
  0x87   : > { %6951 = shalt.err (!%p6948_p1)
}
  0x88   : > { %p7989_p12 = scmp.ne.s32.totalorder %s7982_s12, 0  ;;  %p7990_p10 = scmp.ne.s32.totalorder %s7987_s7, 0 }
  0x89   : > { %s7340_s29 = sand.u32 (!%p7990_p10), 1, %s7058_s19   ;;  %p7991_p4 = scmp.ne.s32.totalorder (!%p7990_p10), %s7977_s30, 0 }
  0x8a   : > { %6747 = dma.hbm_to_vmem [thread:$0]  (!%p7989_p12), %s7317_s28, 16, %s289_s20, %s279_s17  }
  0x8b   : > { %297 = sbr.rel (%p7990_p10) target bundleno = 1805 (0x70d), region = 36  ;;  %s7343_s16 = sshll.u32 (!%p7990_p10), %s7340_s29, 3 }
  0x8c   : > { %s300_s18 = scalar_lea.sflag (!%p7990_p10), [#allocation3], %s7340_s29  ;;  %s303_s8 = scalar_lea.vmem (!%p7990_p10), [#allocation2], %s7343_s16 }
  0x92   : > { %7033 = dma.done.wait (%p7991_p4), %s300_s18, 128  }
  0x93   : > { %7035 = vsyncadd (%p7991_p4), %s300_s18, 4294967168  ;;  %s308_s12 = sand.u32 1, %s7154_s24   ;;  %s312_s20 = scalar_lea.vmem [#allocation5], %s7343_s16 }
  0x94   : > { %s309_s7 = scalar_lea.sflag [#allocation6], %s308_s12 }
  0x95   : > { %7037 = dma.done.wait (%p7991_p4), %s309_s7, 256  }
  0x96   : > { %7039 = vsyncadd (%p7991_p4), %s309_s7, 4294967040  ;;  %s321_s25 = scalar_lea.vmem [#allocation7], %s7343_s16  ;;  %s327_s28 = scalar_lea.sflag [#allocation9], %s7340_s29 }
  0x97   : > { %s329_s17 = scalar_lea.vmem [#allocation8], %s7340_s29 }
  0x98   : > { %7041 = dma.done.wait (%p7991_p4), %s327_s28, 16  }
  0x99   : > { %7043 = vsyncadd (%p7991_p4), %s327_s28, 4294967280  ;;  %v454_v0 = vld [vmem:[%s312_s20] sm:$0xff]  ;;  %v7080_v1 = vmov 0.0   ;;  %s7081_s24 = smov 104   ;;  %s7082_s11 = smov 120   ;;  %v7368_v2 = vld [vmem:[%s303_s8] sm:$0xff]  ;;  %v391_v5 = vlaneseq }
  0x9a   : > { %6403 = vmatprep.subr.mxu0 %v7080_v1  ;;  %6433 = vmatprep.subr.mxu1 %v7080_v1  ;;  %s7083_s27 = smov 112   ;;  %v7084_v3 = vmov 1983009808   ;;  %v7085_v8 = vmov 1934713408   ;;  %vm7086_vm0 = vmmov 0  }
  0x9b   : > { %462 = vrot.lane.b32.xlu1 %v454_v0, %s7081_s24  ;;  %456 = vrot.lane.b32.xlu0 %v454_v0, %s7082_s11  ;;  %v389_v4 = vunpack.c.l.s4 %v7084_v3  ;;  %v392_v7 = vshrl.u32 %v391_v5, 7  ;;  %v421_v9 = vunpack.c.l.s4 %v7085_v8  ;;  %vm1396_vm1 = vcmask 64512   ;;  %s6293_s30 = sshll.u32 %s7340_s29, 5  ;;  %s6306_s23 = sshll.u32 %s7066_s21, 9 }
  0x9c   : > { %6405 = vmatprep.mubr.msk.f32.mxu0 %vm7086_vm0, %v7080_v1  ;;  %6435 = vmatprep.mubr.msk.f32.mxu1 %vm7086_vm0, %v7080_v1  ;;  %s7717_s26 = scalar_lea.vmem [#allocation11], %s6293_s30  ;;  %s7872_s10 = scalar_lea.hbm %s7960_s5, %s6306_s23 }
  0x9d   : > { %v390_v6 = vunpack.c.0.s8 %v389_v4  ;;  %v422_v14 = vunpack.c.0.s8 %v421_v9  ;;  %s6097_s14 = sshll.u32 %s7717_s26, 4  ;;  %s6069_s13 = scalar_lea.sflag [#allocation12], %s7340_s29  ;;  %s7874_s14 = int_to_ptr.vmem [resolvable:$true] %s6097_s14 }
  0x9e   : > { %s6952_s15 = scalar_lea.vmem %s7874_s14, 512  ;;  %p7992_p8 = scmp.ne.s32.totalorder %s7978_s6, 0 }
  0x9f   : > { %459 = vrot.lane.b32.xlu0 %v454_v0, %s7083_s27  ;;  %377 = vrot.lane.b32.xlu1 %v7368_v2, %s7082_s11  ;;  %v7373_v12 = vsub.s32 %v390_v6, %v392_v7  ;;  %v7378_v22 = vsub.s32 %v422_v14, %v392_v7  ;;  %p6953_p7 = scmp.ne.s32.totalorder %s7874_s14, %s6952_s15  ;;  %s7087_s18 = smov [#allocation11]  }
  0xa0   : > { %s6956_s8 = sshll.u32 %s7087_s18, 4  ;;  %s6957_s8 = int_to_ptr.vmem [resolvable:$false] %s6956_s8 }
  0xa1   : > { %p6954_p9 = pnand %p6953_p7, %p7992_p8  ;;  %s6958_s12 = scalar_lea.vmem %s6957_s8, 1024 }
  0xa2   : > { %p6959_p13 = scmp.lt.s32.totalorder %s7874_s14, %s6957_s8  ;;  %p6960_p11 = scmp.lt.s32.totalorder %s6958_s12, %s6952_s15 }
  0xa3   : > { %p6955_p6 = pneg %p6954_p9 }
  0xa4   : > { %p6961_p2 = por %p6960_p11, %p6959_p13 }
  0xa6   : > { %p6962_p5 = pnand %p6961_p2, %p6955_p6 }
 0x10d   : > { %v463_v10 = vpop.permute.xlu1 %462  ;;  %v457_v11 = vpop.permute.xlu0 %456 }
 0x10e   : > { %v481_v13 = vcombine.low %v457_v11, %v463_v10  ;;  %v482_v16 = vcombine.high %v457_v11, %v463_v10 }
 0x110   : > { %v489_v19 = vrot.slane %v481_v13, %v7373_v12  ;;  %v496_v23 = vrot.slane %v482_v16, %v7373_v12 }
 0x111   : > { %v460_v15 = vpop.permute.xlu0 %459  ;;  %v7393_v36 = vpop.permute.xlu1 %377 }
 0x112   : > { %v465_v17 = vcombine.low %v454_v0, %v460_v15  ;;  %v466_v18 = vcombine.high %v454_v0, %v460_v15 }
 0x114   : > { %v473_v20 = vrot.slane %v465_v17, %v7373_v12  ;;  %v480_v21 = vrot.slane %v466_v18, %v7373_v12 }
 0x116   : > { %v498_v24 = vcombine.high %v473_v20, %v489_v19  ;;  %v497_v25 = vcombine.low %v473_v20, %v489_v19  ;;  %v513_v28 = vcombine.low %v480_v21, %v496_v23  ;;  %v514_v31 = vcombine.high %v480_v21, %v496_v23 }
 0x118   : > { %v512_v26 = vrot.slane %v498_v24, %v7378_v22  ;;  %v505_v27 = vrot.slane %v497_v25, %v7378_v22  ;;  %v521_v30 = vrot.slane %v513_v28, %v7378_v22  ;;  %v528_v33 = vrot.slane %v514_v31, %v7378_v22  ;;  %v7417_v25 = vld [vmem:[%s321_s25] sm:$0xff] }
 0x11a   : > { %744 = vxpose.xlu0.b32.start.end [1/1] (short) (narrow) %v512_v26, 8  ;;  %680 = vxpose.xlu1.b32.start.end [1/1] (short) (narrow) %v505_v27, 8  ;;  %v529_v29 = vcombine.high %v505_v27, %v7080_v1  ;;  %v530_v32 = vcombine.high %v512_v26, %v7080_v1  ;;  %v531_v34 = vcombine.high %v521_v30, %v7080_v1 }
 0x11b   : > { %v532_v35 = vcombine.high %v528_v33, %v7080_v1 }
 0x11e   : > { %712 = vxpose.xlu0.b32.start.end [1/1] (short) (narrow) %v529_v29, 8  ;;  %808 = vxpose.xlu1.b32.start.end [1/1] (short) (narrow) %v521_v30, 8 }
 0x122   : > { %776 = vxpose.xlu0.b32.start.end [1/1] (short) (narrow) %v530_v32, 8  ;;  %872 = vxpose.xlu1.b32.start.end [1/1] (short) (narrow) %v528_v33, 8 }
 0x126   : > { %840 = vxpose.xlu0.b32.start.end [1/1] (short) (narrow) %v531_v34, 8 }
 0x12a   : > { %904 = vxpose.xlu0.b32.start.end [1/1] (short) (narrow) %v532_v35, 8 }
 0x140   : > { %383 = vrot.lane.b32.xlu1 %v7368_v2, %s7081_s24 }
 0x153   : > { %380 = vrot.lane.b32.xlu0 %v7368_v2, %s7083_s27 }
 0x19a   : > { %v760_v37 = vpop.trf.xlu0  ;;  %v696_v38 = vpop.trf.xlu1 }
 0x19b   : > { %v936_v45 = vcombine.low %v696_v38, %v760_v37  ;;  %v937_v57 = vcombine.high %v696_v38, %v760_v37 }
 0x19d   : > { %v944_v49 = vrot.slane %v936_v45, %v7373_v12  ;;  %v951_v4 = vrot.slane %v937_v57, %v7373_v12 }
 0x19e   : > { %v728_v39 = vpop.trf.xlu0  ;;  %v824_v40 = vpop.trf.xlu1 }
 0x1a2   : > { %v792_v41 = vpop.trf.xlu0  ;;  %v888_v44 = vpop.trf.xlu1 }
 0x1a3   : > { %v952_v42 = vcombine.low %v728_v39, %v792_v41  ;;  %v968_v47 = vcombine.low %v824_v40, %v888_v44  ;;  %v953_v52 = vcombine.high %v728_v39, %v792_v41  ;;  %v969_v54 = vcombine.high %v824_v40, %v888_v44 }
 0x1a5   : > { %v960_v46 = vrot.slane %v952_v42, %v7373_v12  ;;  %v976_v55 = vrot.slane %v968_v47, %v7373_v12  ;;  %v967_v61 = vrot.slane %v953_v52, %v7373_v12  ;;  %v983_v62 = vrot.slane %v969_v54, %v7373_v12 }
 0x1a6   : > { %v856_v43 = vpop.trf.xlu0 }
 0x1a7   : > { %v1000_v53 = vcombine.low %v944_v49, %v960_v46  ;;  %v1001_v3 = vcombine.high %v944_v49, %v960_v46  ;;  %v1016_v10 = vcombine.low %v951_v4, %v967_v61  ;;  %v1017_v17 = vcombine.high %v951_v4, %v967_v61 }
 0x1a9   : > { %v1008_v63 = vrot.slane %v1000_v53, %v7378_v22  ;;  %v1015_v9 = vrot.slane %v1001_v3, %v7378_v22  ;;  %v1024_v16 = vrot.slane %v1016_v10, %v7378_v22  ;;  %v1031_v21 = vrot.slane %v1017_v17, %v7378_v22 }
 0x1aa   : > { %v920_v48 = vpop.trf.xlu0 }
 0x1ab   : > { %v984_v50 = vcombine.low %v856_v43, %v920_v48  ;;  %v985_v51 = vcombine.high %v856_v43, %v920_v48 }
 0x1ad   : > { %v992_v56 = vrot.slane %v984_v50, %v7373_v12  ;;  %v999_v58 = vrot.slane %v985_v51, %v7373_v12 }
 0x1af   : > { %v1032_v59 = vcombine.low %v976_v55, %v992_v56  ;;  %v1033_v60 = vcombine.high %v976_v55, %v992_v56  ;;  %v1048_v8 = vcombine.low %v983_v62, %v999_v58  ;;  %v1049_v15 = vcombine.high %v983_v62, %v999_v58 }
 0x1b1   : > { %v1040_v0 = vrot.slane %v1032_v59, %v7378_v22  ;;  %v1047_v7 = vrot.slane %v1033_v60, %v7378_v22  ;;  %v1056_v14 = vrot.slane %v1048_v8, %v7378_v22  ;;  %v1063_v20 = vrot.slane %v1049_v15, %v7378_v22 }
 0x1b2   : > { %v384_v27 = vpop.permute.xlu1 %383 }
 0x1b3   : > { %v1065_v5 = vcombine.high %v1008_v63, %v1040_v0  ;;  %v1064_v6 = vcombine.low %v1008_v63, %v1040_v0  ;;  %v1066_v11 = vcombine.low %v1015_v9, %v1047_v7  ;;  %v1067_v13 = vcombine.high %v1015_v9, %v1047_v7 }
 0x1b4   : > { %v1068_v18 = vcombine.low %v1024_v16, %v1056_v14  ;;  %v1069_v19 = vcombine.high %v1024_v16, %v1056_v14  ;;  %v1070_v23 = vcombine.low %v1031_v21, %v1063_v20  ;;  %v1071_v24 = vcombine.high %v1031_v21, %v1063_v20 }
 0x1b5   : > { %1104 = vxpose.xlu0.b32.start.end [1/1] (short) (narrow) %v1065_v5, 8  ;;  %1072 = vxpose.xlu1.b32.start.end [1/1] (short) (narrow) %v1064_v6, 8  ;;  %v402_v30 = vcombine.low %v7393_v36, %v384_v27  ;;  %v403_v31 = vcombine.high %v7393_v36, %v384_v27 }
 0x1b7   : > { %v410_v34 = vrot.slane %v402_v30, %v7373_v12  ;;  %v417_v35 = vrot.slane %v403_v31, %v7373_v12 }
 0x1b9   : > { %1136 = vxpose.xlu0.b32.start.end [1/1] (short) (narrow) %v1066_v11, 8  ;;  %1168 = vxpose.xlu1.b32.start.end [1/1] (short) (narrow) %v1067_v13, 8 }
 0x1bd   : > { %1200 = vxpose.xlu0.b32.start.end [1/1] (short) (narrow) %v1068_v18, 8  ;;  %1232 = vxpose.xlu1.b32.start.end [1/1] (short) (narrow) %v1069_v19, 8 }
 0x1c1   : > { %1264 = vxpose.xlu0.b32.start.end [1/1] (short) (narrow) %v1070_v23, 8  ;;  %1296 = vxpose.xlu1.b32.start.end [1/1] (short) (narrow) %v1071_v24, 8 }
 0x1c5   : > { %v381_v26 = vpop.permute.xlu0 %380 }
 0x1c6   : > { %v386_v28 = vcombine.low %v7368_v2, %v381_v26  ;;  %v387_v29 = vcombine.high %v7368_v2, %v381_v26 }
 0x1c8   : > { %v394_v32 = vrot.slane %v386_v28, %v7373_v12  ;;  %v401_v33 = vrot.slane %v387_v29, %v7373_v12 }
 0x1ca   : > { %v418_v37 = vcombine.low %v394_v32, %v410_v34  ;;  %v419_v38 = vcombine.high %v394_v32, %v410_v34  ;;  %v434_v39 = vcombine.low %v401_v33, %v417_v35  ;;  %v435_v40 = vcombine.high %v401_v33, %v417_v35 }
 0x1cc   : > { %v426_v41 = vrot.slane %v418_v37, %v7378_v22  ;;  %v433_v2 = vrot.slane %v419_v38, %v7378_v22  ;;  %v442_v42 = vrot.slane %v434_v39, %v7378_v22  ;;  %v449_v36 = vrot.slane %v435_v40, %v7378_v22 }
 0x1ce   : > { %v612_v43 = vcombine.low %v426_v41, %v433_v2  ;;  %v6294_v44 = vcombine.high %v426_v41, %v433_v2  ;;  %v628_v45 = vcombine.low %v442_v42, %v449_v36  ;;  %v6295_v46 = vcombine.high %v442_v42, %v449_v36 }
 0x1d0   : > { %v7438_v47 = vrot.slane %v612_v43, %v7373_v12  ;;  %v7441_v48 = vrot.slane %v6294_v44, %v7373_v12  ;;  %v7444_v49 = vrot.slane %v628_v45, %v7373_v12  ;;  %v7447_v50 = vrot.slane %v6295_v46, %v7373_v12 }
 0x1d2   : > { %v644_v51 = vcombine.low %v7438_v47, %v7441_v48  ;;  %v660_v52 = vcombine.low %v7444_v49, %v7447_v50  ;;  %v645_v43 = vcombine.high %v7438_v47, %v7441_v48  ;;  %v661_v44 = vcombine.high %v7444_v49, %v7447_v50 }
 0x1d4   : > { %v652_v53 = vrot.slane %v644_v51, %v7378_v22  ;;  %v668_v54 = vrot.slane %v660_v52, %v7378_v22  ;;  %v659_v47 = vrot.slane %v645_v43, %v7378_v22  ;;  %v675_v48 = vrot.slane %v661_v44, %v7378_v22 }
 0x1d6   : > { %v676_v57 = vcombine.low %v652_v53, %v668_v54  ;;  %v677_v58 = vcombine.high %v652_v53, %v668_v54 }
 0x1d8   : > { %v1398_v61 = vsel %vm1396_vm1, %v676_v57, 0  ;;  %v1847_v62 = vsel %vm1396_vm1, %v677_v58, 0  ;;  %v678_v57 = vcombine.low %v659_v47, %v675_v48 }
 0x1d9   : > { %v7457_v5 = vand.u32 4294901760, %v1398_v61  ;;  %v7459_v6 = vand.u32 4294901760, %v1847_v62 }
 0x1db   : > { %v7468_v11 = vsub.f32 %v1398_v61, %v7457_v5  ;;  %v7471_v13 = vsub.f32 %v1847_v62, %v7459_v6  ;;  %v679_v62 = vcombine.high %v659_v47, %v675_v48 }
 0x1dd   : > { %v1468_v19 = vand.u32 4294901760, %v7468_v11  ;;  %v1917_v20 = vand.u32 4294901760, %v7471_v13 }
 0x1df   : > { %535 = vrot.lane.b32.xlu1 %v7417_v25, %s7082_s11  ;;  %v1469_v26 = vsub.f32 %v7468_v11, %v1468_v19  ;;  %v1918_v27 = vsub.f32 %v7471_v13, %v1917_v20 }
 0x1e1   : > { %v1470_v32 = vand.u32 4294901760, %v1469_v26  ;;  %v1919_v33 = vand.u32 4294901760, %v1918_v27 }
 0x1e3   : > { %541 = vrot.lane.b32.xlu1 %v7417_v25, %s7081_s24 }
 0x1ea   : > { %538 = vrot.lane.b32.xlu0 %v7417_v25, %s7083_s27 }
 0x235   : > { %v1120_v55 = vpop.trf.xlu0  ;;  %v1088_v56 = vpop.trf.xlu1 }
 0x239   : > { %v1152_v59 = vpop.trf.xlu0  ;;  %v1184_v60 = vpop.trf.xlu1 }
 0x23a   : > { %v1328_v63 = vcombine.low %v1088_v56, %v1152_v59  ;;  %v1336_v0 = vcombine.low %v1120_v55, %v1184_v60 }
 0x23c   : > { %v7462_v7 = vrot.slane %v1328_v63, %v7373_v12  ;;  %v7465_v8 = vrot.slane %v1336_v0, %v7373_v12 }
 0x23d   : > { %v1216_v3 = vpop.trf.xlu0  ;;  %v1248_v4 = vpop.trf.xlu1 }
 0x23e   : > { %v1360_v16 = vcombine.low %v7462_v7, %v7465_v8  ;;  %v1361_v55 = vcombine.high %v7462_v7, %v7465_v8 }
 0x240   : > { %v1368_v23 = vrot.slane %v1360_v16, %v7378_v22  ;;  %v1375_v63 = vrot.slane %v1361_v55, %v7378_v22 }
 0x241   : > { %v1280_v9 = vpop.trf.xlu0  ;;  %v1312_v10 = vpop.trf.xlu1 }
 0x242   : > { %v1344_v14 = vcombine.low %v1216_v3, %v1280_v9  ;;  %v1352_v15 = vcombine.low %v1248_v4, %v1312_v10  ;;  %v2296_v4 = vsel %vm1396_vm1, %v678_v57, 0  ;;  %v2745_v10 = vsel %vm1396_vm1, %v679_v62, 0 }
 0x244   : > { %v7476_v17 = vrot.slane %v1344_v14, %v7373_v12  ;;  %v7479_v18 = vrot.slane %v1352_v15, %v7373_v12  ;;  %v7566_v14 = vand.u32 4294901760, %v2296_v4  ;;  %v7573_v15 = vand.u32 4294901760, %v2745_v10 }
 0x246   : > { %v1376_v21 = vcombine.low %v7476_v17, %v7479_v18  ;;  %v1377_v51 = vcombine.high %v7476_v17, %v7479_v18 }
 0x248   : > { %v1384_v24 = vrot.slane %v1376_v21, %v7378_v22  ;;  %v7587_v21 = vsub.f32 %v2745_v10, %v7573_v15 }
 0x24a   : > { %v1392_v28 = vcombine.low %v1368_v23, %v1384_v24  ;;  %v1393_v29 = vcombine.high %v1368_v23, %v1384_v24 }
 0x24c   : > { %v7493_v30 = vand.u32 4294901760, %v1392_v28  ;;  %v7495_v31 = vand.u32 4294901760, %v1393_v29 }
 0x24e   : > { %6404 = vmatpush3.msra.mxu0 %v7493_v30  ;;  %6434 = vmatpush3.msra.mxu1 %v7495_v31  ;;  %v7500_v34 = vsub.f32 %v1392_v28, %v7493_v30  ;;  %v7503_v35 = vsub.f32 %v1393_v29, %v7495_v31  ;;  %v2815_v29 = vand.u32 4294901760, %v7587_v21 }
 0x24f   : > { %6406 = vmatmul.mubr.f32.vlgmr.msra.gmra.mrb[0].mxu0 %v1470_v32  ;;  %6436 = vmatmul.mubr.f32.vlgmr.msra.gmra.mrb[0].mxu1 %v1919_v33 }
 0x250   : > { %6408 = vmatprep.subr.mxu0 %v7080_v1  ;;  %6438 = vmatprep.subr.mxu1 %v7080_v1  ;;  %v1479_v37 = vand.u32 4294901760, %v7500_v34  ;;  %v1928_v38 = vand.u32 4294901760, %v7503_v35 }
 0x251   : > { %6410 = vmatprep.mubr.msk.f32.mxu0 %vm7086_vm0, %v7080_v1  ;;  %6440 = vmatprep.mubr.msk.f32.mxu1 %vm7086_vm0, %v7080_v1  ;;  %v536_v39 = vpop.permute.xlu1 %535 }
 0x252   : > { %v1480_v40 = vsub.f32 %v7500_v34, %v1479_v37  ;;  %v1929_v41 = vsub.f32 %v7503_v35, %v1928_v38 }
 0x254   : > { %v1481_v2 = vand.u32 4294901760, %v1480_v40  ;;  %v1930_v42 = vand.u32 4294901760, %v1929_v41 }
 0x255   : > { %v542_v36 = vpop.permute.xlu1 %541 }
 0x256   : > { %6409 = vmatpush3.msra.mxu0 %v1481_v2  ;;  %6439 = vmatpush3.msra.mxu1 %v1930_v42  ;;  %v560_v45 = vcombine.low %v536_v39, %v542_v36  ;;  %v561_v53 = vcombine.high %v536_v39, %v542_v36 }
 0x257   : > { %6411 = vmatmul.mubr.f32.vlgmr.msra.gmra.mrb[0].mxu0 %v7457_v5  ;;  %6413 = vmatprep.subr.mxu0 %v7080_v1 }
 0x258   : > { %6441 = vmatmul.mubr.f32.vlgmr.msra.gmra.mrb[0].mxu1 %v7459_v6  ;;  %6443 = vmatprep.subr.mxu1 %v7080_v1  ;;  %v568_v50 = vrot.slane %v560_v45, %v7373_v12  ;;  %v575_v59 = vrot.slane %v561_v53, %v7373_v12 }
 0x259   : > { %6414 = vmatpush3.msra.mxu0 %v7500_v34  ;;  %6444 = vmatpush3.msra.mxu1 %v7503_v35  ;;  %v2816_v34 = vsub.f32 %v7587_v21, %v2815_v29 }
 0x25a   : > { %6415 = vmatprep.mubr.msk.f32.mxu0 %vm7086_vm0, %v7080_v1  ;;  %6418 = vmatprep.subr.mxu0 %v7080_v1 }
 0x25b   : > { %6445 = vmatprep.mubr.msk.f32.mxu1 %vm7086_vm0, %v7080_v1  ;;  %6448 = vmatprep.subr.mxu1 %v7080_v1  ;;  %v2817_v39 = vand.u32 4294901760, %v2816_v34 }
 0x25c   : > { %v539_v46 = vpop.permute.xlu0 %538 }
 0x25d   : > { %v544_v49 = vcombine.low %v7417_v25, %v539_v46  ;;  %v545_v52 = vcombine.high %v7417_v25, %v539_v46  ;;  %v1391_v25 = vrot.slane %v1377_v51, %v7378_v22 }
 0x25f   : > { %6416 = vmatmul.mubr.f32.vlgmr.msra.gmra.mrb[0].mxu0 %v7468_v11  ;;  %v552_v54 = vrot.slane %v544_v49, %v7373_v12  ;;  %v559_v58 = vrot.slane %v545_v52, %v7373_v12  ;;  %v1394_v3 = vcombine.low %v1375_v63, %v1391_v25  ;;  %v1395_v8 = vcombine.high %v1375_v63, %v1391_v25 }
 0x260   : > { %6419 = vmatpush3.msra.mxu0 %v7493_v30  ;;  %6446 = vmatmul.mubr.f32.vlgmr.msra.gmra.mrb[0].mxu1 %v7471_v13 }
 0x261   : > { %6449 = vmatpush3.msra.mxu1 %v7495_v31  ;;  %6420 = vmatprep.mubr.msk.f32.mxu0 %vm7086_vm0, %v7080_v1  ;;  %v576_v56 = vcombine.low %v552_v54, %v568_v50  ;;  %v577_v61 = vcombine.high %v552_v54, %v568_v50  ;;  %v592_v7 = vcombine.low %v559_v58, %v575_v59  ;;  %v7571_v11 = vand.u32 4294901760, %v1394_v3 }
 0x262   : > { %6423 = vmatprep.subr.mxu0 %v7080_v1  ;;  %6450 = vmatprep.mubr.msk.f32.mxu1 %vm7086_vm0, %v7080_v1  ;;  %v7577_v13 = vand.u32 4294901760, %v1395_v8  ;;  %v593_v18 = vcombine.high %v559_v58, %v575_v59 }
 0x263   : > { %6453 = vmatprep.subr.mxu1 %v7080_v1  ;;  %v584_v60 = vrot.slane %v576_v56, %v7378_v22  ;;  %v591_v9 = vrot.slane %v577_v61, %v7378_v22  ;;  %v600_v16 = vrot.slane %v592_v7, %v7378_v22 }
 0x264   : > { %v2825_v23 = vsub.f32 %v1395_v8, %v7577_v13  ;;  %v607_v26 = vrot.slane %v593_v18, %v7378_v22 }
 0x265   : > { %3256 = vxpose.xlu0.b32.start.end [1/1] (short) (narrow) %v584_v60, 8  ;;  %v608_v0 = vcombine.high %v584_v60, %v7080_v1  ;;  %v609_v17 = vcombine.high %v591_v9, %v7080_v1  ;;  %v610_v24 = vcombine.high %v600_v16, %v7080_v1 }
 0x267   : > { %6421 = vmatmul.mubr.f32.vlgmr.msra.gmra.mrb[0].mxu0 %v1468_v19  ;;  %3288 = vxpose.xlu1.b32.start.end [1/1] (short) (narrow) %v608_v0, 8  ;;  %v7581_v19 = vsub.f32 %v2296_v4, %v7566_v14 }
 0x268   : > { %6424 = vmatpush3.msra.mxu0 %v1479_v37  ;;  %6451 = vmatmul.mubr.f32.vlgmr.msra.gmra.mrb[0].mxu1 %v1917_v20  ;;  %v7584_v20 = vsub.f32 %v1394_v3, %v7571_v11 }
 0x269   : > { %6454 = vmatpush3.msra.mxu1 %v1928_v38  ;;  %6425 = vmatprep.mubr.msk.f32.mxu0 %vm7086_vm0, %v7080_v1  ;;  %v2366_v27 = vand.u32 4294901760, %v7581_v19 }
 0x26a   : > { %6428 = vmatprep.subr.mxu0 %v7080_v1  ;;  %6455 = vmatprep.mubr.msk.f32.mxu1 %vm7086_vm0, %v7080_v1  ;;  %v2377_v28 = vand.u32 4294901760, %v7584_v20 }
 0x26b   : > { %6458 = vmatprep.subr.mxu1 %v7080_v1  ;;  %3320 = vxpose.xlu0.b32.start.end [1/1] (short) (narrow) %v591_v9, 8  ;;  %v2367_v32 = vsub.f32 %v7581_v19, %v2366_v27 }
 0x26c   : > { %3384 = vxpose.xlu1.b32.start.end [1/1] (short) (narrow) %v600_v16, 8  ;;  %v2378_v33 = vsub.f32 %v7584_v20, %v2377_v28 }
 0x26d   : > { %v2368_v37 = vand.u32 4294901760, %v2367_v32 }
 0x26e   : > { %v2379_v38 = vand.u32 4294901760, %v2378_v33 }
 0x26f   : > { %6426 = vmatmul.mubr.f32.vlgmr.msra.gmra.mrb[0].mxu0 %v7457_v5  ;;  %3352 = vxpose.xlu0.b32.start.end [1/1] (short) (narrow) %v609_v17, 8 }
 0x270   : > { %6429 = vmatpush3.msra.mxu0 %v7493_v30  ;;  %6456 = vmatmul.mubr.f32.vlgmr.msra.gmra.mrb[0].mxu1 %v7459_v6  ;;  %v2826_v30 = vand.u32 4294901760, %v2825_v23 }
 0x271   : > { %6459 = vmatpush3.msra.mxu1 %v7495_v31  ;;  %6430 = vmatprep.mubr.msk.f32.mxu0 %vm7086_vm0, %v7080_v1  ;;  %v611_v31 = vcombine.high %v607_v26, %v7080_v1 }
 0x272   : > { %6460 = vmatprep.mubr.msk.f32.mxu1 %vm7086_vm0, %v7080_v1  ;;  %6463 = vmatprep.subr.mxu0 %v7080_v1  ;;  %v2827_v35 = vsub.f32 %v2825_v23, %v2826_v30 }
 0x273   : > { %6493 = vmatprep.subr.mxu1 %v7080_v1  ;;  %3416 = vxpose.xlu0.b32.start.end [1/1] (short) (narrow) %v610_v24, 8 }
 0x274   : > { %3448 = vxpose.xlu1.b32.start.end [1/1] (short) (narrow) %v607_v26, 8 }
 0x277   : > { %6431 = vmatmul.mubr.f32.vlgmr.msra.gmra.mrb[0].mxu0 %v7457_v5  ;;  %3480 = vxpose.xlu0.b32.start.end [1/1] (short) (narrow) %v611_v31, 8  ;;  %v2828_v5 = vand.u32 4294901760, %v2827_v35 }
 0x278   : > { %6461 = vmatmul.mubr.f32.vlgmr.msra.gmra.mrb[0].mxu1 %v7459_v6  ;;  %6464 = vmatpush3.msra.mxu0 %v7571_v11 }
 0x279   : > { %6494 = vmatpush3.msra.mxu1 %v7577_v13  ;;  %6465 = vmatprep.mubr.msk.f32.mxu0 %vm7086_vm0, %v7080_v1 }
 0x27a   : > { %6468 = vmatprep.subr.mxu0 %v7080_v1  ;;  %6495 = vmatprep.mubr.msk.f32.mxu1 %vm7086_vm0, %v7080_v1 }
 0x27b   : > { %6498 = vmatprep.subr.mxu1 %v7080_v1  ;;  %6466 = vmatmul.mubr.f32.vlgmr.msra.gmra.mrb[2].mxu0 %v2368_v37 }
 0x27c   : > { %6469 = vmatpush3.msra.mxu0 %v2379_v38  ;;  %6496 = vmatmul.mubr.f32.vlgmr.msra.gmra.mrb[2].mxu1 %v2817_v39 }
 0x27d   : > { %6499 = vmatpush3.msra.mxu1 %v2828_v5  ;;  %6470 = vmatprep.mubr.msk.f32.mxu0 %vm7086_vm0, %v7080_v1 }
 0x27e   : > { %6473 = vmatprep.subr.mxu0 %v7080_v1  ;;  %6500 = vmatprep.mubr.msk.f32.mxu1 %vm7086_vm0, %v7080_v1 }
 0x27f   : > { %6503 = vmatprep.subr.mxu1 %v7080_v1 }
 0x283   : > { %6471 = vmatmul.mubr.f32.vlgmr.msra.gmra.mrb[2].mxu0 %v7566_v14 }
 0x284   : > { %6474 = vmatpush3.msra.mxu0 %v7584_v20  ;;  %6501 = vmatmul.mubr.f32.vlgmr.msra.gmra.mrb[2].mxu1 %v7573_v15 }
 0x285   : > { %6504 = vmatpush3.msra.mxu1 %v2825_v23  ;;  %6475 = vmatprep.mubr.msk.f32.mxu0 %vm7086_vm0, %v7080_v1 }
 0x286   : > { %6478 = vmatprep.subr.mxu0 %v7080_v1  ;;  %6505 = vmatprep.mubr.msk.f32.mxu1 %vm7086_vm0, %v7080_v1 }
 0x287   : > { %6508 = vmatprep.subr.mxu1 %v7080_v1 }
 0x28b   : > { %6476 = vmatmul.mubr.f32.vlgmr.msra.gmra.mrb[2].mxu0 %v7581_v19 }
 0x28c   : > { %6479 = vmatpush3.msra.mxu0 %v7571_v11  ;;  %6506 = vmatmul.mubr.f32.vlgmr.msra.gmra.mrb[2].mxu1 %v7587_v21 }
 0x28d   : > { %6509 = vmatpush3.msra.mxu1 %v7577_v13  ;;  %6480 = vmatprep.mubr.msk.f32.mxu0 %vm7086_vm0, %v7080_v1 }
 0x28e   : > { %6483 = vmatprep.subr.mxu0 %v7080_v1  ;;  %6510 = vmatprep.mubr.msk.f32.mxu1 %vm7086_vm0, %v7080_v1 }
 0x28f   : > { %6513 = vmatprep.subr.mxu1 %v7080_v1 }
 0x293   : > { %6481 = vmatmul.mubr.f32.vlgmr.msra.gmra.mrb[2].mxu0 %v2366_v27 }
 0x294   : > { %6484 = vmatpush3.msra.mxu0 %v2377_v28  ;;  %6511 = vmatmul.mubr.f32.vlgmr.msra.gmra.mrb[2].mxu1 %v2815_v29  ;;  %v6296_v28 = vld [vmem:[%s329_s17] ss:$0 sm:$0xff] }
 0x295   : > { %6514 = vmatpush3.msra.mxu1 %v2826_v30  ;;  %6485 = vmatprep.mubr.msk.f32.mxu0 %vm7086_vm0, %v7080_v1 }
 0x296   : > { %6488 = vmatprep.subr.mxu0 %v7080_v1  ;;  %6515 = vmatprep.mubr.msk.f32.mxu1 %vm7086_vm0, %v7080_v1 }
 0x297   : > { %6518 = vmatprep.subr.mxu1 %v7080_v1 }
 0x29b   : > { %6486 = vmatmul.mubr.f32.vlgmr.msra.gmra.mrb[2].mxu0 %v7566_v14 }
 0x29c   : > { %6489 = vmatpush3.msra.mxu0 %v7571_v11  ;;  %6516 = vmatmul.mubr.f32.vlgmr.msra.gmra.mrb[2].mxu1 %v7573_v15 }
 0x29d   : > { %6519 = vmatpush3.msra.mxu1 %v7577_v13  ;;  %6490 = vmatprep.mubr.msk.f32.mxu0 %vm7086_vm0, %v7080_v1 }
 0x29e   : > { %6520 = vmatprep.mubr.msk.f32.mxu1 %vm7086_vm0, %v7080_v1  ;;  %6523 = vmatprep.subr.mxu0 %v7080_v1 }
 0x29f   : > { %6553 = vmatprep.subr.mxu1 %v7080_v1 }
 0x2a3   : > { %6491 = vmatmul.mubr.f32.vlgmr.msra.gmra.mrb[2].mxu0 %v7566_v14 }
 0x2a4   : > { %6521 = vmatmul.mubr.f32.vlgmr.msra.gmra.mrb[2].mxu1 %v7573_v15  ;;  %6525 = vmatprep.mubr.msk.f32.mxu0 %vm7086_vm0, %v7080_v1 }
 0x2a5   : > { %6555 = vmatprep.mubr.msk.f32.mxu1 %vm7086_vm0, %v7080_v1 }
 0x2e5   : > { %v3272_v6 = vpop.trf.xlu0 }
 0x2e7   : > { %v3304_v40 = vpop.trf.xlu1 }
 0x2eb   : > { %v3336_v41 = vpop.trf.xlu0 }
 0x2ec   : > { %v3513_v2 = vcombine.high %v3272_v6, %v3336_v41  ;;  %v3400_v42 = vpop.trf.xlu1  ;;  %v3512_v36 = vcombine.low %v3272_v6, %v3336_v41 }
 0x2ee   : > { %v3527_v44 = vrot.slane %v3513_v2, %v7373_v12  ;;  %v3520_v48 = vrot.slane %v3512_v36, %v7373_v12 }
 0x2ef   : > { %v3368_v43 = vpop.trf.xlu0 }
 0x2f0   : > { %v3528_v45 = vcombine.low %v3304_v40, %v3368_v43  ;;  %v3529_v46 = vcombine.high %v3304_v40, %v3368_v43 }
 0x2f2   : > { %v3543_v47 = vrot.slane %v3529_v46, %v7373_v12  ;;  %v3536_v49 = vrot.slane %v3528_v45, %v7373_v12 }
 0x2f3   : > { %v3432_v50 = vpop.trf.xlu0 }
 0x2f4   : > { %v3592_v51 = vcombine.low %v3527_v44, %v3543_v47  ;;  %v3593_v52 = vcombine.high %v3527_v44, %v3543_v47  ;;  %v3464_v53 = vpop.trf.xlu1  ;;  %v3576_v57 = vcombine.low %v3520_v48, %v3536_v49  ;;  %v3577_v61 = vcombine.high %v3520_v48, %v3536_v49 }
 0x2f5   : > { %v3544_v54 = vcombine.low %v3400_v42, %v3464_v53  ;;  %v3545_v55 = vcombine.high %v3400_v42, %v3464_v53 }
 0x2f6   : > { %v3584_v0 = vrot.slane %v3576_v57, %v7378_v22  ;;  %v3591_v9 = vrot.slane %v3577_v61, %v7378_v22  ;;  %v3600_v10 = vrot.slane %v3592_v51, %v7378_v22  ;;  %v7678_v14 = vrot.slane %v3593_v52, %v7378_v22 }
 0x2f7   : > { %v3496_v56 = vpop.trf.xlu0  ;;  %v3552_v59 = vrot.slane %v3544_v54, %v7373_v12  ;;  %v3559_v60 = vrot.slane %v3545_v55, %v7373_v12 }
 0x2f8   : > { %v3560_v25 = vcombine.low %v3432_v50, %v3496_v56  ;;  %v3561_v58 = vcombine.high %v3432_v50, %v3496_v56 }
 0x2fa   : > { %v3568_v62 = vrot.slane %v3560_v25, %v7373_v12  ;;  %v3575_v63 = vrot.slane %v3561_v58, %v7373_v12 }
 0x2fc   : > { %v3624_v3 = vcombine.low %v3559_v60, %v3575_v63  ;;  %v3625_v4 = vcombine.high %v3559_v60, %v3575_v63  ;;  %v3608_v7 = vcombine.low %v3552_v59, %v3568_v62  ;;  %v3609_v8 = vcombine.high %v3552_v59, %v3568_v62 }
 0x2fe   : > { %v3616_v11 = vrot.slane %v3608_v7, %v7378_v22  ;;  %v3623_v15 = vrot.slane %v3609_v8, %v7378_v22  ;;  %v3632_v16 = vrot.slane %v3624_v3, %v7378_v22  ;;  %v7684_v13 = vrot.slane %v3625_v4, %v7378_v22 }
 0x300   : > { %v3641_v17 = vcombine.high %v3584_v0, %v3616_v11  ;;  %v3640_v18 = vcombine.low %v3584_v0, %v3616_v11  ;;  %v3645_v19 = vcombine.high %v3600_v10, %v3632_v16  ;;  %v3644_v20 = vcombine.low %v3600_v10, %v3632_v16 }
 0x301   : > { %v3647_v21 = vcombine.high %v7678_v14, %v7684_v13  ;;  %v3646_v23 = vcombine.low %v7678_v14, %v7684_v13  ;;  %v3643_v24 = vcombine.high %v3591_v9, %v3623_v15  ;;  %v3642_v26 = vcombine.low %v3591_v9, %v3623_v15 }
 0x302   : > { %3680 = vxpose.xlu0.b32.start.end [1/1] (short) (narrow) %v3641_v17, 8  ;;  %3648 = vxpose.xlu1.b32.start.end [1/1] (short) (narrow) %v3640_v18, 8 }
 0x306   : > { %3744 = vxpose.xlu0.b32.start.end [1/1] (short) (narrow) %v3643_v24, 8  ;;  %3712 = vxpose.xlu1.b32.start.end [1/1] (short) (narrow) %v3642_v26, 8 }
 0x34a   : > { %v1842_v27 = vpop.f32.mrb[0].mxu0 }
 0x34b   : > { %v3193_v29 = vmul.f32 0.35355338, %v1842_v27  ;;  %v2291_v30 = vpop.f32.mrb[0].mxu1  ;;  %v6432_v31 = vpop.f32.mrb[1].mxu0 }
 0x34c   : > { %v3194_v32 = vmul.f32 0.35355338, %v2291_v30  ;;  %v6462_v33 = vpop.f32.mrb[1].mxu1 }
 0x34d   : > { %v3204_v34 = vadd.f32 %v6296_v28, %v3193_v29 }
 0x34e   : > { %v3205_v35 = vadd.f32 %v6296_v28, %v3194_v32 }
 0x34f   : > { %v3208_v37 = vsel %vm1396_vm1, %v3204_v34, -inf }
 0x350   : > { %3209 = vmax.xlane.f32.xlu0 %v3208_v37  ;;  %v3211_v38 = vsel %vm1396_vm1, %v3205_v35, -inf }
 0x351   : > { %3212 = vmax.xlane.f32.xlu1 %v3211_v38 }
 0x376   : > { %v2740_v39 = vpop.f32.mrb[2].mxu0 }
 0x377   : > { %v3195_v5 = vmul.f32 0.35355338, %v2740_v39  ;;  %v3189_v6 = vpop.f32.mrb[2].mxu1  ;;  %v6492_v40 = vpop.f32.mrb[3].mxu0 }
 0x378   : > { %v3196_v41 = vmul.f32 0.35355338, %v3189_v6  ;;  %v6522_v2 = vpop.f32.mrb[3].mxu1 }
 0x379   : > { %v3206_v42 = vadd.f32 %v6296_v28, %v3195_v5 }
 0x37a   : > { %v3207_v36 = vadd.f32 %v6296_v28, %v3196_v41 }
 0x37b   : > { %v3214_v54 = vsel %vm1396_vm1, %v3206_v42, -inf }
 0x37c   : > { %v3217_v53 = vsel %vm1396_vm1, %v3207_v36, -inf }
 0x37d   : > { %3808 = vxpose.xlu0.b32.start.end [1/1] (short) (narrow) %v3645_v19, 8 }
 0x382   : > { %v3696_v43 = vpop.trf.xlu0  ;;  %v3664_v44 = vpop.trf.xlu1 }
 0x384   : > { %3776 = vxpose.xlu1.b32.start.end [1/1] (short) (narrow) %v3644_v20, 8 }
 0x386   : > { %v3760_v45 = vpop.trf.xlu0  ;;  %v3728_v46 = vpop.trf.xlu1 }
 0x387   : > { %v3912_v47 = vcombine.low %v3696_v43, %v3760_v45  ;;  %v3904_v48 = vcombine.low %v3664_v44, %v3728_v46 }
 0x389   : > { %v7695_v49 = vrot.slane %v3912_v47, %v7373_v12  ;;  %v7698_v50 = vrot.slane %v3904_v48, %v7373_v12 }
 0x38b   : > { %v3936_v51 = vcombine.low %v7698_v50, %v7695_v49  ;;  %v3937_v52 = vcombine.high %v7698_v50, %v7695_v49 }
 0x38d   : > { %v3944_v37 = vrot.slane %v3936_v51, %v7378_v22 }
 0x3aa   : > { %3218 = vmax.xlane.f32.xlu0 %v3217_v53 }
 0x3ab   : > { %3215 = vmax.xlane.f32.xlu1 %v3214_v54 }
 0x3dd   : > { %v3210_v55 = vpop.xlane.xlu0 %3209 }
 0x3de   : > { %v3220_v56 = vsub.f32 %v3204_v34, %v3210_v55  ;;  %v3213_v57 = vpop.xlane.xlu1 %3212 }
 0x3df   : > { %v3221_v25 = vsub.f32 %v3205_v35, %v3213_v57 }
 0x3e0   : > { %v3224_v58 = vmul.f32 1.442695, %v3220_v56 }
 0x3e1   : > { %v3226_v59 = vmul.f32 1.442695, %v3221_v25 }
 0x3e2   : > { %6816 = vpow2.f32 %v3224_v58 }
 0x3e3   : > { %6818 = vpow2.f32 %v3226_v59 }
 0x3ec   : > { %v6817_v60 = vpop.eup %6816 }
 0x3ed   : > { %v6819_v61 = vpop.eup %6818  ;;  %v3232_v62 = vsel %vm1396_vm1, %v6817_v60, 0.0 }
 0x3ee   : > { %3233 = vadd.xlane.f32.xlu1 %v3232_v62  ;;  %v3235_v63 = vsel %vm1396_vm1, %v6819_v61, 0.0 }
 0x3ef   : > { %3236 = vadd.xlane.f32.xlu0 %v3235_v63 }
 0x3fd   : > { %v3824_v0 = vpop.trf.xlu0 }
 0x404   : > { %v3792_v3 = vpop.trf.xlu1 }
 0x41c   : > { %3872 = vxpose.xlu0.b32.start.end [1/1] (short) (narrow) %v3647_v21, 8 }
 0x421   : > { %3840 = vxpose.xlu1.b32.start.end [1/1] (short) (narrow) %v3646_v23, 8 }
 0x437   : > { %v3219_v4 = vpop.xlane.xlu0 %3218 }
 0x438   : > { %v3223_v7 = vsub.f32 %v3207_v36, %v3219_v4  ;;  %v3216_v8 = vpop.xlane.xlu1 %3215 }
 0x439   : > { %v3222_v9 = vsub.f32 %v3206_v42, %v3216_v8 }
 0x43a   : > { %v3230_v10 = vmul.f32 1.442695, %v3223_v7 }
 0x43b   : > { %v3228_v14 = vmul.f32 1.442695, %v3222_v9 }
 0x43c   : > { %6820 = vpow2.f32 %v3230_v10 }
 0x43d   : > { %6822 = vpow2.f32 %v3228_v14 }
 0x446   : > { %v7708_v11 = vpop.eup %6820 }
 0x447   : > { %v7710_v15 = vpop.eup %6822  ;;  %v3241_v16 = vsel %vm1396_vm1, %v7708_v11, 0.0 }
 0x448   : > { %v3238_v13 = vsel %vm1396_vm1, %v7710_v15, 0.0 }
 0x449   : > { %3242 = vadd.xlane.f32.xlu0 %v3241_v16  ;;  %3239 = vadd.xlane.f32.xlu1 %v3238_v13 }
 0x47b   : > { %v3234_v17 = vpop.xlane.xlu1 %3233 }
 0x47c   : > { %v3237_v18 = vpop.xlane.xlu0 %3236  ;;  %6824 = vrcp.f32 %v3234_v17 }
 0x47d   : > { %6826 = vrcp.f32 %v3237_v18 }
 0x486   : > { %v6825_v19 = vpop.eup %6824 }
 0x487   : > { %v6827_v20 = vpop.eup %6826  ;;  %v3245_v21 = vmul.f32 %v6825_v19, %v6817_v60 }
 0x488   : > { %v3247_v23 = vmul.f32 %v6827_v20, %v6819_v61  ;;  %v3951_v61 = vrot.slane %v3937_v52, %v7378_v22 }
 0x489   : > { %3252 = vst.msk [vmem:[%s7717_s26] sm:$0xff] %vm1396_vm1, %v3245_v21  ;;  %v3976_v24 = vsel %vm1396_vm1, %v3245_v21, 0 }
 0x48a   : > { %v7722_v26 = vand.u32 4294901760, %v3976_v24  ;;  %3253 = vst.msk [vmem:[%s7717_s26 + $0x8] sm:$0xff] %vm1396_vm1, %v3247_v23  ;;  %v4428_v27 = vsel %vm1396_vm1, %v3247_v23, 0 }
 0x48b   : > { %v7727_v28 = vand.u32 4294901760, %v4428_v27 }
 0x48c   : > { %6524 = vmatpush3.xpose.msra.mxu0 %v7722_v26  ;;  %v4056_v39 = vsub.f32 %v3976_v24, %v7722_v26 }
 0x48d   : > { %6554 = vmatpush3.xpose.msra.mxu1 %v7727_v28  ;;  %6528 = vmatprep.subr.mxu0 %v7080_v1  ;;  %v4508_v5 = vsub.f32 %v4428_v27, %v7727_v28 }
 0x48e   : > { %6558 = vmatprep.subr.mxu1 %v7080_v1  ;;  %v4057_v43 = vand.u32 4294901760, %v4056_v39 }
 0x48f   : > { %v4509_v44 = vand.u32 4294901760, %v4508_v5 }
 0x490   : > { %v4058_v51 = vsub.f32 %v4056_v39, %v4057_v43 }
 0x491   : > { %v4510_v53 = vsub.f32 %v4508_v5, %v4509_v44 }
 0x492   : > { %v4059_v25 = vand.u32 4294901760, %v4058_v51 }
 0x493   : > { %v4511_v58 = vand.u32 4294901760, %v4510_v53 }
 0x49c   : > { %v3888_v29 = vpop.trf.xlu0 }
 0x49d   : > { %v3928_v30 = vcombine.low %v3824_v0, %v3888_v29 }
 0x49f   : > { %v3935_v33 = vrot.slane %v3928_v30, %v7373_v12 }
 0x4a1   : > { %v3856_v31 = vpop.trf.xlu1 }
 0x4a2   : > { %v3920_v32 = vcombine.low %v3792_v3, %v3856_v31 }
 0x4a4   : > { %v3927_v34 = vrot.slane %v3920_v32, %v7373_v12 }
 0x4a6   : > { %v3952_v35 = vcombine.low %v3927_v34, %v3935_v33  ;;  %v3953_v59 = vcombine.high %v3927_v34, %v3935_v33 }
 0x4a8   : > { %v3960_v38 = vrot.slane %v3952_v35, %v7378_v22  ;;  %v3967_v60 = vrot.slane %v3953_v59, %v7378_v22 }
 0x4aa   : > { %v3968_v6 = vcombine.low %v3944_v37, %v3960_v38  ;;  %v3969_v40 = vcombine.high %v3944_v37, %v3960_v38  ;;  %v3971_v62 = vcombine.high %v3951_v61, %v3967_v60  ;;  %v3970_v63 = vcombine.low %v3951_v61, %v3967_v60 }
 0x4ac   : > { %v3973_v41 = vsel %vm1396_vm1, %v3968_v6, 0  ;;  %v4425_v2 = vsel %vm1396_vm1, %v3969_v40, 0  ;;  %v5329_v0 = vsel %vm1396_vm1, %v3971_v62, 0  ;;  %v4877_v49 = vsel %vm1396_vm1, %v3970_v63, 0 }
 0x4ad   : > { %v7744_v42 = vand.u32 4294901760, %v3973_v41  ;;  %v7746_v36 = vand.u32 4294901760, %v4425_v2  ;;  %v7787_v3 = vand.u32 4294901760, %v5329_v0  ;;  %v7791_v4 = vand.u32 4294901760, %v4877_v49 }
 0x4af   : > { %v4045_v45 = vsub.f32 %v3973_v41, %v7744_v42  ;;  %v4497_v46 = vsub.f32 %v4425_v2, %v7746_v36  ;;  %v5401_v7 = vsub.f32 %v5329_v0, %v7787_v3  ;;  %v4949_v8 = vsub.f32 %v4877_v49, %v7791_v4 }
 0x4b1   : > { %v4046_v47 = vand.u32 4294901760, %v4045_v45  ;;  %v4498_v48 = vand.u32 4294901760, %v4497_v46  ;;  %v5402_v9 = vand.u32 4294901760, %v5401_v7  ;;  %v4950_v14 = vand.u32 4294901760, %v4949_v8 }
 0x4b3   : > { %v4047_v54 = vsub.f32 %v4045_v45, %v4046_v47  ;;  %v4499_v55 = vsub.f32 %v4497_v46, %v4498_v48  ;;  %v5403_v19 = vsub.f32 %v5401_v7, %v5402_v9  ;;  %v4951_v23 = vsub.f32 %v4949_v8, %v4950_v14 }
 0x4b5   : > { %v4048_v56 = vand.u32 4294901760, %v4047_v54  ;;  %v4500_v57 = vand.u32 4294901760, %v4499_v55 }
 0x4b7   : > { %6526 = vmatmul.mubr.f32.vlgmr.msra.gmra.mrb[4].mxu0 %v4048_v56  ;;  %6556 = vmatmul.mubr.f32.vlgmr.msra.gmra.mrb[4].mxu1 %v4500_v57 }
 0x4b8   : > { %6529 = vmatpush3.xpose.msra.mxu0 %v4059_v25  ;;  %6559 = vmatpush3.xpose.msra.mxu1 %v4511_v58 }
 0x4b9   : > { %6530 = vmatprep.mubr.msk.f32.mxu0 %vm7086_vm0, %v7080_v1  ;;  %6533 = vmatprep.subr.mxu0 %v7080_v1 }
 0x4ba   : > { %6560 = vmatprep.mubr.msk.f32.mxu1 %vm7086_vm0, %v7080_v1  ;;  %6563 = vmatprep.subr.mxu1 %v7080_v1 }
 0x4bf   : > { %6531 = vmatmul.mubr.f32.vlgmr.msra.gmra.mrb[4].mxu0 %v7744_v42  ;;  %6561 = vmatmul.mubr.f32.vlgmr.msra.gmra.mrb[4].mxu1 %v7746_v36 }
 0x4c0   : > { %6534 = vmatpush3.xpose.msra.mxu0 %v4056_v39  ;;  %6564 = vmatpush3.xpose.msra.mxu1 %v4508_v5 }
 0x4c1   : > { %6535 = vmatprep.mubr.msk.f32.mxu0 %vm7086_vm0, %v7080_v1  ;;  %6538 = vmatprep.subr.mxu0 %v7080_v1 }
 0x4c2   : > { %6565 = vmatprep.mubr.msk.f32.mxu1 %vm7086_vm0, %v7080_v1  ;;  %6568 = vmatprep.subr.mxu1 %v7080_v1 }
 0x4c7   : > { %6536 = vmatmul.mubr.f32.vlgmr.msra.gmra.mrb[4].mxu0 %v4045_v45  ;;  %6566 = vmatmul.mubr.f32.vlgmr.msra.gmra.mrb[4].mxu1 %v4497_v46 }
 0x4c8   : > { %6539 = vmatpush3.xpose.msra.mxu0 %v7722_v26  ;;  %6569 = vmatpush3.xpose.msra.mxu1 %v7727_v28 }
 0x4c9   : > { %6540 = vmatprep.mubr.msk.f32.mxu0 %vm7086_vm0, %v7080_v1  ;;  %6543 = vmatprep.subr.mxu0 %v7080_v1 }
 0x4ca   : > { %6570 = vmatprep.mubr.msk.f32.mxu1 %vm7086_vm0, %v7080_v1  ;;  %6573 = vmatprep.subr.mxu1 %v7080_v1 }
 0x4cf   : > { %6541 = vmatmul.mubr.f32.vlgmr.msra.gmra.mrb[4].mxu0 %v4046_v47  ;;  %6571 = vmatmul.mubr.f32.vlgmr.msra.gmra.mrb[4].mxu1 %v4498_v48 }
 0x4d0   : > { %6544 = vmatpush3.xpose.msra.mxu0 %v4057_v43  ;;  %6574 = vmatpush3.xpose.msra.mxu1 %v4509_v44 }
 0x4d1   : > { %6545 = vmatprep.mubr.msk.f32.mxu0 %vm7086_vm0, %v7080_v1  ;;  %6548 = vmatprep.subr.mxu0 %v7080_v1 }
 0x4d2   : > { %6575 = vmatprep.mubr.msk.f32.mxu1 %vm7086_vm0, %v7080_v1  ;;  %6578 = vmatprep.subr.mxu1 %v7080_v1 }
 0x4d6   : > { %v3243_v50 = vpop.xlane.xlu0 %3242  ;;  %v3240_v52 = vpop.xlane.xlu1 %3239 }
 0x4d7   : > { %6828 = vrcp.f32 %v3243_v50  ;;  %6546 = vmatmul.mubr.f32.vlgmr.msra.gmra.mrb[4].mxu0 %v7744_v42  ;;  %6576 = vmatmul.mubr.f32.vlgmr.msra.gmra.mrb[4].mxu1 %v7746_v36 }
 0x4d8   : > { %6830 = vrcp.f32 %v3240_v52  ;;  %6549 = vmatpush3.xpose.msra.mxu0 %v7722_v26  ;;  %6579 = vmatpush3.xpose.msra.mxu1 %v7727_v28  ;;  %v5404_v28 = vand.u32 4294901760, %v5403_v19 }
 0x4d9   : > { %6550 = vmatprep.mubr.msk.f32.mxu0 %vm7086_vm0, %v7080_v1  ;;  %6580 = vmatprep.mubr.msk.f32.mxu1 %vm7086_vm0, %v7080_v1 }
 0x4da   : > { %6583 = vmatprep.subr.mxu0 %v7080_v1  ;;  %6613 = vmatprep.subr.mxu1 %v7080_v1 }
 0x4df   : > { %6551 = vmatmul.mubr.f32.vlgmr.msra.gmra.mrb[4].mxu0 %v7744_v42  ;;  %6581 = vmatmul.mubr.f32.vlgmr.msra.gmra.mrb[4].mxu1 %v7746_v36 }
 0x4e0   : > { %6585 = vmatprep.mubr.msk.f32.mxu0 %vm7086_vm0, %v7080_v1  ;;  %6615 = vmatprep.mubr.msk.f32.mxu1 %vm7086_vm0, %v7080_v1 }
 0x4e1   : > { %v6829_v10 = vpop.eup %6828 }
 0x4e2   : > { %v6831_v16 = vpop.eup %6830  ;;  %v3251_v13 = vmul.f32 %v6829_v10, %v7708_v11  ;;  %v4952_v11 = vand.u32 4294901760, %v4951_v23 }
 0x4e3   : > { %v3249_v17 = vmul.f32 %v6831_v16, %v7710_v15 }
 0x4e4   : > { %3255 = vst.msk [vmem:[%s7717_s26 + $0x18] sm:$0xff] %vm1396_vm1, %v3251_v13  ;;  %v5332_v18 = vsel %vm1396_vm1, %v3251_v13, 0 }
 0x4e5   : > { %3254 = vst.msk [vmem:[%s7717_s26 + $0x10] sm:$0xff] %vm1396_vm1, %v3249_v17  ;;  %v4880_v20 = vsel %vm1396_vm1, %v3249_v17, 0  ;;  %v5335_v21 = vand.u32 4294901760, %v5332_v18 }
 0x4e6   : > { %v4883_v24 = vand.u32 4294901760, %v4880_v20 }
 0x4e7   : > { %6614 = vmatpush3.xpose.msra.mxu1 %v5335_v21  ;;  %v5412_v26 = vsub.f32 %v5332_v18, %v5335_v21 }
 0x4e8   : > { %6584 = vmatpush3.xpose.msra.mxu0 %v4883_v24  ;;  %v4960_v27 = vsub.f32 %v4880_v20, %v4883_v24  ;;  %6618 = vmatprep.subr.mxu1 %v7080_v1 }
 0x4e9   : > { %6588 = vmatprep.subr.mxu0 %v7080_v1  ;;  %v5413_v15 = vand.u32 4294901760, %v5412_v26 }
 0x4ea   : > { %6616 = vmatmul.mubr.f32.vlgmr.msra.gmra.mrb[6].mxu1 %v5404_v28  ;;  %v4961_v29 = vand.u32 4294901760, %v4960_v27 }
 0x4eb   : > { %6586 = vmatmul.mubr.f32.vlgmr.msra.gmra.mrb[6].mxu0 %v4952_v11  ;;  %v5414_v30 = vsub.f32 %v5412_v26, %v5413_v15  ;;  %6620 = vmatprep.mubr.msk.f32.mxu1 %vm7086_vm0, %v7080_v1 }
 0x4ec   : > { %v4962_v31 = vsub.f32 %v4960_v27, %v4961_v29  ;;  %6590 = vmatprep.mubr.msk.f32.mxu0 %vm7086_vm0, %v7080_v1 }
 0x4ed   : > { %v5415_v32 = vand.u32 4294901760, %v5414_v30 }
 0x4ee   : > { %v4963_v33 = vand.u32 4294901760, %v4962_v31 }
 0x4ef   : > { %6619 = vmatpush3.xpose.msra.mxu1 %v5415_v32 }
 0x4f0   : > { %6589 = vmatpush3.xpose.msra.mxu0 %v4963_v33  ;;  %6623 = vmatprep.subr.mxu1 %v7080_v1 }
 0x4f1   : > { %6593 = vmatprep.subr.mxu0 %v7080_v1 }
 0x4f2   : > { %6621 = vmatmul.mubr.f32.vlgmr.msra.gmra.mrb[6].mxu1 %v7787_v3 }
 0x4f3   : > { %6591 = vmatmul.mubr.f32.vlgmr.msra.gmra.mrb[6].mxu0 %v7791_v4  ;;  %6624 = vmatpush3.xpose.msra.mxu1 %v5412_v26 }
 0x4f4   : > { %6594 = vmatpush3.xpose.msra.mxu0 %v4960_v27  ;;  %6595 = vmatprep.mubr.msk.f32.mxu0 %vm7086_vm0, %v7080_v1 }
 0x4f5   : > { %6598 = vmatprep.subr.mxu0 %v7080_v1  ;;  %6625 = vmatprep.mubr.msk.f32.mxu1 %vm7086_vm0, %v7080_v1 }
 0x4f6   : > { %6628 = vmatprep.subr.mxu1 %v7080_v1 }
 0x4fa   : > { %6626 = vmatmul.mubr.f32.vlgmr.msra.gmra.mrb[6].mxu1 %v5401_v7 }
 0x4fb   : > { %6596 = vmatmul.mubr.f32.vlgmr.msra.gmra.mrb[6].mxu0 %v4949_v8  ;;  %6629 = vmatpush3.xpose.msra.mxu1 %v5335_v21 }
 0x4fc   : > { %6599 = vmatpush3.xpose.msra.mxu0 %v4883_v24  ;;  %6600 = vmatprep.mubr.msk.f32.mxu0 %vm7086_vm0, %v7080_v1 }
 0x4fd   : > { %6603 = vmatprep.subr.mxu0 %v7080_v1  ;;  %6630 = vmatprep.mubr.msk.f32.mxu1 %vm7086_vm0, %v7080_v1 }
 0x4fe   : > { %6633 = vmatprep.subr.mxu1 %v7080_v1 }
 0x502   : > { %6631 = vmatmul.mubr.f32.vlgmr.msra.gmra.mrb[6].mxu1 %v5402_v9 }
 0x503   : > { %6601 = vmatmul.mubr.f32.vlgmr.msra.gmra.mrb[6].mxu0 %v4950_v14  ;;  %6634 = vmatpush3.xpose.msra.mxu1 %v5413_v15 }
 0x504   : > { %6604 = vmatpush3.xpose.msra.mxu0 %v4961_v29  ;;  %6605 = vmatprep.mubr.msk.f32.mxu0 %vm7086_vm0, %v7080_v1 }
 0x505   : > { %6608 = vmatprep.subr.mxu0 %v7080_v1  ;;  %6635 = vmatprep.mubr.msk.f32.mxu1 %vm7086_vm0, %v7080_v1 }
 0x506   : > { %6638 = vmatprep.subr.mxu1 %v7080_v1 }
 0x50a   : > { %6636 = vmatmul.mubr.f32.vlgmr.msra.gmra.mrb[6].mxu1 %v7787_v3 }
 0x50b   : > { %6606 = vmatmul.mubr.f32.vlgmr.msra.gmra.mrb[6].mxu0 %v7791_v4  ;;  %6639 = vmatpush3.xpose.msra.mxu1 %v5335_v21 }
 0x50c   : > { %6609 = vmatpush3.xpose.msra.mxu0 %v4883_v24  ;;  %6610 = vmatprep.mubr.msk.f32.mxu0 %vm7086_vm0, %v7080_v1 }
 0x50d   : > { %6640 = vmatprep.mubr.msk.f32.mxu1 %vm7086_vm0, %v7080_v1 }
 0x512   : > { %6641 = vmatmul.mubr.f32.vlgmr.msra.gmra.mrb[6].mxu1 %v7787_v3 }
 0x513   : > { %6611 = vmatmul.mubr.f32.vlgmr.msra.gmra.mrb[6].mxu0 %v7791_v4 }
 0x5b2   : > { %v4420_v34 = vpop.f32.mrb[4].mxu0  ;;  %v4872_v35 = vpop.f32.mrb[4].mxu1 }
 0x5b3   : > { %5812 = vxpose.xlu0.b32.start.end [1/1] (short) (narrow) %v4872_v35, 8  ;;  %v6582_v37 = vpop.f32.mrb[5].mxu1  ;;  %5780 = vxpose.xlu1.b32.start.end [1/1] (short) (narrow) %v4420_v34, 8  ;;  %v6552_v38 = vpop.f32.mrb[5].mxu0 }
 0x5e5   : > { %v5776_v39 = vpop.f32.mrb[6].mxu1 }
 0x5e6   : > { %v5324_v5 = vpop.f32.mrb[6].mxu0  ;;  %5876 = vxpose.xlu0.b32.start.end [1/1] (short) (narrow) %v5776_v39, 8  ;;  %v6642_v6 = vpop.f32.mrb[7].mxu1 }
 0x5e7   : > { %5844 = vxpose.xlu1.b32.start.end [1/1] (short) (narrow) %v5324_v5, 8  ;;  %v6612_v40 = vpop.f32.mrb[7].mxu0 }
 0x633   : > { %v5828_v41 = vpop.trf.xlu0  ;;  %v5796_v2 = vpop.trf.xlu1 }
 0x666   : > { %v5892_v42 = vpop.trf.xlu0 }
 0x667   : > { %v5924_v1 = vcombine.low %v5828_v41, %v5892_v42  ;;  %v5925_v36 = vcombine.high %v5828_v41, %v5892_v42  ;;  %v5860_v43 = vpop.trf.xlu1 }
 0x668   : > { %v5908_v44 = vcombine.low %v5796_v2, %v5860_v43  ;;  %v5909_v45 = vcombine.high %v5796_v2, %v5860_v43 }
 0x669   : > { %v5932_v46 = vrot.slane %v5924_v1, %v7373_v12  ;;  %v5939_v47 = vrot.slane %v5925_v36, %v7373_v12 }
 0x66a   : > { %v5916_v48 = vrot.slane %v5908_v44, %v7373_v12  ;;  %v5923_v51 = vrot.slane %v5909_v45, %v7373_v12 }
 0x66c   : > { %v5940_v53 = vcombine.low %v5916_v48, %v5932_v46  ;;  %v5941_v54 = vcombine.high %v5916_v48, %v5932_v46  ;;  %v5956_v55 = vcombine.low %v5923_v51, %v5939_v47  ;;  %v5957_v56 = vcombine.high %v5923_v51, %v5939_v47 }
 0x66e   : > { %v5948_v57 = vrot.slane %v5940_v53, %v7378_v22  ;;  %v5955_v25 = vrot.slane %v5941_v54, %v7378_v22  ;;  %v5964_v58 = vrot.slane %v5956_v55, %v7378_v22  ;;  %v5971_v59 = vrot.slane %v5957_v56, %v7378_v22 }
 0x670   : > { %v5976_v60 = vcombine.low %v5948_v57, %v5955_v25  ;;  %v6297_v61 = vcombine.high %v5948_v57, %v5955_v25  ;;  %v5992_v62 = vcombine.low %v5964_v58, %v5971_v59  ;;  %v6298_v63 = vcombine.high %v5964_v58, %v5971_v59 }
 0x672   : > { %v5983_v0 = vrot.slane %v5976_v60, %v7373_v12  ;;  %v5991_v49 = vrot.slane %v6297_v61, %v7373_v12  ;;  %v5999_v50 = vrot.slane %v5992_v62, %v7373_v12  ;;  %v6007_v52 = vrot.slane %v6298_v63, %v7373_v12 }
 0x674   : > { %v6008_v3 = vcombine.low %v5983_v0, %v5991_v49  ;;  %v6024_v4 = vcombine.low %v5999_v50, %v6007_v52  ;;  %v6009_v7 = vcombine.high %v5983_v0, %v5991_v49  ;;  %v6025_v8 = vcombine.high %v5999_v50, %v6007_v52 }
 0x676   : > { %v6016_v9 = vrot.slane %v6008_v3, %v7378_v22  ;;  %v6032_v10 = vrot.slane %v6024_v4, %v7378_v22  ;;  %v6023_v14 = vrot.slane %v6009_v7, %v7378_v22  ;;  %v6039_v16 = vrot.slane %v6025_v8, %v7378_v22 }
 0x678   : > { %v6041_v12 = vcombine.high %v6016_v9, %v6032_v10  ;;  %v6042_v13 = vcombine.low %v6023_v14, %v6039_v16  ;;  %v6040_v17 = vcombine.low %v6016_v9, %v6032_v10 }
 0x679   : > { %6965 = shalt.err (!%p6962_p5)
}
 0x67a   : > { %s6966_s7 = scalar_lea.hbm %s7872_s10, 512  ;;  %s6970_s28 = scalar_lea.hbm %s7960_s5, 1024 }
 0x67b   : > { %p6967_p0 = scmp.ne.s32.totalorder %s7872_s10, %s6966_s7  ;;  %p6971_p12 = scmp.lt.u32.totalorder %s7872_s10, %s7960_s5 }
 0x67c   : > { %p6972_p10 = scmp.lt.u32.totalorder %s6970_s28, %s6966_s7  ;;  %p6974_p7 = scmp.lt.u32.totalorder %s6966_s7, %s7872_s10 }
 0x67d   : > { %p6968_p3 = pnand %p6967_p0, %p7992_p8 }
 0x67e   : > { %p6973_p4 = por %p6972_p10, %p6971_p12 }
 0x67f   : > { %p6969_p1 = pneg %p6968_p3 }
 0x680   : > { %p6975_p9 = por %p6974_p7, %p6973_p4 }
 0x682   : > { %p6976_p6 = pnand %p6975_p9, %p6969_p1 }
 0x684   : > { %6979 = shalt.err (!%p6976_p6)
}
 0x685   : > { %s7088_s11 = smov 128   ;;  %s7089_s27 = smov 8   ;;  %v6043_v22 = vcombine.high %v6023_v14, %v6039_v16  ;;  %vm6057_vm2 = vcmask 130048   ;;  %vm6059_vm3 = vcmask 195584   ;;  %vm6061_vm4 = vcmask 261120  }
 0x686   : > { %6732 = dma.vmem_to_hbm [thread:$0]  (%p7992_p8), %s7874_s14, 512, %s7872_s10, %s6069_s13, %s7088_s11, %s7088_s11, %s7089_s27  }
 0x687   : > { %6045 = vrot.lane.b32.xlu1 %v6041_v12, %s7089_s27  ;;  %s7090_s30 = smov 16   ;;  %s7091_s26 = smov 24  }
 0x688   : > { %6049 = vrot.lane.b32.xlu0 %v6042_v13, %s7090_s30  ;;  %s6301_s23 = sshll.u32 %s7066_s21, 7  ;;  %s367_s1 = scalar_lea.vmem [#allocation10], %s7343_s16 }
 0x689   : > { %s6083_s9 = sshll.u32 %s367_s1, 4  ;;  %s7906_s13 = scalar_lea.hbm %s7959_s4, %s6301_s23  ;;  %s7908_s9 = int_to_ptr.vmem [resolvable:$true] %s6083_s9 }
 0x68a   : > { %s6064_s15 = scalar_lea.sflag [#allocation4], %s7340_s29  ;;  %s6980_s21 = scalar_lea.vmem %s7908_s9, 128 }
 0x68b   : > { %6053 = vrot.lane.b32.xlu1 %v6043_v22, %s7091_s26  ;;  %p6981_p13 = scmp.ne.s32.totalorder %s7908_s9, %s6980_s21  ;;  %s7092_s16 = smov [#allocation10]  }
 0x68c   : > { %s6984_s18 = sshll.u32 %s7092_s16, 4  ;;  %s6985_s18 = int_to_ptr.vmem [resolvable:$false] %s6984_s18 }
 0x68d   : > { %p6982_p11 = pnand %p6981_p13, %p7992_p8  ;;  %s6986_s8 = scalar_lea.vmem %s6985_s18, 256 }
 0x68e   : > { %p6987_p5 = scmp.lt.s32.totalorder %s7908_s9, %s6985_s18  ;;  %p6988_p0 = scmp.lt.s32.totalorder %s6986_s8, %s6980_s21 }
 0x68f   : > { %p6983_p2 = pneg %p6982_p11 }
 0x690   : > { %p6989_p3 = por %p6988_p0, %p6987_p5 }
 0x692   : > { %p6990_p1 = pnand %p6989_p3, %p6983_p2 }
 0x6f9   : > { %v6046_v18 = vpop.permute.xlu1 %6045 }
 0x6fa   : > { %v6056_v19 = vsel %vm1396_vm1, %v6040_v17, %v6046_v18  ;;  %v6050_v20 = vpop.permute.xlu0 %6049 }
 0x6fb   : > { %v6058_v21 = vsel %vm6057_vm2, %v6056_v19, %v6050_v20 }
 0x6fd   : > { %v6054_v23 = vpop.permute.xlu1 %6053 }
 0x6fe   : > { %v6060_v24 = vsel %vm6059_vm3, %v6058_v21, %v6054_v23 }
 0x6ff   : > { %6062 = vst.msk [vmem:[%s367_s1] sm:$0xff] %vm6061_vm4, %v6060_v24 }
 0x700   : > { %6993 = shalt.err (!%p6990_p1)
}
 0x701   : > { %s6994_s29 = scalar_lea.hbm %s7906_s13, 128  ;;  %s6998_s20 = scalar_lea.hbm %s7959_s4, 256 }
 0x702   : > { %p6995_p12 = scmp.ne.s32.totalorder %s7906_s13, %s6994_s29  ;;  %p6999_p7 = scmp.lt.u32.totalorder %s7906_s13, %s7959_s4 }
 0x703   : > { %p7000_p9 = scmp.lt.u32.totalorder %s6998_s20, %s6994_s29  ;;  %p7002_p13 = scmp.lt.u32.totalorder %s6994_s29, %s7906_s13 }
 0x704   : > { %p6996_p10 = pnand %p6995_p12, %p7992_p8 }
 0x705   : > { %p7001_p6 = por %p7000_p9, %p6999_p7 }
 0x706   : > { %p6997_p4 = pneg %p6996_p10 }
 0x707   : > { %p7003_p11 = por %p7002_p13, %p7001_p6 }
 0x709   : > { %p7004_p2 = pnand %p7003_p11, %p6997_p4 }
 0x70b   : > { %7007 = shalt.err (!%p7004_p2)
}
 0x70c   : > { %6731 = dma.vmem_to_hbm [thread:$0]  (%p7992_p8), %s7908_s9, 128, %s7906_s13, %s6064_s15  }
 0x70d PF: > { %s7993_s17 = sld [smem:[#allocation18_spill]]  ;;  %s7994_s24 = sld [smem:[#allocation23_spill]] }
 0x70e   : > { %s7995_s11 = sld [smem:[#allocation20_spill]] }
 0x713   : > { %s6112_s27 = sand.u32 1, %s7993_s17   ;;  %p7996_p5 = scmp.ne.s32.totalorder %s7994_s24, 0 }
 0x714   : > { %p7997_p0 = scmp.ge.s32.totalorder %s7995_s11, 2  ;;  %s6113_s30 = scalar_lea.sflag [#allocation4], %s6112_s27 }
 0x716   : > { %p6749_p3 = pnand %p7997_p0, %p7996_p5 }
 0x718   : > { %7045 = dma.done.wait (!%p6749_p3), %s6113_s30, 128  }
 0x719   : > { %7047 = vsyncadd (!%p6749_p3), %s6113_s30, 4294967168  ;;  %s6122_s26 = scalar_lea.sflag [#allocation12], %s6112_s27 }
 0x71a   : > { %7049 = dma.done.wait (!%p6749_p3), %s6122_s26, 512  }
 0x71b   : > { %7051 = vsyncadd (!%p6749_p3), %s6122_s26, 4294966784  ;;  %s31_s23 = sadd.s32 1, %s7995_s11   ;;  %s7998_s6 = sld [smem:[#allocation19_spill]] }
 0x71c   : > { %p28_p1 = scmp.ge.s32.totalorder %s31_s23, 4   ;;  %s7999_s20 = sld [smem:[#allocation22_spill]] }
 0x71d   : > { %s8000_s1 = sld [smem:[#allocation21_spill]]  ;;  %s8001_s18 = smov %s7058_s19 }
 0x71e   : > { %s8003_s21 = smov %s7070_s22  ;;  %30 = sbr.rel (!%p28_p1) target bundleno = 14 (0xe), region = 135 }
 0x721   : > { %s8002_s19 = smov %s7998_s6 }
 0x723   : > { %s8004_s22 = smov %s8000_s1 }
 0x725   :  { %6127 = vsyncpa [#allocation3], 1 }
 0x726   :  { %6129 = vsyncpa [#allocation3 + $0x1], 1 }
 0x727   :  { %6130 = vsyncpa [#allocation6], 1 }
 0x728   :  { %6132 = vsyncpa [#allocation6 + $0x1], 1 }
 0x729   :  { %6133 = vsyncpa [#allocation9], 1 }
 0x72a   :  { %6135 = vsyncpa [#allocation9 + $0x1], 1 }
 0x72b   :  { %6136 = vsyncpa [#allocation4], 1 }
 0x72c   :  { %6138 = vsyncpa [#allocation4 + $0x1], 1 }
 0x72d   :  { %6139 = vsyncpa [#allocation12], 1 }
 0x72e   :  { %6141 = vsyncpa [#allocation12 + $0x1], 1 }

</bundles_post_ra>
